<compile_context>
chip_gen: v6e
topology: v6e:2x2x1
jax: 0.10.0
libtpu: 0.0.40
codegen_flags: <defaults>
</compile_context>

<pallas_src>
import functools

import jax
import jax.numpy as jnp
from jax.experimental import pallas as pl
from jax.experimental.pallas import tpu as pltpu


def _round_up(x, m):
    return -(-x // m) * m


# --------------------------------------------------------------------------
# Kernel
# --------------------------------------------------------------------------
def _ffn_kernel(x_ref, w1_ref, b1_ref, w2_ref, b2_ref, o_ref, acc_ref, *, block_h):
    """One (tm, C) row tile of  y = relu(x @ W1 + b1) @ W2 + b2.

    x_ref:  (tm, C) native dtype   w1_ref: (C, H) bf16   b1_ref: (1, H) f32
    w2_ref: (H, C) bf16            b2_ref: (1, C) f32    o_ref:  (tm, C)
    acc_ref: (tm, C) f32 VMEM scratch accumulator.

    The hidden dim H is processed in `block_h` chunks so the (tm, H) f32
    intermediate never lives all at once and matmul-2 of chunk j overlaps the
    bias/ReLU/cast drain of chunk j+1.
    """
    cdt = w1_ref.dtype                       # MXU operand dtype (bf16)
    x = x_ref[...].astype(cdt)               # cast in-kernel (x DMA'd as-is)
    H = w1_ref.shape[1]
    n_h = H // block_h
    for j in range(n_h):                     # static trip count (fully visible)
        lo, hi = j * block_h, (j + 1) * block_h
        h = jnp.dot(x, w1_ref[:, lo:hi], preferred_element_type=jnp.float32)
        h = jnp.maximum(h + b1_ref[:, lo:hi], 0.0).astype(cdt)
        part = jnp.dot(h, w2_ref[lo:hi, :], preferred_element_type=jnp.float32)
        if j == 0:
            acc_ref[...] = part
        else:
            acc_ref[...] += part
    o_ref[...] = (acc_ref[...] + b2_ref[...]).astype(o_ref.dtype)


# --------------------------------------------------------------------------
# Tiling / capability helpers
# --------------------------------------------------------------------------
def _default_max_tm():
    """v5e: stay at 512 (197 TF/s MXU -> per-step overhead already <6%).
    v6e/v7x: 1024 halves the ~0.35us/step grid overhead and still fits VMEM."""
    try:
        kind = jax.devices()[0].device_kind.lower()
    except Exception:  # benign config fallback only
        return 1024
    if "v5" in kind and ("lite" in kind or "v5e" in kind):
        return 512
    return 1024


def _choose_tm(M, max_tm):
    """Row tile: tiny M -> one tile; otherwise smallest EVEN tile count with
    tm <= max_tm so the 'parallel' M axis splits evenly across v7x's 2 TCs."""
    if M <= 64:
        # Decode-shaped: one tile; splitting would duplicate weight DMA.
        return max(8, _round_up(M, 8))
    n = max(2, pl.cdiv(M, max_tm))
    if n % 2:
        n += 1
    return _round_up(pl.cdiv(M, n), 8)


@functools.cache
def _supports_single_buffered_specs():
    """Tiny probe compile: does this build accept pipeline_mode=pl.Buffered(1)
    on a constant-index BlockSpec?  Explicit capability check so the real
    kernel's compile errors are never swallowed."""
    def _probe(a_ref, o_ref):
        o_ref[...] = a_ref[...] + 1.0

    try:
        fn = pl.pallas_call(
            _probe,
            out_shape=jax.ShapeDtypeStruct((16, 128), jnp.float32),
            grid=(2,),
            in_specs=[pl.BlockSpec((8, 128), lambda i: (0, 0),
                                   pipeline_mode=pl.Buffered(1))],
            out_specs=pl.BlockSpec((8, 128), lambda i: (i, 0)),
        )
        jax.block_until_ready(fn(jnp.zeros((8, 128), jnp.float32)))
        return True
    except Exception:
        return False


# --------------------------------------------------------------------------
# Wrapper
# --------------------------------------------------------------------------
def feed_forward(x, w1, b1, w2, b2, *, tm=None, block_h=512, out_dtype=None,
                 single_buffer_weights=None):
    """Fused FeedForward: y = dropout(relu(x @ w1 + b1) @ w2 + b2) (eval mode).

    x  : (B, T, C) float array; read once in its native dtype, cast in-kernel.
    w1 : (C, 4C)  w2: (4C, C)  -- store persistently in bfloat16 for the
         MXU-native path (weights are (in, out), i.e. the transpose of the
         torch nn.Linear (out, in) layout).  No per-call cast is done here.
    b1 : (4C,)    b2: (C,)     -- kept / promoted to f32 (tiny).
    """
    B, T, C = x.shape
    H = w1.shape[1]
    M = B * T
    if out_dtype is None:
        out_dtype = x.dtype

    if tm is None:
        tm = _choose_tm(M, _default_max_tm())
    grid_m = pl.cdiv(M, tm)

    if H % block_h != 0:
        block_h = H

    x2 = x.reshape(M, C)                            # metadata only
    b1_2 = b1.astype(jnp.float32).reshape(1, H)     # tiny (KBs)
    b2_2 = b2.astype(jnp.float32).reshape(1, C)

    if single_buffer_weights is None:
        single_buffer_weights = _supports_single_buffered_specs()
    resident = (
        dict(pipeline_mode=pl.Buffered(1)) if single_buffer_weights else {}
    )

    isz = lambda a: jnp.dtype(a.dtype).itemsize
    out_isz = jnp.dtype(out_dtype).itemsize
    w_bytes = C * H * isz(w1) + H * 4 + H * C * isz(w2) + C * 4
    wbuf = 1 if single_buffer_weights else 2

    # Per-step VMEM footprint -> derived vmem limit (instead of hard-coded).
    footprint = (
        2 * tm * C * isz(x2)          # double-buffered x tile
        + 2 * tm * C * out_isz        # double-buffered out tile
        + wbuf * w_bytes              # resident weights/biases
        + tm * C * 4                  # f32 accumulator scratch
        + tm * block_h * (4 + isz(w1))  # live hidden chunk (f32 + cast)
        + tm * C * isz(w1)            # in-kernel cast copy of x
    )
    vmem_limit = max(32 << 20, min(int(footprint * 1.5) + (8 << 20), 100 << 20))

    cost = pl.CostEstimate(
        flops=4 * M * C * H,          # two matmuls, 2*M*C*H each
        transcendentals=0,
        bytes_accessed=M * C * isz(x2) + w_bytes + M * C * out_isz,
    )

    kernel = functools.partial(_ffn_kernel, block_h=block_h)
    out = pl.pallas_call(
        kernel,
        out_shape=jax.ShapeDtypeStruct((M, C), out_dtype),
        grid_spec=pltpu.PrefetchScalarGridSpec(
            num_scalar_prefetch=0,
            grid=(grid_m,),
            in_specs=[
                pl.BlockSpec((tm, C), lambda i: (i, 0)),             # x tile
                pl.BlockSpec((C, H), lambda i: (0, 0), **resident),  # W1
                pl.BlockSpec((1, H), lambda i: (0, 0), **resident),  # b1
                pl.BlockSpec((H, C), lambda i: (0, 0), **resident),  # W2
                pl.BlockSpec((1, C), lambda i: (0, 0), **resident),  # b2
            ],
            out_specs=pl.BlockSpec((tm, C), lambda i: (i, 0)),
            scratch_shapes=[pltpu.VMEM((tm, C), jnp.float32)],
        ),
        compiler_params=pltpu.CompilerParams(
            dimension_semantics=("parallel",),
            vmem_limit_bytes=vmem_limit,
        ),
        cost_estimate=cost,
    )(x2, w1, b1_2, w2, b2_2)

    return out.reshape(B, T, C)


# --------------------------------------------------------------------------
# Demo / self-check
# --------------------------------------------------------------------------
def _init_params(key, n_embd, dtype=jnp.float32):
    """Deterministic params matching nn.Linear shapes (stored transposed)."""
    h = 4 * n_embd
    k1, k2, k3, k4 = jax.random.split(key, 4)
    lim1 = 1.0 / jnp.sqrt(jnp.float32(n_embd))
    lim2 = 1.0 / jnp.sqrt(jnp.float32(h))
    w1 = jax.random.uniform(k1, (n_embd, h), dtype, -lim1, lim1)   # (in, out)
    b1 = jax.random.uniform(k2, (h,), dtype, -lim1, lim1)
    w2 = jax.random.uniform(k3, (h, n_embd), dtype, -lim2, lim2)   # (in, out)
    b2 = jax.random.uniform(k4, (n_embd,), dtype, -lim2, lim2)
    return w1, b1, w2, b2


if __name__ == "__main__":
    n_embd = 384          # module default
    B, T = 2, 8           # small batch / sequence

    key = jax.random.PRNGKey(0)
    kx, kp = jax.random.split(key)
    x = jax.random.normal(kx, (B, T, n_embd), jnp.float32)
    w1, b1, w2, b2 = _init_params(kp, n_embd)

    # Store weights persistently in bf16 (one-time, outside the hot path);
    # biases stay f32 and are added after the f32-accumulating matmuls.
    w1 = w1.astype(jnp.bfloat16)
    w2 = w2.astype(jnp.bfloat16)

    y = feed_forward(x, w1, b1, w2, b2)
    y = jax.block_until_ready(y)
    assert y.shape == (B, T, n_embd)
    assert y.dtype == x.dtype

    # Pure-JAX reference with the same bf16-operand / f32-accumulate recipe
    # (dropout = identity in eval mode).
    xb = x.reshape(-1, n_embd).astype(jnp.bfloat16)
    href = jnp.maximum(
        jnp.dot(xb, w1, preferred_element_type=jnp.float32) + b1, 0.0
    )
    ref = (
        jnp.dot(href.astype(jnp.bfloat16), w2, preferred_element_type=jnp.float32)
        + b2
    ).reshape(B, T, n_embd).astype(x.dtype)

    err = float(jnp.max(jnp.abs(y - ref)))
    assert jnp.allclose(y, ref, atol=2e-2, rtol=2e-2), f"max abs err {err}"

    print("KERNEL_OK")
</pallas_src>

<mosaic_0001>
module attributes {stable_mosaic.version = 11 : i64} {
  func.func @_probe(%arg0: i32, %arg1: memref<8x128xf32, #tpu.memory_space<vmem>>, %arg2: memref<8x128xf32, #tpu.memory_space<vmem>>) attributes {dimension_semantics = [#tpu.dimension_semantics<arbitrary>], iteration_bounds = array<i64: 2>, scalar_prefetch = 0 : i64, scratch_operands = 0 : i64, tpu.core_type = #tpu.core_type<tc>, window_params = [{pipeline_mode = #tpu.pipeline_mode<synchronous>, transform_indices = @transform_0, window_bounds = array<i64: 8, 128>}, {transform_indices = @transform_1, window_bounds = array<i64: 8, 128>}]} {
    %c0 = arith.constant 0 : index
    %c0_0 = arith.constant 0 : index
    %0 = vector.load %arg1[%c0, %c0_0] : memref<8x128xf32, #tpu.memory_space<vmem>>, vector<8x128xf32>
    %cst = arith.constant 1.000000e+00 : f32
    %1 = vector.broadcast %cst : f32 to vector<8x128xf32>
    %2 = arith.addf %0, %1 : vector<8x128xf32>
    %c0_1 = arith.constant 0 : index
    %c0_2 = arith.constant 0 : index
    %3 = vector.load %arg2[%c0_1, %c0_2] : memref<8x128xf32, #tpu.memory_space<vmem>>, vector<8x128xf32>
    tpu.vector_store %arg2[%c0_1, %c0_2], %2 {strides = array<i32>} : memref<8x128xf32, #tpu.memory_space<vmem>>, vector<8x128xf32>,
    return
  }
  func.func @transform_0(%arg0: i32) -> (i32, i32) {
    %c0_i32 = arith.constant 0 : i32
    %c0_i32_0 = arith.constant 0 : i32
    %c0_i32_1 = arith.constant 0 : i32
    return %c0_i32, %c0_i32_0 : i32, i32
  }
  func.func @transform_1(%arg0: i32) -> (i32, i32) {
    %c0_i32 = arith.constant 0 : i32
    %c0_i32_0 = arith.constant 0 : i32
    return %arg0, %c0_i32 : i32, i32
  }
}

module attributes {stable_mosaic.version = 11 : i64} {
  func.func @_ffn_kernel(%arg0: i32, %arg1: memref<16x384xf32, #tpu.memory_space<vmem>>, %arg2: memref<384x1536xbf16, #tpu.memory_space<vmem>>, %arg3: memref<1x1536xf32, #tpu.memory_space<vmem>>, %arg4: memref<1536x384xbf16, #tpu.memory_space<vmem>>, %arg5: memref<1x384xf32, #tpu.memory_space<vmem>>, %arg6: memref<16x384xf32, #tpu.memory_space<vmem>>, %arg7: memref<16x384xf32, #tpu.memory_space<vmem>>) attributes {dimension_semantics = [#tpu.dimension_semantics<parallel>], iteration_bounds = array<i64: 1>, scalar_prefetch = 0 : i64, scratch_operands = 1 : i64, tpu.core_type = #tpu.core_type<tc>, window_params = [{transform_indices = @transform_0, window_bounds = array<i64: 16, 384>}, {pipeline_mode = #tpu.pipeline_mode<synchronous>, transform_indices = @transform_1, window_bounds = array<i64: 384, 1536>}, {pipeline_mode = #tpu.pipeline_mode<synchronous>, transform_indices = @transform_2, window_bounds = array<i64: 1, 1536>}, {pipeline_mode = #tpu.pipeline_mode<synchronous>, transform_indices = @transform_3, window_bounds = array<i64: 1536, 384>}, {pipeline_mode = #tpu.pipeline_mode<synchronous>, transform_indices = @transform_4, window_bounds = array<i64: 1, 384>}, {transform_indices = @transform_5, window_bounds = array<i64: 16, 384>}]} {
    %c0 = arith.constant 0 : index
    %c0_0 = arith.constant 0 : index
    %0 = vector.load %arg1[%c0, %c0_0] : memref<16x384xf32, #tpu.memory_space<vmem>>, vector<16x384xf32>
    %1 = arith.truncf %0 : vector<16x384xf32> to vector<16x384xbf16>
    %c0_1 = arith.constant 0 : index
    %c0_2 = arith.constant 0 : index
    %2 = vector.load %arg2[%c0_1, %c0_2] : memref<384x1536xbf16, #tpu.memory_space<vmem>>, vector<384x512xbf16>
    %cst = arith.constant dense<0.000000e+00> : vector<16x512xf32>
    %3 = tpu.matmul %1, %2, %cst {dimension_numbers = #tpu.dot_dimension_numbers<[1], [0], [0], [1], [0, 0, 1, 1], [], []>} : vector<16x384xbf16>, vector<384x512xbf16>, vector<16x512xf32> -> vector<16x512xf32>
    %c0_3 = arith.constant 0 : index
    %c0_4 = arith.constant 0 : index
    %4 = vector.load %arg3[%c0_3, %c0_4] : memref<1x1536xf32, #tpu.memory_space<vmem>>, vector<1x512xf32>
    %5 = vector.broadcast %4 : vector<1x512xf32> to vector<16x512xf32>
    %6 = arith.addf %3, %5 : vector<16x512xf32>
    %cst_5 = arith.constant 0.000000e+00 : f32
    %7 = vector.broadcast %cst_5 : f32 to vector<16x512xf32>
    %8 = arith.maximumf %6, %7 : vector<16x512xf32>
    %9 = arith.truncf %8 : vector<16x512xf32> to vector<16x512xbf16>
    %c0_6 = arith.constant 0 : index
    %c0_7 = arith.constant 0 : index
    %10 = vector.load %arg4[%c0_6, %c0_7] : memref<1536x384xbf16, #tpu.memory_space<vmem>>, vector<512x384xbf16>
    %cst_8 = arith.constant dense<0.000000e+00> : vector<16x384xf32>
    %11 = tpu.matmul %9, %10, %cst_8 {dimension_numbers = #tpu.dot_dimension_numbers<[1], [0], [0], [1], [0, 0, 1, 1], [], []>} : vector<16x512xbf16>, vector<512x384xbf16>, vector<16x384xf32> -> vector<16x384xf32>
    %c0_9 = arith.constant 0 : index
    %c0_10 = arith.constant 0 : index
    %12 = vector.load %arg7[%c0_9, %c0_10] : memref<16x384xf32, #tpu.memory_space<vmem>>, vector<16x384xf32>
    tpu.vector_store %arg7[%c0_9, %c0_10], %11 {strides = array<i32>} : memref<16x384xf32, #tpu.memory_space<vmem>>, vector<16x384xf32>,
    %c0_11 = arith.constant 0 : index
    %c512 = arith.constant 512 : index
    %13 = vector.load %arg2[%c0_11, %c512] : memref<384x1536xbf16, #tpu.memory_space<vmem>>, vector<384x512xbf16>
    %cst_12 = arith.constant dense<0.000000e+00> : vector<16x512xf32>
    %14 = tpu.matmul %1, %13, %cst_12 {dimension_numbers = #tpu.dot_dimension_numbers<[1], [0], [0], [1], [0, 0, 1, 1], [], []>} : vector<16x384xbf16>, vector<384x512xbf16>, vector<16x512xf32> -> vector<16x512xf32>
    %c0_13 = arith.constant 0 : index
    %c512_14 = arith.constant 512 : index
    %15 = vector.load %arg3[%c0_13, %c512_14] : memref<1x1536xf32, #tpu.memory_space<vmem>>, vector<1x512xf32>
    %16 = vector.broadcast %15 : vector<1x512xf32> to vector<16x512xf32>
    %17 = arith.addf %14, %16 : vector<16x512xf32>
    %cst_15 = arith.constant 0.000000e+00 : f32
    %18 = vector.broadcast %cst_15 : f32 to vector<16x512xf32>
    %19 = arith.maximumf %17, %18 : vector<16x512xf32>
    %20 = arith.truncf %19 : vector<16x512xf32> to vector<16x512xbf16>
    %c512_16 = arith.constant 512 : index
    %c0_17 = arith.constant 0 : index
    %21 = vector.load %arg4[%c512_16, %c0_17] : memref<1536x384xbf16, #tpu.memory_space<vmem>>, vector<512x384xbf16>
    %cst_18 = arith.constant dense<0.000000e+00> : vector<16x384xf32>
    %22 = tpu.matmul %20, %21, %cst_18 {dimension_numbers = #tpu.dot_dimension_numbers<[1], [0], [0], [1], [0, 0, 1, 1], [], []>} : vector<16x512xbf16>, vector<512x384xbf16>, vector<16x384xf32> -> vector<16x384xf32>
    %c0_19 = arith.constant 0 : index
    %c0_20 = arith.constant 0 : index
    %23 = vector.load %arg7[%c0_19, %c0_20] : memref<16x384xf32, #tpu.memory_space<vmem>>, vector<16x384xf32>
    %24 = arith.addf %23, %22 : vector<16x384xf32>
    %c0_21 = arith.constant 0 : index
    %c0_22 = arith.constant 0 : index
    %25 = vector.load %arg7[%c0_21, %c0_22] : memref<16x384xf32, #tpu.memory_space<vmem>>, vector<16x384xf32>
    tpu.vector_store %arg7[%c0_21, %c0_22], %24 {strides = array<i32>} : memref<16x384xf32, #tpu.memory_space<vmem>>, vector<16x384xf32>,
    %c0_23 = arith.constant 0 : index
    %c1024 = arith.constant 1024 : index
    %26 = vector.load %arg2[%c0_23, %c1024] : memref<384x1536xbf16, #tpu.memory_space<vmem>>, vector<384x512xbf16>
    %cst_24 = arith.constant dense<0.000000e+00> : vector<16x512xf32>
    %27 = tpu.matmul %1, %26, %cst_24 {dimension_numbers = #tpu.dot_dimension_numbers<[1], [0], [0], [1], [0, 0, 1, 1], [], []>} : vector<16x384xbf16>, vector<384x512xbf16>, vector<16x512xf32> -> vector<16x512xf32>
    %c0_25 = arith.constant 0 : index
    %c1024_26 = arith.constant 1024 : index
    %28 = vector.load %arg3[%c0_25, %c1024_26] : memref<1x1536xf32, #tpu.memory_space<vmem>>, vector<1x512xf32>
    %29 = vector.broadcast %28 : vector<1x512xf32> to vector<16x512xf32>
    %30 = arith.addf %27, %29 : vector<16x512xf32>
    %cst_27 = arith.constant 0.000000e+00 : f32
    %31 = vector.broadcast %cst_27 : f32 to vector<16x512xf32>
    %32 = arith.maximumf %30, %31 : vector<16x512xf32>
    %33 = arith.truncf %32 : vector<16x512xf32> to vector<16x512xbf16>
    %c1024_28 = arith.constant 1024 : index
    %c0_29 = arith.constant 0 : index
    %34 = vector.load %arg4[%c1024_28, %c0_29] : memref<1536x384xbf16, #tpu.memory_space<vmem>>, vector<512x384xbf16>
    %cst_30 = arith.constant dense<0.000000e+00> : vector<16x384xf32>
    %35 = tpu.matmul %33, %34, %cst_30 {dimension_numbers = #tpu.dot_dimension_numbers<[1], [0], [0], [1], [0, 0, 1, 1], [], []>} : vector<16x512xbf16>, vector<512x384xbf16>, vector<16x384xf32> -> vector<16x384xf32>
    %c0_31 = arith.constant 0 : index
    %c0_32 = arith.constant 0 : index
    %36 = vector.load %arg7[%c0_31, %c0_32] : memref<16x384xf32, #tpu.memory_space<vmem>>, vector<16x384xf32>
    %37 = arith.addf %36, %35 : vector<16x384xf32>
    %c0_33 = arith.constant 0 : index
    %c0_34 = arith.constant 0 : index
    %38 = vector.load %arg7[%c0_33, %c0_34] : memref<16x384xf32, #tpu.memory_space<vmem>>, vector<16x384xf32>
    tpu.vector_store %arg7[%c0_33, %c0_34], %37 {strides = array<i32>} : memref<16x384xf32, #tpu.memory_space<vmem>>, vector<16x384xf32>,
    %c0_35 = arith.constant 0 : index
    %c0_36 = arith.constant 0 : index
    %39 = vector.load %arg7[%c0_35, %c0_36] : memref<16x384xf32, #tpu.memory_space<vmem>>, vector<16x384xf32>
    %c0_37 = arith.constant 0 : index
    %c0_38 = arith.constant 0 : index
    %40 = vector.load %arg5[%c0_37, %c0_38] : memref<1x384xf32, #tpu.memory_space<vmem>>, vector<1x384xf32>
    %41 = vector.broadcast %40 : vector<1x384xf32> to vector<16x384xf32>
    %42 = arith.addf %39, %41 : vector<16x384xf32>
    %c0_39 = arith.constant 0 : index
    %c0_40 = arith.constant 0 : index
    %43 = vector.load %arg6[%c0_39, %c0_40] : memref<16x384xf32, #tpu.memory_space<vmem>>, vector<16x384xf32>
    tpu.vector_store %arg6[%c0_39, %c0_40], %42 {strides = array<i32>} : memref<16x384xf32, #tpu.memory_space<vmem>>, vector<16x384xf32>,
    return
  }
  func.func @transform_0(%arg0: i32) -> (i32, i32) {
    %c0_i32 = arith.constant 0 : i32
    %c0_i32_0 = arith.constant 0 : i32
    return %arg0, %c0_i32 : i32, i32
  }
  func.func @transform_1(%arg0: i32) -> (i32, i32) {
    %c0_i32 = arith.constant 0 : i32
    %c0_i32_0 = arith.constant 0 : i32
    %c0_i32_1 = arith.constant 0 : i32
    return %c0_i32, %c0_i32_0 : i32, i32
  }
  func.func @transform_2(%arg0: i32) -> (i32, i32) {
    %c0_i32 = arith.constant 0 : i32
    %c0_i32_0 = arith.constant 0 : i32
    %c0_i32_1 = arith.constant 0 : i32
    return %c0_i32, %c0_i32_0 : i32, i32
  }
  func.func @transform_3(%arg0: i32) -> (i32, i32) {
    %c0_i32 = arith.constant 0 : i32
    %c0_i32_0 = arith.constant 0 : i32
    %c0_i32_1 = arith.constant 0 : i32
    return %c0_i32, %c0_i32_0 : i32, i32
  }
  func.func @transform_4(%arg0: i32) -> (i32, i32) {
    %c0_i32 = arith.constant 0 : i32
    %c0_i32_0 = arith.constant 0 : i32
    %c0_i32_1 = arith.constant 0 : i32
    return %c0_i32, %c0_i32_0 : i32, i32
  }
  func.func @transform_5(%arg0: i32) -> (i32, i32) {
    %c0_i32 = arith.constant 0 : i32
    %c0_i32_0 = arith.constant 0 : i32
    return %arg0, %c0_i32 : i32, i32
  }
}

</mosaic_0001>

<bundles_post_ra>
// kernel: tpu_custom_call.1
= control target key start
LH: loop header
LB: loop body
LE: loop exit
PB: predicated region body
PF: predicated region fallthrough
CT: control target
= control target key end

     0   :  { %6 = vsyncpa [#allocation3], 0  ;;  %s448_s0 = inlined_call_operand.hbm [shape: f32[8,128], index: 0, kind: input, shape index: {}]   ;;  %s449_s1 = inlined_call_operand.hbm [shape: f32[16,128], index: 1, kind: output, shape index: {}]  }
   0x1   :  { %7 = vsyncpa [#allocation4], 0 }
   0x2   :  { %9 = vsyncpa [#allocation4 + $0x1], 0  ;;  %s348_s6 = smov 0   ;;  %s350_s7 = smov 0  }
   0x3   :  { %s352_s8 = smov 0   ;;  %s354_s9 = smov 0  }
   0x4 LB: > { %s369_s10 = sadd.s32 4294967295, %s334_s9   ;;  %s184_s11 = sadd.s32 4294967294, %s334_s9   ;;  %s334_s9 = sphi %s354_s9, %s457_s9   ;;  %s330_s8 = sphi %s352_s8, %s456_s8   ;;  %s326_s7 = sphi %s350_s7, %s455_s7   ;;  %s322_s6 = sphi %s348_s6, %s454_s6  }
   0x5   : > { %s373_s12 = sadd.s32 1, %s334_s9   ;;  %s43_s13 = sadd.s32 1, %s330_s8 }
   0x6   : > { %s40_s14 = ssub.s32 %s334_s9, %s373_s12  ;;  %p53_p0 = scmp.ne.s32.totalorder %s330_s8, %s326_s7 }
   0x7   : > { %p41_p1 = scmp.eq.s32.totalorder %s40_s14, 0  ;;  %p54_p2 = scmp.eq.s32.totalorder %s369_s10, 1 }
   0x8   : > { %p59_p3 = scmp.ne.s32.totalorder %s326_s7, %s322_s6  ;;  %p60_p4 = scmp.eq.s32.totalorder %s184_s11, 1 }
   0x9   : > { %s384_s15 = scalar_select %p41_p1, %s330_s8, %s43_s13  }
   0xa   : > { %p386_p5 = por %p54_p2, %p53_p0  ;;  %p390_p6 = por %p60_p4, %p59_p3 }
   0xb   : > { %p185_p7 = scmp.ge.s32.totalorder %s334_s9, 1  ;;  %p67_p8 = scmp.lt.s32.totalorder %s334_s9, 3 }
   0xc   : > { %s451_s17 = scalar_select %p390_p6, 1, 0 }
   0xd   : > { %p208_p9 = scmp.eq.s32.totalorder %s369_s10, 0  ;;  %p397_p10 = pnand %p185_p7, %p67_p8 }
   0xe   : > { %s336_s19 = smov [#allocation2]  }
   0xf   : > { %s80_s20 = sshll.u32 %s336_s19, 4  ;;  %p200_p11 = pneg %p397_p10  ;;  %s81_s20 = int_to_ptr.vmem [resolvable:$true] %s80_s20 }
  0x10   : > { %s255_s21 = scalar_lea.vmem %s81_s20, 128  ;;  %p263_p3 = scmp.lt.s32.totalorder %s81_s20, %s81_s20 }
  0x11   : > { %p201_p12 = pnand %p208_p9, %p200_p11  ;;  %p256_p0 = scmp.ne.s32.totalorder %s81_s20, %s255_s21 }
  0x12   : > { %p264_p4 = scmp.lt.s32.totalorder %s255_s21, %s255_s21 }
  0x13   : > { %p246_p13 = pneg %p201_p12 }
  0x14   : > { %p265_p6 = por %p264_p4, %p263_p3 }
  0x15   : > { %p258_p1 = pnand %p256_p0, %p246_p13 }
  0x17   : > { %p259_p2 = pneg %p258_p1 }
  0x19   : > { %p266_p7 = pnand %p265_p6, %p259_p2 }
  0x1b   : > { %269 = shalt.err (!%p266_p7)
}
  0x1c   : > { %203 = dma.hbm_to_vmem [thread:$0]  (!%p201_p12), %s448_s0, 128, %s81_s20, [#allocation3]  }
  0x1d   : > { %93 = sbr.rel (%p397_p10) target bundleno = 60 (0x3c), region = 24 }
  0x22   : > { %313 = dma.done.wait (%p208_p9), [#allocation3], 128  }
  0x23   : > { %315 = vsyncadd (%p208_p9), [#allocation3], 4294967168  ;;  %s105_s24 = sand.u32 1, %s326_s7   ;;  %s191_s28 = sshll.u32 %s369_s10, 7  ;;  %v108_v0 = vld [vmem:[#allocation2] sm:$0xff] }
  0x24   : > { %s189_s25 = sshll.u32 %s105_s24, 3  ;;  %v109_v1 = vadd.f32 1.0, %v108_v0  ;;  %s123_s2 = scalar_lea.hbm %s449_s1, %s191_s28 }
  0x25   : > { %s107_s26 = scalar_lea.vmem [#allocation5], %s189_s25  ;;  %s112_s3 = scalar_lea.sflag [#allocation4], %s105_s24 }
  0x26   : > { %s125_s27 = sshll.u32 %s107_s26, 4  ;;  %110 = vst [vmem:[%s107_s26] sm:$0xff] %v109_v1  ;;  %s337_s5 = smov [#allocation5]   ;;  %s126_s27 = int_to_ptr.vmem [resolvable:$true] %s125_s27 }
  0x27   : > { %s270_s4 = scalar_lea.vmem %s126_s27, 128  ;;  %s274_s11 = sshll.u32 %s337_s5, 4  ;;  %s275_s11 = int_to_ptr.vmem [resolvable:$false] %s274_s11 }
  0x28   : > { %p271_p6 = scmp.ne.s32.totalorder %s126_s27, %s270_s4  ;;  %s276_s13 = scalar_lea.vmem %s275_s11, 256 }
  0x29   : > { %p277_p10 = scmp.lt.s32.totalorder %s126_s27, %s275_s11  ;;  %p278_p11 = scmp.lt.s32.totalorder %s276_s13, %s270_s4 }
  0x2a   : > { %p272_p8 = pnand %p271_p6, %p386_p5 }
  0x2b   : > { %p279_p12 = por %p278_p11, %p277_p10 }
  0x2c   : > { %p273_p9 = pneg %p272_p8 }
  0x2e   : > { %p280_p13 = pnand %p279_p12, %p273_p9 }
  0x30   : > { %283 = shalt.err (!%p280_p13)
}
  0x31   : > { %s284_s10 = scalar_lea.hbm %s123_s2, 128  ;;  %s288_s19 = scalar_lea.hbm %s449_s1, 256 }
  0x32   : > { %p285_p0 = scmp.ne.s32.totalorder %s123_s2, %s284_s10  ;;  %p289_p3 = scmp.lt.s32.totalorder %s123_s2, %s449_s1 }
  0x33   : > { %p290_p4 = scmp.lt.s32.totalorder %s288_s19, %s284_s10 }
  0x34   : > { %p286_p1 = pnand %p285_p0, %p386_p5 }
  0x35   : > { %p291_p7 = por %p290_p4, %p289_p3 }
  0x36   : > { %p287_p2 = pneg %p286_p1 }
  0x38   : > { %p292_p6 = pnand %p291_p7, %p287_p2 }
  0x3a   : > { %295 = shalt.err (!%p292_p6)
}
  0x3b   : > { %198 = dma.vmem_to_hbm [thread:$0]  (%p386_p5), %s126_s27, 128, %s123_s2, %s112_s3  }
  0x3c PF: > { %p210_p8 = scmp.ge.s32.totalorder %s334_s9, 2  ;;  %s137_s22 = sand.u32 1, %s322_s6  }
  0x3d   : > { %p453_p9 = scmp.ne.s32.totalorder %s451_s17, 0  ;;  %s138_s23 = scalar_lea.sflag [#allocation4], %s137_s22 }
  0x3f   : > { %p205_p10 = pnand %p210_p8, %p453_p9 }
  0x41   : > { %p206_p11 = pneg %p205_p10 }
  0x43   : > { %317 = dma.done.wait (%p206_p11), %s138_s23, 128  }
  0x44   : > { %319 = vsyncadd (%p206_p11), %s138_s23, 4294967168  ;;  %p12_p12 = scmp.ge.s32.totalorder %s373_s12, 4   ;;  %s454_s6 = smov %s326_s7 }
  0x45   : > { %s455_s7 = smov %s330_s8  ;;  %s456_s8 = smov %s384_s15 }
  0x46   : > { %s457_s9 = smov %s373_s12  ;;  %14 = sbr.rel (!%p12_p12) target bundleno = 4 (0x4), region = 61 }
  0x4b   :  { %143 = vsyncpa [#allocation3], 1 }
  0x4c   :  { %145 = vsyncpa [#allocation3 + $0x1], 1 }
  0x4d   :  { %146 = vsyncpa [#allocation4], 1 }
  0x4e   :  { %148 = vsyncpa [#allocation4 + $0x1], 1 }

// kernel: tpu_custom_call.1
= control target key start
LH: loop header
LB: loop body
LE: loop exit
PB: predicated region body
PF: predicated region fallthrough
CT: control target
= control target key end

     0   :  { %10 = vsyncpa [#allocation4], 0  ;;  %s6803_s0 = inlined_call_operand.hbm [shape: f32[16,384], index: 0, kind: input, shape index: {}]   ;;  %s6804_s1 = inlined_call_operand.hbm [shape: bf16[384,1536], index: 1, kind: input, shape index: {}]   ;;  %s6805_s2 = inlined_call_operand.hbm [shape: f32[1,1536], index: 2, kind: input, shape index: {}]   ;;  %s6806_s3 = inlined_call_operand.hbm [shape: bf16[1536,384], index: 3, kind: input, shape index: {}]   ;;  %s6807_s4 = inlined_call_operand.hbm [shape: f32[1,384], index: 4, kind: input, shape index: {}]   ;;  %s6808_s5 = inlined_call_operand.hbm [shape: f32[16,384], index: 5, kind: output, shape index: {}]  }
   0x1   :  { %11 = vsyncpa [#allocation7], 0 }
   0x2   :  { %12 = vsyncpa [#allocation10], 0 }
   0x3   :  { %13 = vsyncpa [#allocation5], 0  ;;  %s6626_s18 = smov [#allocation6]  }
   0x4   :  { %s31_s19 = sshll.u32 %s6626_s18, 4  ;;  %s32_s19 = int_to_ptr.vmem [resolvable:$true] %s31_s19 }
   0x5   :  { %s6506_s20 = scalar_lea.vmem %s32_s19, 36864  ;;  %p6511_p1 = scmp.lt.s32.totalorder %s32_s19, %s32_s19 }
   0x6   :  { %p6507_p0 = scmp.ne.s32.totalorder %s32_s19, %s6506_s20  ;;  %p6512_p2 = scmp.lt.s32.totalorder %s6506_s20, %s6506_s20 }
   0x8   :  { %p6513_p3 = por %p6512_p2, %p6511_p1 }
   0xa   :  { %p6514_p4 = pnand %p6513_p3, %p6507_p0 }
   0xc   :  { %6517 = shalt.err (!%p6514_p4)
}
   0xd   :  { %s6627_s21 = smov 768   ;;  %s6628_s22 = smov 48  }
   0xe   :  { %37 = dma.hbm_to_vmem [thread:$0]  %s6804_s1, 36864, %s32_s19, [#allocation7], %s6627_s21, %s6627_s21, %s6628_s22  }
   0xf   :  { %s6629_s25 = smov [#allocation9]  }
  0x10   :  { %s53_s26 = sshll.u32 %s6629_s25, 4  ;;  %s54_s26 = int_to_ptr.vmem [resolvable:$true] %s53_s26 }
  0x11   :  { %s6526_s27 = scalar_lea.vmem %s54_s26, 36864  ;;  %p6531_p6 = scmp.lt.s32.totalorder %s54_s26, %s54_s26 }
  0x12   :  { %p6527_p5 = scmp.ne.s32.totalorder %s54_s26, %s6526_s27  ;;  %p6532_p7 = scmp.lt.s32.totalorder %s6526_s27, %s6526_s27 }
  0x14   :  { %p6533_p8 = por %p6532_p7, %p6531_p6 }
  0x16   :  { %p6534_p9 = pnand %p6533_p8, %p6527_p5 }
  0x18   :  { %6537 = shalt.err (!%p6534_p9)
}
  0x19   :  { %s6630_s28 = smov 192   ;;  %s6631_s29 = smov 12  }
  0x1a   :  { %59 = dma.hbm_to_vmem [thread:$0]  %s6806_s3, 36864, %s54_s26, [#allocation10], %s6630_s28, %s6630_s28, %s6631_s29  }
  0x1b   :  { %s6632_s7 = smov [#allocation3]  }
  0x1c   :  { %s19_s8 = sshll.u32 %s6632_s7, 4  ;;  %s20_s8 = int_to_ptr.vmem [resolvable:$true] %s19_s8 }
  0x1d   :  { %s6546_s1 = scalar_lea.vmem %s20_s8, 768  ;;  %p6551_p11 = scmp.lt.s32.totalorder %s20_s8, %s20_s8 }
  0x1e   :  { %p6547_p10 = scmp.ne.s32.totalorder %s20_s8, %s6546_s1  ;;  %p6552_p12 = scmp.lt.s32.totalorder %s6546_s1, %s6546_s1 }
  0x20   :  { %p6553_p13 = por %p6552_p12, %p6551_p11 }
  0x22   :  { %p6554_p0 = pnand %p6553_p13, %p6547_p10 }
  0x24   :  { %6557 = shalt.err (!%p6554_p0)
}
  0x25   :  { %s6633_s9 = smov 384   ;;  %s6634_s10 = smov 24  }
  0x26   :  { %25 = dma.hbm_to_vmem [thread:$0]  %s6803_s0, 768, %s20_s8, [#allocation4], %s6633_s9, %s6633_s9, %s6634_s10  }
  0x27   :  { %s6635_s3 = smov [#allocation8]   ;;  %s6636_s14 = smov [#allocation11]  }
  0x28   :  { %s44_s13 = sshll.u32 %s6635_s3, 4  ;;  %s66_s15 = sshll.u32 %s6636_s14, 4  ;;  %s45_s13 = int_to_ptr.vmem [resolvable:$true] %s44_s13  ;;  %s67_s15 = int_to_ptr.vmem [resolvable:$true] %s66_s15 }
  0x29   :  { %s6566_s16 = scalar_lea.vmem %s45_s13, 192  ;;  %p6571_p2 = scmp.lt.s32.totalorder %s45_s13, %s45_s13 }
  0x2a   :  { %p6567_p1 = scmp.ne.s32.totalorder %s45_s13, %s6566_s16  ;;  %p6572_p3 = scmp.lt.s32.totalorder %s6566_s16, %s6566_s16 }
  0x2c   :  { %p6573_p4 = por %p6572_p3, %p6571_p2 }
  0x2e   :  { %p6574_p5 = pnand %p6573_p4, %p6567_p1 }
  0x30   :  { %6577 = shalt.err (!%p6574_p5)
}
  0x31   :  { %47 = dma.hbm_to_vmem [thread:$0]  %s6805_s2, 192, %s45_s13, [#allocation7]  }
  0x32   :  { %s6586_s19 = scalar_lea.vmem %s67_s15, 48  ;;  %s6590_s0 = scalar_lea.vmem %s67_s15, 64 }
  0x33   :  { %p6587_p6 = scmp.ne.s32.totalorder %s67_s15, %s6586_s19  ;;  %p6591_p7 = scmp.lt.s32.totalorder %s67_s15, %s67_s15 }
  0x34   :  { %p6592_p8 = scmp.lt.s32.totalorder %s6590_s0, %s6586_s19 }
  0x36   :  { %p6593_p9 = por %p6592_p8, %p6591_p7 }
  0x38   :  { %p6594_p10 = pnand %p6593_p9, %p6587_p6 }
  0x3a   :  { %6597 = shalt.err (!%p6594_p10)
}
  0x3b   :  { %69 = dma.hbm_to_vmem [thread:$0]  %s6807_s4, 48, %s67_s15, [#allocation10]  }
  0x3c   :  { %6618 = dma.done.wait [#allocation4], 768  }
  0x3d   :  { %6619 = vsyncadd [#allocation4], 4294966528 }
  0x3e   :  { %6620 = dma.done.wait [#allocation7], 37056  }
  0x3f   :  { %6621 = vsyncadd [#allocation7], 4294930240 }
  0x40   :  { %6622 = dma.done.wait [#allocation10], 36912  }
  0x41   :  { %6623 = vsyncadd [#allocation10], 4294930384  ;;  %v6637_v0 = vmov 0   ;;  %v5682_v1 = vld [vmem:[#allocation6 + $0x2a4] ss:$48 sps:$4 sm:$0xff]   ;;  %v91_v34 = vld [vmem:[#allocation3 + $0x28] sm:$0xff] }
  0x42   :  { %768 = vmatprep.mubr.bf16.mxu1 %v6637_v0  ;;  %v5684_v2 = vld [vmem:[#allocation6 + $0x8a4] ss:$48 sps:$4 sm:$0xff]   ;;  %693 = vmatprep.subr.bf16.mxu0 %v5682_v1  ;;  %v5686_v3 = vld [vmem:[#allocation6 + $0x2a0] ss:$48 sps:$4 sm:$0xff]   ;;  %v5734_v36 = vld [vmem:[#allocation6 + $0x2ac] ss:$48 sps:$4 sm:$0xff]  }
  0x43   :  { %v5687_v4 = vld [vmem:[#allocation6 + $0x8a0] ss:$48 sps:$4 sm:$0xff]   ;;  %736 = vmatprep.subr.bf16.mxu1 %v5684_v2  ;;  %v5688_v5 = vld [vmem:[#allocation6 + $0x244] ss:$48 sps:$4 sm:$0xff]   ;;  %694 = vmatpush1.bf16.msra.mxu0 %v5686_v3  ;;  %v5732_v38 = vld [vmem:[#allocation6 + $0x2a8] ss:$48 sps:$4 sm:$0xff]  }
  0x44   :  { %737 = vmatpush1.bf16.msra.mxu1 %v5687_v4  ;;  %v5690_v6 = vld [vmem:[#allocation6 + $0x844] ss:$48 sps:$4 sm:$0xff]   ;;  %v5692_v7 = vld [vmem:[#allocation6 + $0x240] ss:$48 sps:$4 sm:$0xff]   ;;  %695 = vmatprep.subr.bf16.mxu0 %v5688_v5  ;;  %v5740_v41 = vld [vmem:[#allocation6 + $0x24c] ss:$48 sps:$4 sm:$0xff]  }
  0x45   :  { %v5693_v8 = vld [vmem:[#allocation6 + $0x840] ss:$48 sps:$4 sm:$0xff]   ;;  %738 = vmatprep.subr.bf16.mxu1 %v5690_v6  ;;  %v5694_v9 = vld [vmem:[#allocation6 + $0x1e4] ss:$48 sps:$4 sm:$0xff]   ;;  %v5738_v42 = vld [vmem:[#allocation6 + $0x248] ss:$48 sps:$4 sm:$0xff]  }
  0x46   :  { %v5696_v10 = vld [vmem:[#allocation6 + $0x7e4] ss:$48 sps:$4 sm:$0xff]   ;;  %v5698_v11 = vld [vmem:[#allocation6 + $0x1e0] ss:$48 sps:$4 sm:$0xff]   ;;  %v5746_v45 = vld [vmem:[#allocation6 + $0x1ec] ss:$48 sps:$4 sm:$0xff]  }
  0x47   :  { %v5699_v12 = vld [vmem:[#allocation6 + $0x7e0] ss:$48 sps:$4 sm:$0xff]   ;;  %696 = vmatpush1.bf16.msra.mxu0 %v5692_v7  ;;  %v5700_v13 = vld [vmem:[#allocation6 + $0x184] ss:$48 sps:$4 sm:$0xff]   ;;  %v5744_v46 = vld [vmem:[#allocation6 + $0x1e8] ss:$48 sps:$4 sm:$0xff]  }
  0x48   :  { %739 = vmatpush1.bf16.msra.mxu1 %v5693_v8  ;;  %697 = vmatprep.subr.bf16.mxu0 %v5694_v9  ;;  %v5702_v14 = vld [vmem:[#allocation6 + $0x784] ss:$48 sps:$4 sm:$0xff]   ;;  %v5704_v15 = vld [vmem:[#allocation6 + $0x180] ss:$48 sps:$4 sm:$0xff]   ;;  %v5752_v49 = vld [vmem:[#allocation6 + $0x18c] ss:$48 sps:$4 sm:$0xff]  }
  0x49   :  { %740 = vmatprep.subr.bf16.mxu1 %v5696_v10  ;;  %v5705_v16 = vld [vmem:[#allocation6 + $0x780] ss:$48 sps:$4 sm:$0xff]   ;;  %v5706_v17 = vld [vmem:[#allocation6 + $0x124] ss:$48 sps:$4 sm:$0xff]   ;;  %v87_v50 = vld [vmem:[#allocation3 + $0x8] sm:$0xff]  ;;  %s6638_s2 = smov [#allocation12]  }
  0x4a   :  { %v5708_v18 = vld [vmem:[#allocation6 + $0x724] ss:$48 sps:$4 sm:$0xff]   ;;  %v5710_v19 = vld [vmem:[#allocation6 + $0x120] ss:$48 sps:$4 sm:$0xff]   ;;  %v5750_v52 = vld [vmem:[#allocation6 + $0x188] ss:$48 sps:$4 sm:$0xff]  }
  0x4b   :  { %698 = vmatpush1.bf16.msra.mxu0 %v5698_v11  ;;  %v5711_v20 = vld [vmem:[#allocation6 + $0x720] ss:$48 sps:$4 sm:$0xff]   ;;  %v5712_v21 = vld [vmem:[#allocation6 + $0xc4] ss:$48 sps:$4 sm:$0xff]   ;;  %v5758_v56 = vld [vmem:[#allocation6 + $0x12c] ss:$48 sps:$4 sm:$0xff]  }
  0x4c   :  { %741 = vmatpush1.bf16.msra.mxu1 %v5699_v12  ;;  %699 = vmatprep.subr.bf16.mxu0 %v5700_v13  ;;  %v5714_v22 = vld [vmem:[#allocation6 + $0x6c4] ss:$48 sps:$4 sm:$0xff]   ;;  %v5716_v23 = vld [vmem:[#allocation6 + $0xc0] ss:$48 sps:$4 sm:$0xff]   ;;  %v5756_v57 = vld [vmem:[#allocation6 + $0x128] ss:$48 sps:$4 sm:$0xff]  }
  0x4d   :  { %742 = vmatprep.subr.bf16.mxu1 %v5702_v14  ;;  %v5717_v24 = vld [vmem:[#allocation6 + $0x6c0] ss:$48 sps:$4 sm:$0xff]   ;;  %v5718_v25 = vld [vmem:[#allocation6 + $0x64] ss:$48 sps:$4 sm:$0xff]   ;;  %v5764_v60 = vld [vmem:[#allocation6 + $0xcc] ss:$48 sps:$4 sm:$0xff]  }
  0x4e   :  { %v5720_v26 = vld [vmem:[#allocation6 + $0x664] ss:$48 sps:$4 sm:$0xff]   ;;  %v5722_v27 = vld [vmem:[#allocation6 + $0x60] ss:$48 sps:$4 sm:$0xff]   ;;  %v5762_v61 = vld [vmem:[#allocation6 + $0xc8] ss:$48 sps:$4 sm:$0xff]  }
  0x4f   :  { %700 = vmatpush1.bf16.msra.mxu0 %v5704_v15  ;;  %v5723_v28 = vld [vmem:[#allocation6 + $0x660] ss:$48 sps:$4 sm:$0xff]   ;;  %v5724_v29 = vld [vmem:[#allocation6 + $0x4] ss:$48 sps:$4 sm:$0xff]   ;;  %v5770_v1 = vld [vmem:[#allocation6 + $0x6c] ss:$48 sps:$4 sm:$0xff]  }
  0x50   :  { %743 = vmatpush1.bf16.msra.mxu1 %v5705_v16  ;;  %701 = vmatprep.subr.bf16.mxu0 %v5706_v17  ;;  %v5726_v30 = vld [vmem:[#allocation6 + $0x604] ss:$48 sps:$4 sm:$0xff]   ;;  %v5728_v31 = vld [vmem:[#allocation6] ss:$48 sps:$4 sm:$0xff]   ;;  %v5768_v2 = vld [vmem:[#allocation6 + $0x68] ss:$48 sps:$4 sm:$0xff]  }
  0x51   :  { %744 = vmatprep.subr.bf16.mxu1 %v5708_v18  ;;  %v5729_v32 = vld [vmem:[#allocation6 + $0x600] ss:$48 sps:$4 sm:$0xff]   ;;  %v5730_v35 = vld [vmem:[#allocation6 + $0x5a4] ss:$48 sps:$4 sm:$0xff]   ;;  %v5776_v5 = vld [vmem:[#allocation6 + $0xc] ss:$48 sps:$4 sm:$0xff]  }
  0x52   :  { %v88_v33 = vld [vmem:[#allocation3 + $0x10] sm:$0xff]  ;;  %v90_v51 = vld [vmem:[#allocation3 + $0x20] sm:$0xff]  ;;  %v5774_v6 = vld [vmem:[#allocation6 + $0x8] ss:$48 sps:$4 sm:$0xff]   ;;  %s4947_s4 = sshll.u32 %s6638_s2, 4  ;;  %s4948_s4 = int_to_ptr.vmem [resolvable:$true] %s4947_s4 }
  0x53   :  { %702 = vmatpush1.bf16.msra.mxu0 %v5710_v19  ;;  %v6688_v37 = vpack.c.bf16 %v91_v34, %v88_v33  ;;  %v5735_v39 = vld [vmem:[#allocation6 + $0x5a0] ss:$48 sps:$4 sm:$0xff]   ;;  %v5736_v40 = vld [vmem:[#allocation6 + $0x544] ss:$48 sps:$4 sm:$0xff]   ;;  %v6691_v54 = vpack.c.bf16 %v90_v51, %v87_v50  ;;  %v89_v9 = vld [vmem:[#allocation3 + $0x18] sm:$0xff]  ;;  %s6598_s22 = scalar_lea.vmem %s4948_s4, 768  ;;  %p6603_p12 = scmp.lt.s32.totalorder %s4948_s4, %s4948_s4 }
  0x54   :  { %745 = vmatpush1.bf16.msra.mxu1 %v5711_v20  ;;  %703 = vmatprep.subr.bf16.mxu0 %v5712_v21  ;;  %v5741_v43 = vld [vmem:[#allocation6 + $0x540] ss:$48 sps:$4 sm:$0xff]   ;;  %v5742_v44 = vld [vmem:[#allocation6 + $0x4e4] ss:$48 sps:$4 sm:$0xff]   ;;  %v5780_v10 = vld [vmem:[#allocation6 + $0x5ac] ss:$48 sps:$4 sm:$0xff]   ;;  %p6599_p11 = scmp.ne.s32.totalorder %s4948_s4, %s6598_s22  ;;  %p6604_p13 = scmp.lt.s32.totalorder %s6598_s22, %s6598_s22 }
  0x55   :  { %746 = vmatprep.subr.bf16.mxu1 %v5714_v22  ;;  %v5747_v47 = vld [vmem:[#allocation6 + $0x4e0] ss:$48 sps:$4 sm:$0xff]   ;;  %v5748_v48 = vld [vmem:[#allocation6 + $0x484] ss:$48 sps:$4 sm:$0xff]   ;;  %725 = vmatprep.mubr.bf16.mxu0 %v6691_v54  ;;  %v5783_v11 = vld [vmem:[#allocation6 + $0x8ac] ss:$48 sps:$4 sm:$0xff]  }
  0x56   :  { %v5753_v53 = vld [vmem:[#allocation6 + $0x480] ss:$48 sps:$4 sm:$0xff]   ;;  %v5754_v55 = vld [vmem:[#allocation6 + $0x424] ss:$48 sps:$4 sm:$0xff]   ;;  %v5778_v13 = vld [vmem:[#allocation6 + $0x5a8] ss:$48 sps:$4 sm:$0xff]   ;;  %p6605_p0 = por %p6604_p13, %p6603_p12 }
  0x57   :  { %704 = vmatpush1.bf16.msra.mxu0 %v5716_v23  ;;  %v5759_v58 = vld [vmem:[#allocation6 + $0x420] ss:$48 sps:$4 sm:$0xff]   ;;  %v5760_v59 = vld [vmem:[#allocation6 + $0x3c4] ss:$48 sps:$4 sm:$0xff]   ;;  %v5781_v14 = vld [vmem:[#allocation6 + $0x8a8] ss:$48 sps:$4 sm:$0xff]  }
  0x58   :  { %747 = vmatpush1.bf16.msra.mxu1 %v5717_v24  ;;  %705 = vmatprep.subr.bf16.mxu0 %v5718_v25  ;;  %v5765_v62 = vld [vmem:[#allocation6 + $0x3c0] ss:$48 sps:$4 sm:$0xff]   ;;  %v5766_v63 = vld [vmem:[#allocation6 + $0x364] ss:$48 sps:$4 sm:$0xff]   ;;  %v5786_v15 = vld [vmem:[#allocation6 + $0x54c] ss:$48 sps:$4 sm:$0xff]   ;;  %p6606_p1 = pnand %p6605_p0, %p6599_p11 }
  0x59   :  { %748 = vmatprep.subr.bf16.mxu1 %v5720_v26  ;;  %v5771_v3 = vld [vmem:[#allocation6 + $0x360] ss:$48 sps:$4 sm:$0xff]   ;;  %v5772_v4 = vld [vmem:[#allocation6 + $0x304] ss:$48 sps:$4 sm:$0xff]   ;;  %v5789_v16 = vld [vmem:[#allocation6 + $0x84c] ss:$48 sps:$4 sm:$0xff]  }
  0x5a   :  { %v5777_v7 = vld [vmem:[#allocation6 + $0x300] ss:$48 sps:$4 sm:$0xff]   ;;  %v5784_v17 = vld [vmem:[#allocation6 + $0x548] ss:$48 sps:$4 sm:$0xff]   ;;  %v5792_v19 = vld [vmem:[#allocation6 + $0x4ec] ss:$48 sps:$4 sm:$0xff]  }
  0x5b   :  { %706 = vmatpush1.bf16.msra.mxu0 %v5722_v27  ;;  %v86_v8 = vld [vmem:[#allocation3] sm:$0xff]  ;;  %v5787_v18 = vld [vmem:[#allocation6 + $0x848] ss:$48 sps:$4 sm:$0xff]   ;;  %v5795_v20 = vld [vmem:[#allocation6 + $0x7ec] ss:$48 sps:$4 sm:$0xff]  }
  0x5c   :  { %749 = vmatpush1.bf16.msra.mxu1 %v5723_v28  ;;  %707 = vmatprep.subr.bf16.mxu0 %v5724_v29  ;;  %v6695_v12 = vpack.c.bf16 %v89_v9, %v86_v8  ;;  %v5790_v21 = vld [vmem:[#allocation6 + $0x4e8] ss:$48 sps:$4 sm:$0xff]   ;;  %v5798_v23 = vld [vmem:[#allocation6 + $0x48c] ss:$48 sps:$4 sm:$0xff]   ;;  %v5853_v51 = vld [vmem:[#allocation9 + $0x228] ss:$12 sps:$4 sm:$0xff]  }
  0x5d   :  { %750 = vmatprep.subr.bf16.mxu1 %v5726_v30  ;;  %v5793_v22 = vld [vmem:[#allocation6 + $0x7e8] ss:$48 sps:$4 sm:$0xff]   ;;  %v5801_v24 = vld [vmem:[#allocation6 + $0x78c] ss:$48 sps:$4 sm:$0xff]   ;;  %v5850_v9 = vld [vmem:[#allocation9 + $0x168] ss:$12 sps:$4 sm:$0xff]  }
  0x5e   :  { %v5796_v25 = vld [vmem:[#allocation6 + $0x488] ss:$48 sps:$4 sm:$0xff]   ;;  %v5804_v27 = vld [vmem:[#allocation6 + $0x42c] ss:$48 sps:$4 sm:$0xff]  }
  0x5f   :  { %708 = vmatpush1.bf16.msra.mxu0 %v5728_v31  ;;  %v5799_v26 = vld [vmem:[#allocation6 + $0x788] ss:$48 sps:$4 sm:$0xff]   ;;  %v5807_v28 = vld [vmem:[#allocation6 + $0x72c] ss:$48 sps:$4 sm:$0xff]  }
  0x60   :  { %751 = vmatpush1.bf16.msra.mxu1 %v5729_v32  ;;  %709 = vmatprep.subr.bf16.mxu0 %v5730_v35  ;;  %v5802_v29 = vld [vmem:[#allocation6 + $0x428] ss:$48 sps:$4 sm:$0xff]   ;;  %v5810_v31 = vld [vmem:[#allocation6 + $0x3cc] ss:$48 sps:$4 sm:$0xff]  }
  0x61   :  { %779 = vmatprep.subr.bf16.mxu1 %v5734_v36  ;;  %v5805_v30 = vld [vmem:[#allocation6 + $0x728] ss:$48 sps:$4 sm:$0xff]   ;;  %v5813_v32 = vld [vmem:[#allocation6 + $0x6cc] ss:$48 sps:$4 sm:$0xff]  }
  0x62   :  { %v5808_v33 = vld [vmem:[#allocation6 + $0x3c8] ss:$48 sps:$4 sm:$0xff]   ;;  %v5816_v35 = vld [vmem:[#allocation6 + $0x36c] ss:$48 sps:$4 sm:$0xff]  }
  0x63   :  { %769 = vmatmul.mubr.bf16.vlgmr.msra.gmra.mxu1 %v6688_v37  ;;  %710 = vmatpush2.bf16.msra.mxu0 %v5735_v39  ;;  %v5811_v34 = vld [vmem:[#allocation6 + $0x6c8] ss:$48 sps:$4 sm:$0xff]   ;;  %v5819_v36 = vld [vmem:[#allocation6 + $0x66c] ss:$48 sps:$4 sm:$0xff]  }
  0x64   :  { %780 = vmatpush1.bf16.msra.mxu1 %v5732_v38  ;;  %711 = vmatprep.subr.bf16.mxu0 %v5736_v40  ;;  %v5814_v38 = vld [vmem:[#allocation6 + $0x368] ss:$48 sps:$4 sm:$0xff]   ;;  %v5822_v40 = vld [vmem:[#allocation6 + $0x30c] ss:$48 sps:$4 sm:$0xff]  }
  0x65   :  { %781 = vmatprep.subr.bf16.mxu1 %v5740_v41  ;;  %811 = vmatprep.mubr.bf16.mxu1 %v6691_v54  ;;  %v5817_v39 = vld [vmem:[#allocation6 + $0x668] ss:$48 sps:$4 sm:$0xff]   ;;  %v5825_v41 = vld [vmem:[#allocation6 + $0x60c] ss:$48 sps:$4 sm:$0xff]  }
  0x66   :  { %v5837_v50 = vld [vmem:[#allocation9 + $0x64] ss:$12 sps:$4 sm:$0xff]   ;;  %v5852_v8 = vld [vmem:[#allocation9 + $0x16c] ss:$12 sps:$4 sm:$0xff]  }
  0x67   :  { %712 = vmatpush2.bf16.msra.mxu0 %v5741_v43  ;;  %v5823_v43 = vld [vmem:[#allocation6 + $0x608] ss:$48 sps:$4 sm:$0xff]  }
  0x68   :  { %782 = vmatpush1.bf16.msra.mxu1 %v5738_v42  ;;  %713 = vmatprep.subr.bf16.mxu0 %v5742_v44  ;;  %v5820_v42 = vld [vmem:[#allocation6 + $0x308] ss:$48 sps:$4 sm:$0xff]  }
  0x69   :  { %783 = vmatprep.subr.bf16.mxu1 %v5746_v45  ;;  %v5828_v44 = vld [vmem:[#allocation9 + $0xac] ss:$12 sps:$4 sm:$0xff]   ;;  %v5826_v45 = vld [vmem:[#allocation9 + $0xa8] ss:$12 sps:$4 sm:$0xff]  }
  0x6b   :  { %714 = vmatpush2.bf16.msra.mxu0 %v5747_v47  ;;  %v5829_v47 = vld [vmem:[#allocation9 + $0x90] ss:$12 sps:$4 sm:$0xff]  }
  0x6c   :  { %784 = vmatpush1.bf16.msra.mxu1 %v5744_v46  ;;  %715 = vmatprep.subr.bf16.mxu0 %v5748_v48  ;;  %v5831_v46 = vld [vmem:[#allocation9 + $0x94] ss:$12 sps:$4 sm:$0xff]   ;;  %v5834_v48 = vld [vmem:[#allocation9 + $0x7c] ss:$12 sps:$4 sm:$0xff]  }
  0x6d   :  { %785 = vmatprep.subr.bf16.mxu1 %v5752_v49  ;;  %v5832_v49 = vld [vmem:[#allocation9 + $0x78] ss:$12 sps:$4 sm:$0xff]  }
  0x6f   :  { %716 = vmatpush2.bf16.msra.mxu0 %v5753_v53  ;;  %v5835_v53 = vld [vmem:[#allocation9 + $0x60] ss:$12 sps:$4 sm:$0xff]  }
  0x70   :  { %786 = vmatpush1.bf16.msra.mxu1 %v5750_v52  ;;  %717 = vmatprep.subr.bf16.mxu0 %v5754_v55  ;;  %v5855_v52 = vld [vmem:[#allocation9 + $0x22c] ss:$12 sps:$4 sm:$0xff]   ;;  %v5861_v55 = vld [vmem:[#allocation9 + $0x214] ss:$12 sps:$4 sm:$0xff]  }
  0x71   :  { %787 = vmatprep.subr.bf16.mxu1 %v5758_v56  ;;  %v5840_v56 = vld [vmem:[#allocation9 + $0x4c] ss:$12 sps:$4 sm:$0xff]  }
  0x73   :  { %718 = vmatpush2.bf16.msra.mxu0 %v5759_v58  ;;  %v5867_v58 = vld [vmem:[#allocation9 + $0x1fc] ss:$12 sps:$4 sm:$0xff]  }
  0x74   :  { %788 = vmatpush1.bf16.msra.mxu1 %v5756_v57  ;;  %719 = vmatprep.subr.bf16.mxu0 %v5760_v59  ;;  %v5859_v57 = vld [vmem:[#allocation9 + $0x210] ss:$12 sps:$4 sm:$0xff]   ;;  %v5838_v59 = vld [vmem:[#allocation9 + $0x48] ss:$12 sps:$4 sm:$0xff]  }
  0x75   :  { %789 = vmatprep.subr.bf16.mxu1 %v5764_v60  ;;  %v5843_v60 = vld [vmem:[#allocation9 + $0x34] ss:$12 sps:$4 sm:$0xff]  }
  0x77   :  { %720 = vmatpush2.bf16.msra.mxu0 %v5765_v62  ;;  %v5873_v62 = vld [vmem:[#allocation9 + $0x1e4] ss:$12 sps:$4 sm:$0xff]  }
  0x78   :  { %790 = vmatpush1.bf16.msra.mxu1 %v5762_v61  ;;  %721 = vmatprep.subr.bf16.mxu0 %v5766_v63  ;;  %v5865_v61 = vld [vmem:[#allocation9 + $0x1f8] ss:$12 sps:$4 sm:$0xff]   ;;  %v5841_v63 = vld [vmem:[#allocation9 + $0x30] ss:$12 sps:$4 sm:$0xff]  }
  0x79   :  { %791 = vmatprep.subr.bf16.mxu1 %v5770_v1  ;;  %v5846_v1 = vld [vmem:[#allocation9 + $0x1c] ss:$12 sps:$4 sm:$0xff]  }
  0x7b   :  { %722 = vmatpush2.bf16.msra.mxu0 %v5771_v3  ;;  %v5879_v3 = vld [vmem:[#allocation9 + $0x1cc] ss:$12 sps:$4 sm:$0xff]  }
  0x7c   :  { %792 = vmatpush1.bf16.msra.mxu1 %v5768_v2  ;;  %723 = vmatprep.subr.bf16.mxu0 %v5772_v4  ;;  %v5871_v2 = vld [vmem:[#allocation9 + $0x1e0] ss:$12 sps:$4 sm:$0xff]   ;;  %v5844_v4 = vld [vmem:[#allocation9 + $0x18] ss:$12 sps:$4 sm:$0xff]  }
  0x7d   :  { %793 = vmatprep.subr.bf16.mxu1 %v5776_v5  ;;  %v5849_v5 = vld [vmem:[#allocation9 + $0x4] ss:$12 sps:$4 sm:$0xff]  }
  0x7f   :  { %724 = vmatpush2.bf16.msra.mxu0 %v5777_v7  ;;  %v5847_v7 = vld [vmem:[#allocation9] ss:$12 sps:$4 sm:$0xff]  }
  0x80   :  { %794 = vmatpush1.bf16.msra.mxu1 %v5774_v6  ;;  %822 = vmatprep.subr.bf16.mxu0 %v5783_v11  ;;  %v5877_v6 = vld [vmem:[#allocation9 + $0x1c8] ss:$12 sps:$4 sm:$0xff]   ;;  %v5856_v11 = vld [vmem:[#allocation9 + $0x150] ss:$12 sps:$4 sm:$0xff]  }
  0x81   :  { %795 = vmatprep.subr.bf16.mxu1 %v5780_v10  ;;  %v5858_v10 = vld [vmem:[#allocation9 + $0x154] ss:$12 sps:$4 sm:$0xff]  }
  0x82   :  { %726 = vmatmul.mubr.bf16.vlgmr.msra.gmra.mxu0 %v6695_v12 }
  0x83   :  { %823 = vmatpush1.bf16.msra.mxu0 %v5781_v14  ;;  %854 = vmatprep.mubr.bf16.mxu0 %v6637_v0  ;;  %v5864_v14 = vld [vmem:[#allocation9 + $0x13c] ss:$12 sps:$4 sm:$0xff]  }
  0x84   :  { %796 = vmatpush2.bf16.msra.mxu1 %v5778_v13  ;;  %824 = vmatprep.subr.bf16.mxu0 %v5789_v16  ;;  %v5885_v13 = vld [vmem:[#allocation9 + $0x1b4] ss:$12 sps:$4 sm:$0xff]   ;;  %v5862_v16 = vld [vmem:[#allocation9 + $0x138] ss:$12 sps:$4 sm:$0xff]  }
  0x85   :  { %797 = vmatprep.subr.bf16.mxu1 %v5786_v15  ;;  %v5883_v15 = vld [vmem:[#allocation9 + $0x1b0] ss:$12 sps:$4 sm:$0xff]  }
  0x87   :  { %825 = vmatpush1.bf16.msra.mxu0 %v5787_v18  ;;  %v5870_v18 = vld [vmem:[#allocation9 + $0x124] ss:$12 sps:$4 sm:$0xff]  }
  0x88   :  { %798 = vmatpush2.bf16.msra.mxu1 %v5784_v17  ;;  %826 = vmatprep.subr.bf16.mxu0 %v5795_v20  ;;  %v5891_v17 = vld [vmem:[#allocation9 + $0x19c] ss:$12 sps:$4 sm:$0xff]   ;;  %v5868_v20 = vld [vmem:[#allocation9 + $0x120] ss:$12 sps:$4 sm:$0xff]  }
  0x89   :  { %799 = vmatprep.subr.bf16.mxu1 %v5792_v19  ;;  %v5889_v19 = vld [vmem:[#allocation9 + $0x198] ss:$12 sps:$4 sm:$0xff]  }
  0x8b   :  { %827 = vmatpush1.bf16.msra.mxu0 %v5793_v22  ;;  %v5876_v22 = vld [vmem:[#allocation9 + $0x10c] ss:$12 sps:$4 sm:$0xff]  }
  0x8c   :  { %800 = vmatpush2.bf16.msra.mxu1 %v5790_v21  ;;  %828 = vmatprep.subr.bf16.mxu0 %v5801_v24  ;;  %v5897_v21 = vld [vmem:[#allocation9 + $0x184] ss:$12 sps:$4 sm:$0xff]   ;;  %v5874_v24 = vld [vmem:[#allocation9 + $0x108] ss:$12 sps:$4 sm:$0xff]  }
  0x8d   :  { %801 = vmatprep.subr.bf16.mxu1 %v5798_v23  ;;  %v5895_v23 = vld [vmem:[#allocation9 + $0x180] ss:$12 sps:$4 sm:$0xff]  }
  0x8f   :  { %829 = vmatpush1.bf16.msra.mxu0 %v5799_v26  ;;  %v5882_v26 = vld [vmem:[#allocation9 + $0xf4] ss:$12 sps:$4 sm:$0xff]  }
  0x90   :  { %802 = vmatpush2.bf16.msra.mxu1 %v5796_v25  ;;  %830 = vmatprep.subr.bf16.mxu0 %v5807_v28  ;;  %v5900_v25 = vld [vmem:[#allocation9 + $0x2ec] ss:$12 sps:$4 sm:$0xff]   ;;  %v5880_v28 = vld [vmem:[#allocation9 + $0xf0] ss:$12 sps:$4 sm:$0xff]  }
  0x91   :  { %803 = vmatprep.subr.bf16.mxu1 %v5804_v27  ;;  %v5898_v27 = vld [vmem:[#allocation9 + $0x2e8] ss:$12 sps:$4 sm:$0xff]  }
  0x93   :  { %831 = vmatpush1.bf16.msra.mxu0 %v5805_v30  ;;  %v5905_v30 = vld [vmem:[#allocation9 + $0x2d4] ss:$12 sps:$4 sm:$0xff]  }
  0x94   :  { %804 = vmatpush2.bf16.msra.mxu1 %v5802_v29  ;;  %832 = vmatprep.subr.bf16.mxu0 %v5813_v32  ;;  %v5903_v29 = vld [vmem:[#allocation9 + $0x2d0] ss:$12 sps:$4 sm:$0xff]   ;;  %v5886_v32 = vld [vmem:[#allocation9 + $0xd8] ss:$12 sps:$4 sm:$0xff]  }
  0x95   :  { %805 = vmatprep.subr.bf16.mxu1 %v5810_v31  ;;  %v5888_v31 = vld [vmem:[#allocation9 + $0xdc] ss:$12 sps:$4 sm:$0xff]  }
  0x97   :  { %833 = vmatpush1.bf16.msra.mxu0 %v5811_v34  ;;  %v5910_v34 = vld [vmem:[#allocation9 + $0x2bc] ss:$12 sps:$4 sm:$0xff]  }
  0x98   :  { %806 = vmatpush2.bf16.msra.mxu1 %v5808_v33  ;;  %834 = vmatprep.subr.bf16.mxu0 %v5819_v36  ;;  %v5908_v33 = vld [vmem:[#allocation9 + $0x2b8] ss:$12 sps:$4 sm:$0xff]   ;;  %v5892_v36 = vld [vmem:[#allocation9 + $0xc0] ss:$12 sps:$4 sm:$0xff]  }
  0x99   :  { %807 = vmatprep.subr.bf16.mxu1 %v5816_v35  ;;  %v5894_v35 = vld [vmem:[#allocation9 + $0xc4] ss:$12 sps:$4 sm:$0xff]  }
  0x9b   :  { %835 = vmatpush1.bf16.msra.mxu0 %v5817_v39  ;;  %v5915_v39 = vld [vmem:[#allocation9 + $0x2a4] ss:$12 sps:$4 sm:$0xff]  }
  0x9c   :  { %808 = vmatpush2.bf16.msra.mxu1 %v5814_v38  ;;  %836 = vmatprep.subr.bf16.mxu0 %v5825_v41  ;;  %v5913_v38 = vld [vmem:[#allocation9 + $0x2a0] ss:$12 sps:$4 sm:$0xff]   ;;  %v5918_v41 = vld [vmem:[#allocation9 + $0x288] ss:$12 sps:$4 sm:$0xff]  }
  0x9d   :  { %809 = vmatprep.subr.bf16.mxu1 %v5822_v40  ;;  %v5901_v40 = vld [vmem:[#allocation9 + $0x170] ss:$12 sps:$4 sm:$0xff]  }
  0x9f   :  { %837 = vmatpush1.bf16.msra.mxu0 %v5823_v43  ;;  %v5925_v43 = vld [vmem:[#allocation9 + $0x274] ss:$12 sps:$4 sm:$0xff]  }
  0xa0   :  { %810 = vmatpush2.bf16.msra.mxu1 %v5820_v42  ;;  %1517 = vmatprep.subr.bf16.mxu0 %v5828_v44  ;;  %v5920_v42 = vld [vmem:[#allocation9 + $0x28c] ss:$12 sps:$4 sm:$0xff]   ;;  %v5923_v44 = vld [vmem:[#allocation9 + $0x270] ss:$12 sps:$4 sm:$0xff]  }
  0xa1   :  { %1560 = vmatprep.subr.bf16.mxu1 %v5855_v52 }
  0xa2   :  { %855 = vmatmul.mubr.bf16.vlgmr.msra.gmra.mxu0 %v6688_v37 }
  0xa3   :  { %812 = vmatmul.mubr.bf16.vlgmr.msra.gmra.mxu1 %v6695_v12  ;;  %1518 = vmatpush1.bf16.msra.mxu0 %v5826_v45  ;;  %v5930_v45 = vld [vmem:[#allocation9 + $0x25c] ss:$12 sps:$4 sm:$0xff]  }
  0xa4   :  { %1519 = vmatprep.subr.bf16.mxu0 %v5831_v46  ;;  %1561 = vmatpush1.bf16.msra.mxu1 %v5853_v51  ;;  %v5928_v46 = vld [vmem:[#allocation9 + $0x258] ss:$12 sps:$4 sm:$0xff]  }
  0xa5   :  { %1562 = vmatprep.subr.bf16.mxu1 %v5861_v55 }
  0xa7   :  { %1520 = vmatpush1.bf16.msra.mxu0 %v5829_v47  ;;  %v5935_v47 = vld [vmem:[#allocation9 + $0x244] ss:$12 sps:$4 sm:$0xff]  }
  0xa8   :  { %1521 = vmatprep.subr.bf16.mxu0 %v5834_v48  ;;  %1563 = vmatpush1.bf16.msra.mxu1 %v5859_v57  ;;  %v5933_v48 = vld [vmem:[#allocation9 + $0x240] ss:$12 sps:$4 sm:$0xff]  }
  0xa9   :  { %1564 = vmatprep.subr.bf16.mxu1 %v5867_v58 }
  0xab   :  { %1522 = vmatpush1.bf16.msra.mxu0 %v5832_v49  ;;  %v5938_v49 = vld [vmem:[#allocation9 + $0x2f0] ss:$12 sps:$4 sm:$0xff]  }
  0xac   :  { %1523 = vmatprep.subr.bf16.mxu0 %v5837_v50  ;;  %1565 = vmatpush1.bf16.msra.mxu1 %v5865_v61  ;;  %v193_v50 = vlaneseq }
  0xad   :  { %1566 = vmatprep.subr.bf16.mxu1 %v5873_v62 }
  0xae   :  { %v194_v51 = vshrl.u32 %v193_v50, 7  ;;  %v5937_v50 = vld [vmem:[#allocation9 + $0x8] ss:$12 sps:$4 sm:$0xff]  }
  0xaf   :  { %1524 = vmatpush1.bf16.msra.mxu0 %v5835_v53 }
  0xb0   :  { %1525 = vmatprep.subr.bf16.mxu0 %v5840_v56  ;;  %1567 = vmatpush1.bf16.msra.mxu1 %v5871_v2  ;;  %v6701_v52 = vsub.s32 1, %v194_v51  ;;  %v6703_v55 = vsub.s32 0, %v194_v51  ;;  %v191_v56 = vld [vmem:[#allocation8] sm:$0xf] }
  0xb1   :  { %1568 = vmatprep.subr.bf16.mxu1 %v5879_v3 }
  0xb2   :  { %v200_v57 = vrot.slane %v191_v56, %v6701_v52 }
  0xb3   :  { %1526 = vmatpush1.bf16.msra.mxu0 %v5838_v59  ;;  %v196_v59 = vrot.slane %v191_v56, %v6703_v55 }
  0xb4   :  { %1527 = vmatprep.subr.bf16.mxu0 %v5843_v60  ;;  %1569 = vmatpush1.bf16.msra.mxu1 %v5877_v6 }
  0xb5   :  { %1570 = vmatprep.subr.bf16.mxu1 %v5885_v13 }
  0xb7   :  { %1528 = vmatpush1.bf16.msra.mxu0 %v5841_v63 }
  0xb8   :  { %1529 = vmatprep.subr.bf16.mxu0 %v5846_v1  ;;  %1571 = vmatpush1.bf16.msra.mxu1 %v5883_v15 }
  0xb9   :  { %1572 = vmatprep.subr.bf16.mxu1 %v5891_v17  ;;  %v5902_v17 = vld [vmem:[#allocation9 + $0xb0] ss:$12 sps:$4 sm:$0xff]  }
  0xbb   :  { %1530 = vmatpush1.bf16.msra.mxu0 %v5844_v4 }
  0xbc   :  { %1531 = vmatprep.subr.bf16.mxu0 %v5849_v5  ;;  %1573 = vmatpush1.bf16.msra.mxu1 %v5889_v19  ;;  %v5906_v19 = vld [vmem:[#allocation9 + $0x158] ss:$12 sps:$4 sm:$0xff]  }
  0xbd   :  { %1574 = vmatprep.subr.bf16.mxu1 %v5897_v21  ;;  %v5911_v21 = vld [vmem:[#allocation9 + $0x140] ss:$12 sps:$4 sm:$0xff]  }
  0xbf   :  { %1532 = vmatpush1.bf16.msra.mxu0 %v5847_v7 }
  0xc0   :  { %1533 = vmatprep.subr.bf16.mxu0 %v5852_v8  ;;  %1575 = vmatpush1.bf16.msra.mxu1 %v5895_v23  ;;  %v5916_v23 = vld [vmem:[#allocation9 + $0x128] ss:$12 sps:$4 sm:$0xff]  }
  0xc1   :  { %1576 = vmatprep.subr.bf16.mxu1 %v5900_v25  ;;  %v5921_v25 = vld [vmem:[#allocation9 + $0x110] ss:$12 sps:$4 sm:$0xff]  }
  0xc3   :  { %1534 = vmatpush2.bf16.msra.mxu0 %v5850_v9 }
  0xc4   :  { %1535 = vmatprep.subr.bf16.mxu0 %v5858_v10  ;;  %1577 = vmatpush2.bf16.msra.mxu1 %v5898_v27  ;;  %v6712_v27 = vsub.s32 2, %v194_v51 }
  0xc5   :  { %1578 = vmatprep.subr.bf16.mxu1 %v5905_v30 }
  0xc7   :  { %1536 = vmatpush2.bf16.msra.mxu0 %v5856_v11 }
  0xc8   :  { %1537 = vmatprep.subr.bf16.mxu0 %v5864_v14  ;;  %1579 = vmatpush2.bf16.msra.mxu1 %v5903_v29  ;;  %v5926_v29 = vld [vmem:[#allocation9 + $0xf8] ss:$12 sps:$4 sm:$0xff]  }
  0xc9   :  { %1580 = vmatprep.subr.bf16.mxu1 %v5910_v34  ;;  %v5927_v34 = vld [vmem:[#allocation9 + $0x38] ss:$12 sps:$4 sm:$0xff]  }
  0xcb   :  { %1538 = vmatpush2.bf16.msra.mxu0 %v5862_v16 }
  0xcc   :  { %1539 = vmatprep.subr.bf16.mxu0 %v5870_v18  ;;  %1581 = vmatpush2.bf16.msra.mxu1 %v5908_v33 }
  0xcd   :  { %1582 = vmatprep.subr.bf16.mxu1 %v5915_v39 }
  0xcf   :  { %1540 = vmatpush2.bf16.msra.mxu0 %v5868_v20  ;;  %v5907_v20 = vld [vmem:[#allocation9 + $0x98] ss:$12 sps:$4 sm:$0xff]  }
  0xd0   :  { %1541 = vmatprep.subr.bf16.mxu0 %v5876_v22  ;;  %1583 = vmatpush2.bf16.msra.mxu1 %v5913_v38  ;;  %v5912_v22 = vld [vmem:[#allocation9 + $0x80] ss:$12 sps:$4 sm:$0xff]  }
  0xd1   :  { %1584 = vmatprep.subr.bf16.mxu1 %v5920_v42  ;;  %v5931_v38 = vld [vmem:[#allocation9 + $0xe0] ss:$12 sps:$4 sm:$0xff]  }
  0xd3   :  { %1542 = vmatpush2.bf16.msra.mxu0 %v5874_v24  ;;  %v5917_v24 = vld [vmem:[#allocation9 + $0x68] ss:$12 sps:$4 sm:$0xff]  }
  0xd4   :  { %1543 = vmatprep.subr.bf16.mxu0 %v5882_v26  ;;  %1585 = vmatpush2.bf16.msra.mxu1 %v5918_v41  ;;  %v6710_v26 = vsub.s32 3, %v194_v51 }
  0xd5   :  { %1586 = vmatprep.subr.bf16.mxu1 %v5925_v43 }
  0xd6   :  { %v208_v30 = vrot.slane %v191_v56, %v6710_v26 }
  0xd7   :  { %1544 = vmatpush2.bf16.msra.mxu0 %v5880_v28  ;;  %v5922_v28 = vld [vmem:[#allocation9 + $0x50] ss:$12 sps:$4 sm:$0xff]  }
  0xd8   :  { %1545 = vmatprep.subr.bf16.mxu0 %v5888_v31  ;;  %1587 = vmatpush2.bf16.msra.mxu1 %v5923_v44  ;;  %v204_v31 = vrot.slane %v191_v56, %v6712_v27 }
  0xd9   :  { %1588 = vmatprep.subr.bf16.mxu1 %v5930_v45  ;;  %v5932_v45 = vld [vmem:[#allocation9 + $0x20] ss:$12 sps:$4 sm:$0xff]  }
  0xdb   :  { %1546 = vmatpush2.bf16.msra.mxu0 %v5886_v32 }
  0xdc   :  { %1547 = vmatprep.subr.bf16.mxu0 %v5894_v35  ;;  %1589 = vmatpush2.bf16.msra.mxu1 %v5928_v46 }
  0xdd   :  { %1590 = vmatprep.subr.bf16.mxu1 %v5935_v47  ;;  %v5936_v47 = vld [vmem:[#allocation9 + $0xc8] ss:$12 sps:$4 sm:$0xff]  }
  0xdf   :  { %1548 = vmatpush2.bf16.msra.mxu0 %v5892_v36 }
  0xe0   :  { %5537 = vmatprep.subr.bf16.mxu0 %v5901_v40  ;;  %1591 = vmatpush2.bf16.msra.mxu1 %v5933_v48 }
  0xe1   :  { %5559 = vmatprep.subr.bf16.mxu1 %v5938_v49 }
 0x123   :  { %v770_v53 = vpop.f32.mrf.mxu1 }
 0x125   :  { %v772_v58 = vpop.f32.mrf.mxu1 }
 0x127   :  { %v774_v63 = vpop.f32.mrf.mxu1 }
 0x129   :  { %v776_v8 = vpop.f32.mrf.mxu1 }
 0x142   :  { %v727_v60 = vpop.f32.mrf.mxu0 }
 0x143   :  { %v728_v1 = vadd.f32 %v727_v60, %v196_v59 }
 0x144   :  { %v729_v61 = vpop.f32.mrf.mxu0 }
 0x145   :  { %v730_v62 = vadd.f32 %v729_v61, %v200_v57  ;;  %v771_v9 = vadd.f32 %v770_v53, %v728_v1  ;;  %v5939_v61 = vld [vmem:[#allocation6 + $0x2b0] ss:$48 sps:$4 sm:$0xff]  }
 0x146   :  { %v731_v2 = vpop.f32.mrf.mxu0  ;;  %v5943_v1 = vld [vmem:[#allocation9 + $0x2d8] ss:$12 sps:$4 sm:$0xff]  }
 0x147   :  { %v732_v3 = vadd.f32 %v731_v2, %v196_v59  ;;  %v773_v5 = vadd.f32 %v772_v58, %v730_v62  ;;  %v865_v15 = vmax.f32 %v771_v9, 0.0  ;;  %v5941_v59 = vld [vmem:[#allocation6 + $0x2b4] ss:$48 sps:$4 sm:$0xff]   ;;  %v5942_v62 = vld [vmem:[#allocation9 + $0x230] ss:$12 sps:$4 sm:$0xff]  }
 0x148   :  { %v733_v4 = vpop.f32.mrf.mxu0  ;;  %v5949_v9 = vld [vmem:[#allocation6 + $0x1f0] ss:$48 sps:$4 sm:$0xff]  }
 0x149   :  { %v775_v6 = vadd.f32 %v774_v63, %v732_v3  ;;  %v734_v7 = vadd.f32 %v733_v4, %v200_v57  ;;  %v866_v13 = vmax.f32 %v773_v5, 0.0  ;;  %v5946_v3 = vld [vmem:[#allocation6 + $0x254] ss:$48 sps:$4 sm:$0xff]   ;;  %v5944_v5 = vld [vmem:[#allocation6 + $0x250] ss:$48 sps:$4 sm:$0xff]  }
 0x14b   :  { %v777_v10 = vadd.f32 %v776_v8, %v734_v7  ;;  %v869_v11 = vmax.f32 %v775_v6, 0.0  ;;  %v5947_v6 = vld [vmem:[#allocation9 + $0x218] ss:$12 sps:$4 sm:$0xff]   ;;  %v5948_v7 = vld [vmem:[#allocation9 + $0x2c0] ss:$12 sps:$4 sm:$0xff]  }
 0x14c   :  { %v5951_v8 = vld [vmem:[#allocation6 + $0x1f4] ss:$48 sps:$4 sm:$0xff]  }
 0x14d   :  { %v870_v14 = vmax.f32 %v777_v10, 0.0  ;;  %v6707_v18 = vpack.c.bf16 %v869_v11, %v865_v15  ;;  %v5952_v10 = vld [vmem:[#allocation9 + $0x200] ss:$12 sps:$4 sm:$0xff]   ;;  %v5953_v11 = vld [vmem:[#allocation9 + $0x2a8] ss:$12 sps:$4 sm:$0xff]  }
 0x14e   :  { %v5957_v15 = vld [vmem:[#allocation9 + $0x1e8] ss:$12 sps:$4 sm:$0xff]  }
 0x14f   :  { %v874_v16 = vpack.c.bf16 %v870_v14, %v866_v13  ;;  %v5956_v13 = vld [vmem:[#allocation6 + $0x194] ss:$48 sps:$4 sm:$0xff]   ;;  %v5954_v14 = vld [vmem:[#allocation6 + $0x190] ss:$48 sps:$4 sm:$0xff]  }
 0x151   :  { %1549 = vmatprep.mubr.bf16.mxu0 %v874_v16 }
 0x152   :  { %1550 = vmatmul.mubr.bf16.vlgmr.msra.gmra.mxu0 %v6707_v18 }
 0x153   :  { %5538 = vmatpush3.bf16.msra.mxu0 %v5902_v17  ;;  %1635 = vmatprep.mubr.bf16.mxu0 %v874_v16  ;;  %v5958_v16 = vld [vmem:[#allocation9 + $0x290] ss:$12 sps:$4 sm:$0xff]   ;;  %v5961_v17 = vld [vmem:[#allocation6 + $0x134] ss:$48 sps:$4 sm:$0xff]  }
 0x154   :  { %5539 = vmatprep.subr.bf16.mxu0 %v5906_v19  ;;  %v5962_v19 = vld [vmem:[#allocation9 + $0x1d0] ss:$12 sps:$4 sm:$0xff]  }
 0x157   :  { %5540 = vmatpush3.bf16.msra.mxu0 %v5907_v20  ;;  %v5963_v20 = vld [vmem:[#allocation9 + $0x278] ss:$12 sps:$4 sm:$0xff]  }
 0x158   :  { %5541 = vmatprep.subr.bf16.mxu0 %v5911_v21  ;;  %v5966_v21 = vld [vmem:[#allocation6 + $0xd4] ss:$48 sps:$4 sm:$0xff]  }
 0x15b   :  { %5542 = vmatpush3.bf16.msra.mxu0 %v5912_v22  ;;  %v5964_v22 = vld [vmem:[#allocation6 + $0xd0] ss:$48 sps:$4 sm:$0xff]  }
 0x15c   :  { %5543 = vmatprep.subr.bf16.mxu0 %v5916_v23  ;;  %v5967_v23 = vld [vmem:[#allocation9 + $0x1b8] ss:$12 sps:$4 sm:$0xff]  }
 0x15f   :  { %5544 = vmatpush3.bf16.msra.mxu0 %v5917_v24  ;;  %v5968_v24 = vld [vmem:[#allocation9 + $0x260] ss:$12 sps:$4 sm:$0xff]  }
 0x160   :  { %5545 = vmatprep.subr.bf16.mxu0 %v5921_v25  ;;  %v5971_v25 = vld [vmem:[#allocation6 + $0x74] ss:$48 sps:$4 sm:$0xff]  }
 0x162   :  { %v856_v33 = vpop.f32.mrf.mxu0 }
 0x163   :  { %v813_v32 = vpop.f32.mrf.mxu1  ;;  %5546 = vmatpush3.bf16.msra.mxu0 %v5922_v28  ;;  %v5969_v28 = vld [vmem:[#allocation6 + $0x70] ss:$48 sps:$4 sm:$0xff]  }
 0x164   :  { %v858_v36 = vpop.f32.mrf.mxu0  ;;  %5547 = vmatprep.subr.bf16.mxu0 %v5926_v29  ;;  %v814_v40 = vadd.f32 %v813_v32, %v204_v31  ;;  %v5972_v29 = vld [vmem:[#allocation9 + $0x1a0] ss:$12 sps:$4 sm:$0xff]   ;;  %v5974_v32 = vld [vmem:[#allocation6 + $0x10] ss:$48 sps:$4 sm:$0xff]  }
 0x165   :  { %v815_v35 = vpop.f32.mrf.mxu1 }
 0x166   :  { %v816_v39 = vadd.f32 %v815_v35, %v208_v30  ;;  %v860_v42 = vpop.f32.mrf.mxu0  ;;  %v857_v51 = vadd.f32 %v856_v33, %v814_v40  ;;  %v5977_v33 = vld [vmem:[#allocation9 + $0x188] ss:$12 sps:$4 sm:$0xff]  }
 0x167   :  { %v817_v41 = vpop.f32.mrf.mxu1  ;;  %5548 = vmatpush3.bf16.msra.mxu0 %v5927_v34  ;;  %v5980_v34 = vld [vmem:[#allocation6 + $0x5b4] ss:$48 sps:$4 sm:$0xff]  }
 0x168   :  { %v859_v43 = vadd.f32 %v858_v36, %v816_v39  ;;  %v818_v44 = vadd.f32 %v817_v41, %v204_v31  ;;  %5549 = vmatprep.subr.bf16.mxu0 %v5931_v38  ;;  %v862_v53 = vpop.f32.mrf.mxu0  ;;  %v867_v63 = vmax.f32 %v857_v51, 0.0  ;;  %v5976_v31 = vld [vmem:[#allocation6 + $0x14] ss:$48 sps:$4 sm:$0xff]   ;;  %v5978_v36 = vld [vmem:[#allocation6 + $0x5b0] ss:$48 sps:$4 sm:$0xff]  }
 0x169   :  { %v819_v46 = vpop.f32.mrf.mxu1  ;;  %v5983_v35 = vld [vmem:[#allocation6 + $0x8b4] ss:$48 sps:$4 sm:$0xff]   ;;  %v5981_v38 = vld [vmem:[#allocation6 + $0x8b0] ss:$48 sps:$4 sm:$0xff]  }
 0x16a   :  { %v861_v48 = vadd.f32 %v860_v42, %v818_v44  ;;  %v820_v49 = vadd.f32 %v819_v46, %v208_v30  ;;  %v868_v56 = vmax.f32 %v859_v43, 0.0  ;;  %v5973_v30 = vld [vmem:[#allocation9 + $0x248] ss:$12 sps:$4 sm:$0xff]  }
 0x16b   :  { %5550 = vmatpush3.bf16.msra.mxu0 %v5932_v45  ;;  %v5986_v39 = vld [vmem:[#allocation6 + $0x554] ss:$48 sps:$4 sm:$0xff]   ;;  %v5984_v41 = vld [vmem:[#allocation6 + $0x550] ss:$48 sps:$4 sm:$0xff]  }
 0x16c   :  { %v871_v57 = vmax.f32 %v861_v48, 0.0  ;;  %v863_v58 = vadd.f32 %v862_v53, %v820_v49  ;;  %5551 = vmatprep.subr.bf16.mxu0 %v5936_v47  ;;  %v5989_v40 = vld [vmem:[#allocation6 + $0x854] ss:$48 sps:$4 sm:$0xff]   ;;  %v5987_v42 = vld [vmem:[#allocation6 + $0x850] ss:$48 sps:$4 sm:$0xff]  }
 0x16d   :  { %v5992_v43 = vld [vmem:[#allocation6 + $0x4f4] ss:$48 sps:$4 sm:$0xff]   ;;  %v5990_v45 = vld [vmem:[#allocation6 + $0x4f0] ss:$48 sps:$4 sm:$0xff]  }
 0x16e   :  { %v872_v60 = vmax.f32 %v863_v58, 0.0  ;;  %v6716_v4 = vpack.c.bf16 %v871_v57, %v867_v63  ;;  %v5995_v44 = vld [vmem:[#allocation6 + $0x7f4] ss:$48 sps:$4 sm:$0xff]   ;;  %v5993_v46 = vld [vmem:[#allocation6 + $0x7f0] ss:$48 sps:$4 sm:$0xff]  }
 0x16f   :  { %5552 = vmatpush3.bf16.msra.mxu0 %v5937_v50  ;;  %v5998_v47 = vld [vmem:[#allocation6 + $0x494] ss:$48 sps:$4 sm:$0xff]   ;;  %v5996_v49 = vld [vmem:[#allocation6 + $0x490] ss:$48 sps:$4 sm:$0xff]  }
 0x170   :  { %v876_v2 = vpack.c.bf16 %v872_v60, %v868_v56  ;;  %2289 = vmatprep.subr.bf16.mxu0 %v5941_v59  ;;  %v6001_v48 = vld [vmem:[#allocation6 + $0x794] ss:$48 sps:$4 sm:$0xff]   ;;  %v5999_v50 = vld [vmem:[#allocation6 + $0x790] ss:$48 sps:$4 sm:$0xff]  }
 0x171   :  { %v6004_v51 = vld [vmem:[#allocation6 + $0x434] ss:$48 sps:$4 sm:$0xff]   ;;  %v6002_v56 = vld [vmem:[#allocation6 + $0x430] ss:$48 sps:$4 sm:$0xff]  }
 0x172   :  { %1592 = vmatprep.mubr.bf16.mxu1 %v876_v2  ;;  %1636 = vmatmul.mubr.bf16.vlgmr.msra.gmra.mxu0 %v6707_v18  ;;  %v5959_v18 = vld [vmem:[#allocation6 + $0x130] ss:$48 sps:$4 sm:$0xff]   ;;  %v6007_v53 = vld [vmem:[#allocation6 + $0x734] ss:$48 sps:$4 sm:$0xff]  }
 0x173   :  { %1593 = vmatmul.mubr.bf16.vlgmr.msra.gmra.mxu1 %v6716_v4  ;;  %2290 = vmatpush1.bf16.msra.mxu0 %v5939_v61  ;;  %v6005_v57 = vld [vmem:[#allocation6 + $0x730] ss:$48 sps:$4 sm:$0xff]   ;;  %v6010_v58 = vld [vmem:[#allocation6 + $0x3d4] ss:$48 sps:$4 sm:$0xff]  }
 0x174   :  { %5560 = vmatpush3.bf16.msra.mxu1 %v5942_v62  ;;  %1676 = vmatprep.mubr.bf16.mxu1 %v876_v2  ;;  %v6013_v59 = vld [vmem:[#allocation6 + $0x6d4] ss:$48 sps:$4 sm:$0xff]   ;;  %v6008_v60 = vld [vmem:[#allocation6 + $0x3d0] ss:$48 sps:$4 sm:$0xff]  }
 0x175   :  { %5561 = vmatprep.subr.bf16.mxu1 %v5943_v1  ;;  %2291 = vmatprep.subr.bf16.mxu0 %v5946_v3  ;;  %v6011_v61 = vld [vmem:[#allocation6 + $0x6d0] ss:$48 sps:$4 sm:$0xff]   ;;  %v6016_v62 = vld [vmem:[#allocation6 + $0x374] ss:$48 sps:$4 sm:$0xff]  }
 0x176   :  { %2321 = vmatprep.mubr.bf16.mxu0 %v6691_v54  ;;  %v6019_v63 = vld [vmem:[#allocation6 + $0x674] ss:$48 sps:$4 sm:$0xff]   ;;  %v6014_v1 = vld [vmem:[#allocation6 + $0x370] ss:$48 sps:$4 sm:$0xff]  }
 0x177   :  { %2292 = vmatpush1.bf16.msra.mxu0 %v5944_v5  ;;  %v6017_v2 = vld [vmem:[#allocation6 + $0x670] ss:$48 sps:$4 sm:$0xff]   ;;  %v6022_v3 = vld [vmem:[#allocation6 + $0x314] ss:$48 sps:$4 sm:$0xff]  }
 0x178   :  { %5562 = vmatpush3.bf16.msra.mxu1 %v5947_v6  ;;  %2293 = vmatprep.subr.bf16.mxu0 %v5951_v8  ;;  %v6020_v5 = vld [vmem:[#allocation6 + $0x310] ss:$48 sps:$4 sm:$0xff]   ;;  %v6052_v8 = vld [vmem:[#allocation6 + $0x8bc] ss:$48 sps:$4 sm:$0xff]  }
 0x179   :  { %5563 = vmatprep.subr.bf16.mxu1 %v5948_v7  ;;  %v6023_v6 = vld [vmem:[#allocation6 + $0x610] ss:$48 sps:$4 sm:$0xff]   ;;  %v6028_v7 = vld [vmem:[#allocation6 + $0x2bc] ss:$48 sps:$4 sm:$0xff]  }
 0x17b   :  { %2294 = vmatpush1.bf16.msra.mxu0 %v5949_v9  ;;  %v6026_v9 = vld [vmem:[#allocation6 + $0x2b8] ss:$48 sps:$4 sm:$0xff]  }
 0x17c   :  { %5564 = vmatpush3.bf16.msra.mxu1 %v5952_v10  ;;  %2295 = vmatprep.subr.bf16.mxu0 %v5956_v13  ;;  %v6050_v10 = vld [vmem:[#allocation6 + $0x8b8] ss:$48 sps:$4 sm:$0xff]   ;;  %v6058_v13 = vld [vmem:[#allocation6 + $0x85c] ss:$48 sps:$4 sm:$0xff]  }
 0x17d   :  { %5565 = vmatprep.subr.bf16.mxu1 %v5953_v11  ;;  %v6031_v11 = vld [vmem:[#allocation6 + $0x25c] ss:$48 sps:$4 sm:$0xff]  }
 0x17f   :  { %2296 = vmatpush1.bf16.msra.mxu0 %v5954_v14  ;;  %v6029_v14 = vld [vmem:[#allocation6 + $0x258] ss:$48 sps:$4 sm:$0xff]  }
 0x180   :  { %5566 = vmatpush3.bf16.msra.mxu1 %v5957_v15  ;;  %2297 = vmatprep.subr.bf16.mxu0 %v5961_v17  ;;  %v6056_v15 = vld [vmem:[#allocation6 + $0x858] ss:$48 sps:$4 sm:$0xff]   ;;  %v6064_v17 = vld [vmem:[#allocation6 + $0x7fc] ss:$48 sps:$4 sm:$0xff]  }
 0x181   :  { %5567 = vmatprep.subr.bf16.mxu1 %v5958_v16  ;;  %v6034_v16 = vld [vmem:[#allocation6 + $0x1fc] ss:$48 sps:$4 sm:$0xff]  }
 0x183   :  { %2298 = vmatpush1.bf16.msra.mxu0 %v5959_v18  ;;  %v6032_v18 = vld [vmem:[#allocation6 + $0x1f8] ss:$48 sps:$4 sm:$0xff]  }
 0x184   :  { %5568 = vmatpush3.bf16.msra.mxu1 %v5962_v19  ;;  %2299 = vmatprep.subr.bf16.mxu0 %v5966_v21  ;;  %v6062_v19 = vld [vmem:[#allocation6 + $0x7f8] ss:$48 sps:$4 sm:$0xff]   ;;  %v6070_v21 = vld [vmem:[#allocation6 + $0x79c] ss:$48 sps:$4 sm:$0xff]  }
 0x185   :  { %5569 = vmatprep.subr.bf16.mxu1 %v5963_v20  ;;  %v6037_v20 = vld [vmem:[#allocation6 + $0x19c] ss:$48 sps:$4 sm:$0xff]  }
 0x187   :  { %2300 = vmatpush1.bf16.msra.mxu0 %v5964_v22  ;;  %v6035_v22 = vld [vmem:[#allocation6 + $0x198] ss:$48 sps:$4 sm:$0xff]  }
 0x188   :  { %5570 = vmatpush3.bf16.msra.mxu1 %v5967_v23  ;;  %2301 = vmatprep.subr.bf16.mxu0 %v5971_v25  ;;  %v6068_v23 = vld [vmem:[#allocation6 + $0x798] ss:$48 sps:$4 sm:$0xff]   ;;  %v6076_v25 = vld [vmem:[#allocation6 + $0x73c] ss:$48 sps:$4 sm:$0xff]  }
 0x189   :  { %5571 = vmatprep.subr.bf16.mxu1 %v5968_v24  ;;  %v6040_v24 = vld [vmem:[#allocation6 + $0x13c] ss:$48 sps:$4 sm:$0xff]  }
 0x18b   :  { %2302 = vmatpush1.bf16.msra.mxu0 %v5969_v28  ;;  %v6038_v28 = vld [vmem:[#allocation6 + $0x138] ss:$48 sps:$4 sm:$0xff]  }
 0x18c   :  { %5572 = vmatpush3.bf16.msra.mxu1 %v5972_v29  ;;  %2303 = vmatprep.subr.bf16.mxu0 %v5976_v31  ;;  %v6074_v29 = vld [vmem:[#allocation6 + $0x738] ss:$48 sps:$4 sm:$0xff]   ;;  %v6082_v31 = vld [vmem:[#allocation6 + $0x6dc] ss:$48 sps:$4 sm:$0xff]  }
 0x18d   :  { %5573 = vmatprep.subr.bf16.mxu1 %v5973_v30  ;;  %v6043_v30 = vld [vmem:[#allocation6 + $0xdc] ss:$48 sps:$4 sm:$0xff]  }
 0x18f   :  { %2304 = vmatpush1.bf16.msra.mxu0 %v5974_v32  ;;  %v6041_v32 = vld [vmem:[#allocation6 + $0xd8] ss:$48 sps:$4 sm:$0xff]  }
 0x190   :  { %5574 = vmatpush3.bf16.msra.mxu1 %v5977_v33  ;;  %2305 = vmatprep.subr.bf16.mxu0 %v5980_v34  ;;  %v6080_v33 = vld [vmem:[#allocation6 + $0x6d8] ss:$48 sps:$4 sm:$0xff]   ;;  %v6046_v34 = vld [vmem:[#allocation6 + $0x7c] ss:$48 sps:$4 sm:$0xff]  }
 0x191   :  { %2332 = vmatprep.subr.bf16.mxu1 %v5983_v35  ;;  %v6088_v35 = vld [vmem:[#allocation6 + $0x67c] ss:$48 sps:$4 sm:$0xff]  }
 0x193   :  { %1677 = vmatmul.mubr.bf16.vlgmr.msra.gmra.mxu1 %v6716_v4  ;;  %2306 = vmatpush2.bf16.msra.mxu0 %v5978_v36  ;;  %v6025_v4 = vld [vmem:[#allocation6 + $0x614] ss:$48 sps:$4 sm:$0xff]   ;;  %v6044_v36 = vld [vmem:[#allocation6 + $0x78] ss:$48 sps:$4 sm:$0xff]  }
 0x194   :  { %2333 = vmatpush1.bf16.msra.mxu1 %v5981_v38  ;;  %2307 = vmatprep.subr.bf16.mxu0 %v5986_v39  ;;  %v6086_v38 = vld [vmem:[#allocation6 + $0x678] ss:$48 sps:$4 sm:$0xff]   ;;  %v6049_v39 = vld [vmem:[#allocation6 + $0x1c] ss:$48 sps:$4 sm:$0xff]  }
 0x195   :  { %2334 = vmatprep.subr.bf16.mxu1 %v5989_v40  ;;  %2364 = vmatprep.mubr.bf16.mxu1 %v6637_v0  ;;  %v6094_v40 = vld [vmem:[#allocation6 + $0x61c] ss:$48 sps:$4 sm:$0xff]  }
 0x197   :  { %2308 = vmatpush2.bf16.msra.mxu0 %v5984_v41  ;;  %v6047_v41 = vld [vmem:[#allocation6 + $0x18] ss:$48 sps:$4 sm:$0xff]  }
 0x198   :  { %2335 = vmatpush1.bf16.msra.mxu1 %v5987_v42  ;;  %2309 = vmatprep.subr.bf16.mxu0 %v5992_v43  ;;  %v6092_v42 = vld [vmem:[#allocation6 + $0x618] ss:$48 sps:$4 sm:$0xff]   ;;  %v6055_v43 = vld [vmem:[#allocation6 + $0x5bc] ss:$48 sps:$4 sm:$0xff]  }
 0x199   :  { %2336 = vmatprep.subr.bf16.mxu1 %v5995_v44  ;;  %v6100_v44 = vld [vmem:[#allocation9 + $0x3ac] ss:$12 sps:$4 sm:$0xff]  }
 0x19b   :  { %2310 = vmatpush2.bf16.msra.mxu0 %v5990_v45  ;;  %v6053_v45 = vld [vmem:[#allocation6 + $0x5b8] ss:$48 sps:$4 sm:$0xff]  }
 0x19c   :  { %2337 = vmatpush1.bf16.msra.mxu1 %v5993_v46  ;;  %2311 = vmatprep.subr.bf16.mxu0 %v5998_v47  ;;  %v6098_v46 = vld [vmem:[#allocation9 + $0x3a8] ss:$12 sps:$4 sm:$0xff]   ;;  %v6061_v47 = vld [vmem:[#allocation6 + $0x55c] ss:$48 sps:$4 sm:$0xff]  }
 0x19d   :  { %2338 = vmatprep.subr.bf16.mxu1 %v6001_v48  ;;  %v6103_v48 = vld [vmem:[#allocation9 + $0x394] ss:$12 sps:$4 sm:$0xff]  }
 0x19f   :  { %2312 = vmatpush2.bf16.msra.mxu0 %v5996_v49  ;;  %v6059_v49 = vld [vmem:[#allocation6 + $0x558] ss:$48 sps:$4 sm:$0xff]  }
 0x1a0   :  { %2339 = vmatpush1.bf16.msra.mxu1 %v5999_v50  ;;  %2313 = vmatprep.subr.bf16.mxu0 %v6004_v51  ;;  %v6101_v50 = vld [vmem:[#allocation9 + $0x390] ss:$12 sps:$4 sm:$0xff]  }
 0x1a1   :  { %2340 = vmatprep.subr.bf16.mxu1 %v6007_v53  ;;  %v6067_v51 = vld [vmem:[#allocation6 + $0x4fc] ss:$48 sps:$4 sm:$0xff]   ;;  %v6106_v53 = vld [vmem:[#allocation9 + $0x37c] ss:$12 sps:$4 sm:$0xff]  }
 0x1a3   :  { %2314 = vmatpush2.bf16.msra.mxu0 %v6002_v56  ;;  %v6065_v56 = vld [vmem:[#allocation6 + $0x4f8] ss:$48 sps:$4 sm:$0xff]  }
 0x1a4   :  { %2341 = vmatpush1.bf16.msra.mxu1 %v6005_v57  ;;  %2315 = vmatprep.subr.bf16.mxu0 %v6010_v58  ;;  %v6104_v57 = vld [vmem:[#allocation9 + $0x378] ss:$12 sps:$4 sm:$0xff]   ;;  %v6073_v58 = vld [vmem:[#allocation6 + $0x49c] ss:$48 sps:$4 sm:$0xff]  }
 0x1a5   :  { %2342 = vmatprep.subr.bf16.mxu1 %v6013_v59  ;;  %v6109_v59 = vld [vmem:[#allocation9 + $0x364] ss:$12 sps:$4 sm:$0xff]  }
 0x1a7   :  { %2316 = vmatpush2.bf16.msra.mxu0 %v6008_v60  ;;  %v6071_v60 = vld [vmem:[#allocation6 + $0x498] ss:$48 sps:$4 sm:$0xff]  }
 0x1a8   :  { %2343 = vmatpush1.bf16.msra.mxu1 %v6011_v61  ;;  %2317 = vmatprep.subr.bf16.mxu0 %v6016_v62  ;;  %v6107_v61 = vld [vmem:[#allocation9 + $0x360] ss:$12 sps:$4 sm:$0xff]  }
 0x1a9   :  { %2344 = vmatprep.subr.bf16.mxu1 %v6019_v63  ;;  %v6079_v62 = vld [vmem:[#allocation6 + $0x43c] ss:$48 sps:$4 sm:$0xff]   ;;  %v6112_v63 = vld [vmem:[#allocation9 + $0x34c] ss:$12 sps:$4 sm:$0xff]  }
 0x1ab   :  { %2318 = vmatpush2.bf16.msra.mxu0 %v6014_v1  ;;  %v6077_v1 = vld [vmem:[#allocation6 + $0x438] ss:$48 sps:$4 sm:$0xff]  }
 0x1ac   :  { %2345 = vmatpush1.bf16.msra.mxu1 %v6017_v2  ;;  %2319 = vmatprep.subr.bf16.mxu0 %v6022_v3  ;;  %v6110_v2 = vld [vmem:[#allocation9 + $0x348] ss:$12 sps:$4 sm:$0xff]   ;;  %v6085_v3 = vld [vmem:[#allocation6 + $0x3dc] ss:$48 sps:$4 sm:$0xff]  }
 0x1ad   :  { %2346 = vmatprep.subr.bf16.mxu1 %v6025_v4  ;;  %v6115_v4 = vld [vmem:[#allocation9 + $0x334] ss:$12 sps:$4 sm:$0xff]  }
 0x1af   :  { %2320 = vmatpush2.bf16.msra.mxu0 %v6020_v5  ;;  %v6083_v5 = vld [vmem:[#allocation6 + $0x3d8] ss:$48 sps:$4 sm:$0xff]  }
 0x1b0   :  { %2347 = vmatpush1.bf16.msra.mxu1 %v6023_v6  ;;  %2418 = vmatprep.subr.bf16.mxu0 %v6052_v8  ;;  %v6113_v6 = vld [vmem:[#allocation9 + $0x330] ss:$12 sps:$4 sm:$0xff]  }
 0x1b1   :  { %2375 = vmatprep.subr.bf16.mxu1 %v6028_v7  ;;  %v6091_v7 = vld [vmem:[#allocation6 + $0x37c] ss:$48 sps:$4 sm:$0xff]   ;;  %v6118_v8 = vld [vmem:[#allocation9 + $0x31c] ss:$12 sps:$4 sm:$0xff]  }
 0x1b2   :  { %2322 = vmatmul.mubr.bf16.vlgmr.msra.gmra.mxu0 %v6695_v12 }
 0x1b3   :  { %2365 = vmatmul.mubr.bf16.vlgmr.msra.gmra.mxu1 %v6688_v37  ;;  %2419 = vmatpush1.bf16.msra.mxu0 %v6050_v10  ;;  %v6116_v10 = vld [vmem:[#allocation9 + $0x318] ss:$12 sps:$4 sm:$0xff]  }
 0x1b4   :  { %2376 = vmatpush1.bf16.msra.mxu1 %v6026_v9  ;;  %2420 = vmatprep.subr.bf16.mxu0 %v6058_v13  ;;  %v6089_v9 = vld [vmem:[#allocation6 + $0x378] ss:$48 sps:$4 sm:$0xff]   ;;  %v6121_v13 = vld [vmem:[#allocation9 + $0x304] ss:$12 sps:$4 sm:$0xff]  }
 0x1b5   :  { %2377 = vmatprep.subr.bf16.mxu1 %v6031_v11  ;;  %2450 = vmatprep.mubr.bf16.mxu0 %v6637_v0  ;;  %v6097_v11 = vld [vmem:[#allocation6 + $0x31c] ss:$48 sps:$4 sm:$0xff]  }
 0x1b6   :  { %2407 = vmatprep.mubr.bf16.mxu1 %v6691_v54 }
 0x1b7   :  { %2421 = vmatpush1.bf16.msra.mxu0 %v6056_v15  ;;  %v6119_v15 = vld [vmem:[#allocation9 + $0x300] ss:$12 sps:$4 sm:$0xff]  }
 0x1b8   :  { %2378 = vmatpush1.bf16.msra.mxu1 %v6029_v14  ;;  %2422 = vmatprep.subr.bf16.mxu0 %v6064_v17  ;;  %v6095_v14 = vld [vmem:[#allocation6 + $0x318] ss:$48 sps:$4 sm:$0xff]   ;;  %v6122_v17 = vld [vmem:[#allocation9 + $0x468] ss:$12 sps:$4 sm:$0xff]  }
 0x1b9   :  { %2379 = vmatprep.subr.bf16.mxu1 %v6034_v16  ;;  %v6124_v16 = vld [vmem:[#allocation9 + $0x46c] ss:$12 sps:$4 sm:$0xff]  }
 0x1bb   :  { %2423 = vmatpush1.bf16.msra.mxu0 %v6062_v19  ;;  %v6125_v19 = vld [vmem:[#allocation9 + $0x450] ss:$12 sps:$4 sm:$0xff]  }
 0x1bc   :  { %2380 = vmatpush1.bf16.msra.mxu1 %v6032_v18  ;;  %2424 = vmatprep.subr.bf16.mxu0 %v6070_v21  ;;  %v6127_v18 = vld [vmem:[#allocation9 + $0x454] ss:$12 sps:$4 sm:$0xff]   ;;  %v6128_v21 = vld [vmem:[#allocation9 + $0x438] ss:$12 sps:$4 sm:$0xff]  }
 0x1bd   :  { %2381 = vmatprep.subr.bf16.mxu1 %v6037_v20  ;;  %v6130_v20 = vld [vmem:[#allocation9 + $0x43c] ss:$12 sps:$4 sm:$0xff]  }
 0x1bf   :  { %2425 = vmatpush1.bf16.msra.mxu0 %v6068_v23  ;;  %v6131_v23 = vld [vmem:[#allocation9 + $0x420] ss:$12 sps:$4 sm:$0xff]  }
 0x1c0   :  { %2382 = vmatpush1.bf16.msra.mxu1 %v6035_v22  ;;  %2426 = vmatprep.subr.bf16.mxu0 %v6076_v25  ;;  %v6133_v22 = vld [vmem:[#allocation9 + $0x424] ss:$12 sps:$4 sm:$0xff]   ;;  %v6134_v25 = vld [vmem:[#allocation9 + $0x408] ss:$12 sps:$4 sm:$0xff]  }
 0x1c1   :  { %2383 = vmatprep.subr.bf16.mxu1 %v6040_v24  ;;  %v6136_v24 = vld [vmem:[#allocation9 + $0x40c] ss:$12 sps:$4 sm:$0xff]  }
 0x1c3   :  { %2427 = vmatpush1.bf16.msra.mxu0 %v6074_v29  ;;  %v6139_v29 = vld [vmem:[#allocation9 + $0x3f4] ss:$12 sps:$4 sm:$0xff]  }
 0x1c4   :  { %2384 = vmatpush1.bf16.msra.mxu1 %v6038_v28  ;;  %2428 = vmatprep.subr.bf16.mxu0 %v6082_v31  ;;  %v6148_v28 = vld [vmem:[#allocation9 + $0x52c] ss:$12 sps:$4 sm:$0xff]   ;;  %v6137_v31 = vld [vmem:[#allocation9 + $0x3f0] ss:$12 sps:$4 sm:$0xff]  }
 0x1c5   :  { %2385 = vmatprep.subr.bf16.mxu1 %v6043_v30  ;;  %v6146_v30 = vld [vmem:[#allocation9 + $0x528] ss:$12 sps:$4 sm:$0xff]  }
 0x1c7   :  { %2429 = vmatpush1.bf16.msra.mxu0 %v6080_v33  ;;  %v6153_v33 = vld [vmem:[#allocation9 + $0x514] ss:$12 sps:$4 sm:$0xff]  }
 0x1c8   :  { %2386 = vmatpush1.bf16.msra.mxu1 %v6041_v32  ;;  %2430 = vmatprep.subr.bf16.mxu0 %v6088_v35  ;;  %v6151_v32 = vld [vmem:[#allocation9 + $0x510] ss:$12 sps:$4 sm:$0xff]   ;;  %v6140_v35 = vld [vmem:[#allocation9 + $0x3d8] ss:$12 sps:$4 sm:$0xff]  }
 0x1c9   :  { %2387 = vmatprep.subr.bf16.mxu1 %v6046_v34  ;;  %v6142_v34 = vld [vmem:[#allocation9 + $0x3dc] ss:$12 sps:$4 sm:$0xff]  }
 0x1cb   :  { %2431 = vmatpush1.bf16.msra.mxu0 %v6086_v38  ;;  %v6158_v38 = vld [vmem:[#allocation9 + $0x4fc] ss:$12 sps:$4 sm:$0xff]  }
 0x1cc   :  { %2388 = vmatpush1.bf16.msra.mxu1 %v6044_v36  ;;  %2432 = vmatprep.subr.bf16.mxu0 %v6094_v40  ;;  %v6156_v36 = vld [vmem:[#allocation9 + $0x4f8] ss:$12 sps:$4 sm:$0xff]   ;;  %v6143_v40 = vld [vmem:[#allocation9 + $0x3c0] ss:$12 sps:$4 sm:$0xff]  }
 0x1cd   :  { %2389 = vmatprep.subr.bf16.mxu1 %v6049_v39  ;;  %v6145_v39 = vld [vmem:[#allocation9 + $0x3c4] ss:$12 sps:$4 sm:$0xff]  }
 0x1cf   :  { %2433 = vmatpush1.bf16.msra.mxu0 %v6092_v42  ;;  %v6163_v42 = vld [vmem:[#allocation9 + $0x4e4] ss:$12 sps:$4 sm:$0xff]  }
 0x1d0   :  { %2390 = vmatpush1.bf16.msra.mxu1 %v6047_v41  ;;  %3113 = vmatprep.subr.bf16.mxu0 %v6100_v44  ;;  %v6161_v41 = vld [vmem:[#allocation9 + $0x4e0] ss:$12 sps:$4 sm:$0xff]   ;;  %v6166_v44 = vld [vmem:[#allocation9 + $0x4c8] ss:$12 sps:$4 sm:$0xff]  }
 0x1d1   :  { %2391 = vmatprep.subr.bf16.mxu1 %v6055_v43  ;;  %v6149_v43 = vld [vmem:[#allocation9 + $0x470] ss:$12 sps:$4 sm:$0xff]  }
 0x1d2   :  { %2451 = vmatmul.mubr.bf16.vlgmr.msra.gmra.mxu0 %v6688_v37 }
 0x1d3   :  { %3114 = vmatpush1.bf16.msra.mxu0 %v6098_v46  ;;  %v6171_v46 = vld [vmem:[#allocation9 + $0x4b0] ss:$12 sps:$4 sm:$0xff]  }
 0x1d4   :  { %2392 = vmatpush2.bf16.msra.mxu1 %v6053_v45  ;;  %3115 = vmatprep.subr.bf16.mxu0 %v6103_v48  ;;  %v6168_v45 = vld [vmem:[#allocation9 + $0x4cc] ss:$12 sps:$4 sm:$0xff]  }
 0x1d5   :  { %2393 = vmatprep.subr.bf16.mxu1 %v6061_v47  ;;  %v6173_v47 = vld [vmem:[#allocation9 + $0x4b4] ss:$12 sps:$4 sm:$0xff]   ;;  %v6176_v48 = vld [vmem:[#allocation9 + $0x498] ss:$12 sps:$4 sm:$0xff]  }
 0x1d7   :  { %3116 = vmatpush1.bf16.msra.mxu0 %v6101_v50  ;;  %v6181_v50 = vld [vmem:[#allocation9 + $0x480] ss:$12 sps:$4 sm:$0xff]  }
 0x1d8   :  { %2394 = vmatpush2.bf16.msra.mxu1 %v6059_v49  ;;  %3117 = vmatprep.subr.bf16.mxu0 %v6106_v53  ;;  %v6178_v49 = vld [vmem:[#allocation9 + $0x49c] ss:$12 sps:$4 sm:$0xff]  }
 0x1d9   :  { %2395 = vmatprep.subr.bf16.mxu1 %v6067_v51  ;;  %v6183_v51 = vld [vmem:[#allocation9 + $0x484] ss:$12 sps:$4 sm:$0xff]   ;;  %v6186_v53 = vld [vmem:[#allocation9 + $0x5e8] ss:$12 sps:$4 sm:$0xff]  }
 0x1db   :  { %3118 = vmatpush1.bf16.msra.mxu0 %v6104_v57  ;;  %v6189_v57 = vld [vmem:[#allocation9 + $0x5d0] ss:$12 sps:$4 sm:$0xff]  }
 0x1dc   :  { %2396 = vmatpush2.bf16.msra.mxu1 %v6065_v56  ;;  %3119 = vmatprep.subr.bf16.mxu0 %v6109_v59  ;;  %v6188_v56 = vld [vmem:[#allocation9 + $0x5ec] ss:$12 sps:$4 sm:$0xff]   ;;  %v6194_v59 = vld [vmem:[#allocation9 + $0x5bc] ss:$12 sps:$4 sm:$0xff]  }
 0x1dd   :  { %2397 = vmatprep.subr.bf16.mxu1 %v6073_v58  ;;  %v6191_v58 = vld [vmem:[#allocation9 + $0x5d4] ss:$12 sps:$4 sm:$0xff]  }
 0x1df   :  { %3120 = vmatpush1.bf16.msra.mxu0 %v6107_v61  ;;  %v6192_v61 = vld [vmem:[#allocation9 + $0x5b8] ss:$12 sps:$4 sm:$0xff]  }
 0x1e0   :  { %2398 = vmatpush2.bf16.msra.mxu1 %v6071_v60  ;;  %3121 = vmatprep.subr.bf16.mxu0 %v6112_v63 }
 0x1e1   :  { %2399 = vmatprep.subr.bf16.mxu1 %v6079_v62  ;;  %v6197_v62 = vld [vmem:[#allocation9 + $0x5a4] ss:$12 sps:$4 sm:$0xff]  }
 0x1e3   :  { %3122 = vmatpush1.bf16.msra.mxu0 %v6110_v2  ;;  %v6200_v2 = vld [vmem:[#allocation9 + $0x58c] ss:$12 sps:$4 sm:$0xff]  }
 0x1e4   :  { %2400 = vmatpush2.bf16.msra.mxu1 %v6077_v1  ;;  %3123 = vmatprep.subr.bf16.mxu0 %v6115_v4  ;;  %v6195_v1 = vld [vmem:[#allocation9 + $0x5a0] ss:$12 sps:$4 sm:$0xff]   ;;  %v6198_v4 = vld [vmem:[#allocation9 + $0x588] ss:$12 sps:$4 sm:$0xff]  }
 0x1e5   :  { %2401 = vmatprep.subr.bf16.mxu1 %v6085_v3 }
 0x1e7   :  { %3124 = vmatpush1.bf16.msra.mxu0 %v6113_v6 }
 0x1e8   :  { %2402 = vmatpush2.bf16.msra.mxu1 %v6083_v5  ;;  %3125 = vmatprep.subr.bf16.mxu0 %v6118_v8 }
 0x1e9   :  { %2403 = vmatprep.subr.bf16.mxu1 %v6091_v7 }
 0x1eb   :  { %3126 = vmatpush1.bf16.msra.mxu0 %v6116_v10 }
 0x1ec   :  { %2404 = vmatpush2.bf16.msra.mxu1 %v6089_v9  ;;  %3127 = vmatprep.subr.bf16.mxu0 %v6121_v13 }
 0x1ed   :  { %2405 = vmatprep.subr.bf16.mxu1 %v6097_v11  ;;  %v6203_v11 = vld [vmem:[#allocation9 + $0x574] ss:$12 sps:$4 sm:$0xff]  }
 0x1ef   :  { %3128 = vmatpush1.bf16.msra.mxu0 %v6119_v15  ;;  %v6201_v15 = vld [vmem:[#allocation9 + $0x570] ss:$12 sps:$4 sm:$0xff]  }
 0x1f0   :  { %2406 = vmatpush2.bf16.msra.mxu1 %v6095_v14  ;;  %3129 = vmatprep.subr.bf16.mxu0 %v6124_v16 }
 0x1f1   :  { %3156 = vmatprep.subr.bf16.mxu1 %v6148_v28  ;;  %v6207_v28 = vld [vmem:[#allocation9 + $0x540] ss:$12 sps:$4 sm:$0xff]  }
 0x1f3   :  { %2408 = vmatmul.mubr.bf16.vlgmr.msra.gmra.mxu1 %v6695_v12  ;;  %3130 = vmatpush2.bf16.msra.mxu0 %v6122_v17 }
 0x1f4   :  { %3131 = vmatprep.subr.bf16.mxu0 %v6127_v18  ;;  %3157 = vmatpush1.bf16.msra.mxu1 %v6146_v30 }
 0x1f5   :  { %3158 = vmatprep.subr.bf16.mxu1 %v6153_v33 }
 0x1f7   :  { %3132 = vmatpush2.bf16.msra.mxu0 %v6125_v19 }
 0x1f8   :  { %3133 = vmatprep.subr.bf16.mxu0 %v6130_v20  ;;  %3159 = vmatpush1.bf16.msra.mxu1 %v6151_v32 }
 0x1f9   :  { %3160 = vmatprep.subr.bf16.mxu1 %v6158_v38 }
 0x1fb   :  { %3134 = vmatpush2.bf16.msra.mxu0 %v6128_v21  ;;  %v6206_v21 = vld [vmem:[#allocation9 + $0x55c] ss:$12 sps:$4 sm:$0xff]  }
 0x1fc   :  { %3135 = vmatprep.subr.bf16.mxu0 %v6133_v22  ;;  %3161 = vmatpush1.bf16.msra.mxu1 %v6156_v36 }
 0x1fd   :  { %3162 = vmatprep.subr.bf16.mxu1 %v6163_v42 }
 0x1ff   :  { %3136 = vmatpush2.bf16.msra.mxu0 %v6131_v23 }
 0x200   :  { %3137 = vmatprep.subr.bf16.mxu0 %v6136_v24  ;;  %3163 = vmatpush1.bf16.msra.mxu1 %v6161_v41  ;;  %v6204_v24 = vld [vmem:[#allocation9 + $0x558] ss:$12 sps:$4 sm:$0xff]  }
 0x201   :  { %3164 = vmatprep.subr.bf16.mxu1 %v6168_v45 }
 0x203   :  { %3138 = vmatpush2.bf16.msra.mxu0 %v6134_v25  ;;  %v6209_v25 = vld [vmem:[#allocation9 + $0x544] ss:$12 sps:$4 sm:$0xff]  }
 0x204   :  { %3139 = vmatprep.subr.bf16.mxu0 %v6139_v29  ;;  %3165 = vmatpush1.bf16.msra.mxu1 %v6166_v44  ;;  %v6213_v29 = vld [vmem:[#allocation9 + $0x5f0] ss:$12 sps:$4 sm:$0xff]  }
 0x205   :  { %3166 = vmatprep.subr.bf16.mxu1 %v6173_v47 }
 0x207   :  { %3140 = vmatpush2.bf16.msra.mxu0 %v6137_v31 }
 0x208   :  { %3141 = vmatprep.subr.bf16.mxu0 %v6142_v34  ;;  %3167 = vmatpush1.bf16.msra.mxu1 %v6171_v46 }
 0x209   :  { %3168 = vmatprep.subr.bf16.mxu1 %v6178_v49 }
 0x20b   :  { %3142 = vmatpush2.bf16.msra.mxu0 %v6140_v35 }
 0x20c   :  { %3143 = vmatprep.subr.bf16.mxu0 %v6145_v39  ;;  %3169 = vmatpush1.bf16.msra.mxu1 %v6176_v48  ;;  %v6741_v39 = vld [vmem:[#allocation8 + $0x4] sm:$0xf] }
 0x20d   :  { %3170 = vmatprep.subr.bf16.mxu1 %v6183_v51  ;;  %v1792_v41 = vrot.slane %v6741_v39, %v6703_v55 }
 0x20f   :  { %3144 = vmatpush2.bf16.msra.mxu0 %v6143_v40  ;;  %v1796_v40 = vrot.slane %v6741_v39, %v6701_v52 }
 0x210   :  { %5581 = vmatprep.subr.bf16.mxu0 %v6149_v43  ;;  %3171 = vmatpush1.bf16.msra.mxu1 %v6181_v50 }
 0x211   :  { %3172 = vmatprep.subr.bf16.mxu1 %v6188_v56 }
 0x212   :  { %v1551_v60 = vpop.f32.mrf.mxu0 }
 0x214   :  { %3173 = vmatpush2.bf16.msra.mxu1 %v6186_v53  ;;  %v1553_v63 = vpop.f32.mrf.mxu0 }
 0x215   :  { %3174 = vmatprep.subr.bf16.mxu1 %v6191_v58 }
 0x216   :  { %v1555_v3 = vpop.f32.mrf.mxu0 }
 0x218   :  { %3175 = vmatpush2.bf16.msra.mxu1 %v6189_v57  ;;  %v1557_v5 = vpop.f32.mrf.mxu0 }
 0x219   :  { %3176 = vmatprep.subr.bf16.mxu1 %v6194_v59 }
 0x21c   :  { %3177 = vmatpush2.bf16.msra.mxu1 %v6192_v61 }
 0x21d   :  { %3178 = vmatprep.subr.bf16.mxu1 %v6197_v62 }
 0x220   :  { %3179 = vmatpush2.bf16.msra.mxu1 %v6195_v1 }
 0x221   :  { %3180 = vmatprep.subr.bf16.mxu1 %v6200_v2 }
 0x224   :  { %3181 = vmatpush2.bf16.msra.mxu1 %v6198_v4 }
 0x225   :  { %3182 = vmatprep.subr.bf16.mxu1 %v6203_v11  ;;  %v6165_v11 = vld [vmem:[#allocation9 + $0x368] ss:$12 sps:$4 sm:$0xff]  }
 0x228   :  { %3183 = vmatpush2.bf16.msra.mxu1 %v6201_v15  ;;  %v6170_v15 = vld [vmem:[#allocation9 + $0x350] ss:$12 sps:$4 sm:$0xff]  }
 0x229   :  { %3184 = vmatprep.subr.bf16.mxu1 %v6206_v21  ;;  %v6184_v21 = vld [vmem:[#allocation9 + $0x3c8] ss:$12 sps:$4 sm:$0xff]  }
 0x22c   :  { %3185 = vmatpush2.bf16.msra.mxu1 %v6204_v24  ;;  %v6212_v24 = vld [vmem:[#allocation6 + $0x2c4] ss:$48 sps:$4 sm:$0xff]  }
 0x22d   :  { %3186 = vmatprep.subr.bf16.mxu1 %v6209_v25  ;;  %v6210_v25 = vld [vmem:[#allocation6 + $0x2c0] ss:$48 sps:$4 sm:$0xff]  }
 0x230   :  { %3187 = vmatpush2.bf16.msra.mxu1 %v6207_v28  ;;  %v6217_v28 = vld [vmem:[#allocation6 + $0x264] ss:$48 sps:$4 sm:$0xff]  }
 0x231   :  { %5603 = vmatprep.subr.bf16.mxu1 %v6213_v29  ;;  %v6215_v29 = vld [vmem:[#allocation6 + $0x260] ss:$48 sps:$4 sm:$0xff]  }
 0x232   :  { %v5553_v6 = vpop.f32.mrf.mxu0 }
 0x233   :  { %v1594_v7 = vpop.f32.mrf.mxu1 }
 0x234   :  { %v6729_v8 = vadd.f32 %v1594_v7, %v1551_v60  ;;  %v5554_v9 = vpop.f32.mrf.mxu0  ;;  %v6159_v7 = vld [vmem:[#allocation9 + $0x440] ss:$12 sps:$4 sm:$0xff]  }
 0x235   :  { %v1596_v10 = vpop.f32.mrf.mxu1  ;;  %v5555_v13 = vadd.f32 %v5554_v9, %v5553_v6  ;;  %v6155_v6 = vld [vmem:[#allocation9 + $0x398] ss:$12 sps:$4 sm:$0xff]   ;;  %v6160_v9 = vld [vmem:[#allocation9 + $0x380] ss:$12 sps:$4 sm:$0xff]  }
 0x236   :  { %v6731_v14 = vadd.f32 %v1596_v10, %v1553_v63  ;;  %v5556_v16 = vpop.f32.mrf.mxu0  ;;  %v6164_v10 = vld [vmem:[#allocation9 + $0x428] ss:$12 sps:$4 sm:$0xff]  }
 0x237   :  { %v1598_v17 = vpop.f32.mrf.mxu1 }
 0x238   :  { %v6733_v18 = vadd.f32 %v1598_v17, %v1555_v3  ;;  %v5557_v19 = vpop.f32.mrf.mxu0  ;;  %v6150_v3 = vld [vmem:[#allocation9 + $0x3b0] ss:$12 sps:$4 sm:$0xff]   ;;  %v6175_v17 = vld [vmem:[#allocation9 + $0x338] ss:$12 sps:$4 sm:$0xff]  }
 0x239   :  { %v1600_v20 = vpop.f32.mrf.mxu1  ;;  %v5558_v22 = vadd.f32 %v5557_v19, %v5556_v16  ;;  %v6174_v16 = vld [vmem:[#allocation9 + $0x3f8] ss:$12 sps:$4 sm:$0xff]   ;;  %v6179_v19 = vld [vmem:[#allocation9 + $0x3e0] ss:$12 sps:$4 sm:$0xff]  }
 0x23a   :  { %v6735_v23 = vadd.f32 %v1600_v20, %v1557_v5  ;;  %v6154_v5 = vld [vmem:[#allocation9 + $0x458] ss:$12 sps:$4 sm:$0xff]   ;;  %v6180_v20 = vld [vmem:[#allocation9 + $0x320] ss:$12 sps:$4 sm:$0xff]  }
 0x253   :  { %v5575_v30 = vpop.f32.mrf.mxu1 }
 0x255   :  { %v5576_v31 = vpop.f32.mrf.mxu1 }
 0x256   :  { %v5577_v32 = vadd.f32 %v5576_v31, %v5575_v30  ;;  %v6222_v30 = vld [vmem:[#allocation6 + $0x204] ss:$48 sps:$4 sm:$0xff]   ;;  %v6220_v31 = vld [vmem:[#allocation6 + $0x200] ss:$48 sps:$4 sm:$0xff]  }
 0x257   :  { %v5578_v33 = vpop.f32.mrf.mxu1 }
 0x258   :  { %v6737_v34 = vadd.f32 %v5577_v32, %v5555_v13  ;;  %v6169_v13 = vld [vmem:[#allocation9 + $0x410] ss:$12 sps:$4 sm:$0xff]   ;;  %v6227_v32 = vld [vmem:[#allocation6 + $0x1a4] ss:$48 sps:$4 sm:$0xff]  }
 0x259   :  { %v5579_v35 = vpop.f32.mrf.mxu1 }
 0x25a   :  { %v5580_v36 = vadd.f32 %v5579_v35, %v5578_v33  ;;  %v6225_v33 = vld [vmem:[#allocation6 + $0x1a0] ss:$48 sps:$4 sm:$0xff]   ;;  %v6232_v35 = vld [vmem:[#allocation6 + $0x144] ss:$48 sps:$4 sm:$0xff]  }
 0x25c   :  { %v6739_v38 = vadd.f32 %v5580_v36, %v5558_v22  ;;  %v6185_v22 = vld [vmem:[#allocation9 + $0x308] ss:$12 sps:$4 sm:$0xff]  }
 0x272   :  { %v2323_v42 = vpop.f32.mrf.mxu0 }
 0x273   :  { %v2366_v43 = vpop.f32.mrf.mxu1  ;;  %v2324_v47 = vadd.f32 %v2323_v42, %v1792_v41  ;;  %v1804_v42 = vrot.slane %v6741_v39, %v6710_v26 }
 0x274   :  { %v2325_v44 = vpop.f32.mrf.mxu0 }
 0x275   :  { %v2368_v45 = vpop.f32.mrf.mxu1  ;;  %v2326_v46 = vadd.f32 %v2325_v44, %v1796_v40  ;;  %v2367_v58 = vadd.f32 %v2366_v43, %v2324_v47  ;;  %v1800_v44 = vrot.slane %v6741_v39, %v6712_v27 }
 0x276   :  { %v2327_v48 = vpop.f32.mrf.mxu0 }
 0x277   :  { %v2370_v49 = vpop.f32.mrf.mxu1  ;;  %v2328_v50 = vadd.f32 %v2327_v48, %v1792_v41  ;;  %v2369_v53 = vadd.f32 %v2368_v45, %v2326_v46  ;;  %v2461_v1 = vmax.f32 %v2367_v58, 0.0  ;;  %v6237_v41 = vld [vmem:[#allocation6 + $0xe4] ss:$48 sps:$4 sm:$0xff]   ;;  %v6235_v46 = vld [vmem:[#allocation6 + $0xe0] ss:$48 sps:$4 sm:$0xff]  }
 0x278   :  { %v2329_v51 = vpop.f32.mrf.mxu0  ;;  %v6242_v48 = vld [vmem:[#allocation6 + $0x84] ss:$48 sps:$4 sm:$0xff]  }
 0x279   :  { %v2371_v56 = vadd.f32 %v2370_v49, %v2328_v50  ;;  %v2330_v57 = vadd.f32 %v2329_v51, %v1796_v40  ;;  %v2372_v59 = vpop.f32.mrf.mxu1  ;;  %v2462_v62 = vmax.f32 %v2369_v53, 0.0  ;;  %v6230_v40 = vld [vmem:[#allocation6 + $0x140] ss:$48 sps:$4 sm:$0xff]  }
 0x27b   :  { %v2373_v60 = vadd.f32 %v2372_v59, %v2330_v57  ;;  %v2465_v61 = vmax.f32 %v2371_v56, 0.0  ;;  %v6240_v57 = vld [vmem:[#allocation6 + $0x80] ss:$48 sps:$4 sm:$0xff]   ;;  %v6247_v59 = vld [vmem:[#allocation6 + $0x24] ss:$48 sps:$4 sm:$0xff]  }
 0x27d   :  { %v2466_v63 = vmax.f32 %v2373_v60, 0.0  ;;  %v2469_v4 = vpack.c.bf16 %v2465_v61, %v2461_v1 }
 0x27f   :  { %v2470_v2 = vpack.c.bf16 %v2466_v63, %v2462_v62 }
 0x281   :  { %3145 = vmatprep.mubr.bf16.mxu0 %v2470_v2 }
 0x282   :  { %3146 = vmatmul.mubr.bf16.vlgmr.msra.gmra.mxu0 %v2469_v4 }
 0x283   :  { %5582 = vmatpush3.bf16.msra.mxu0 %v6150_v3  ;;  %3231 = vmatprep.mubr.bf16.mxu0 %v2470_v2  ;;  %v6245_v2 = vld [vmem:[#allocation6 + $0x20] ss:$48 sps:$4 sm:$0xff]  }
 0x284   :  { %5583 = vmatprep.subr.bf16.mxu0 %v6154_v5 }
 0x287   :  { %5584 = vmatpush3.bf16.msra.mxu0 %v6155_v6 }
 0x288   :  { %5585 = vmatprep.subr.bf16.mxu0 %v6159_v7 }
 0x28b   :  { %5586 = vmatpush3.bf16.msra.mxu0 %v6160_v9 }
 0x28c   :  { %5587 = vmatprep.subr.bf16.mxu0 %v6164_v10  ;;  %v6214_v10 = vld [vmem:[#allocation9 + $0x530] ss:$12 sps:$4 sm:$0xff]  }
 0x28f   :  { %5588 = vmatpush3.bf16.msra.mxu0 %v6165_v11 }
 0x290   :  { %5589 = vmatprep.subr.bf16.mxu0 %v6169_v13  ;;  %v6218_v13 = vld [vmem:[#allocation9 + $0x5d8] ss:$12 sps:$4 sm:$0xff]  }
 0x292   :  { %v2452_v36 = vpop.f32.mrf.mxu0 }
 0x293   :  { %5590 = vmatpush3.bf16.msra.mxu0 %v6170_v15  ;;  %v6250_v15 = vld [vmem:[#allocation6 + $0x5c0] ss:$48 sps:$4 sm:$0xff]  }
 0x294   :  { %5591 = vmatprep.subr.bf16.mxu0 %v6174_v16  ;;  %v2454_v43 = vpop.f32.mrf.mxu0  ;;  %v6258_v16 = vld [vmem:[#allocation6 + $0x564] ss:$48 sps:$4 sm:$0xff]  }
 0x296   :  { %v2456_v51 = vpop.f32.mrf.mxu0 }
 0x297   :  { %5592 = vmatpush3.bf16.msra.mxu0 %v6175_v17  ;;  %v6219_v17 = vld [vmem:[#allocation9 + $0x518] ss:$12 sps:$4 sm:$0xff]  }
 0x298   :  { %5593 = vmatprep.subr.bf16.mxu0 %v6179_v19  ;;  %v2458_v63 = vpop.f32.mrf.mxu0  ;;  %v6223_v19 = vld [vmem:[#allocation9 + $0x5c0] ss:$12 sps:$4 sm:$0xff]  }
 0x29b   :  { %5594 = vmatpush3.bf16.msra.mxu0 %v6180_v20  ;;  %v6256_v20 = vld [vmem:[#allocation6 + $0x560] ss:$48 sps:$4 sm:$0xff]  }
 0x29c   :  { %5595 = vmatprep.subr.bf16.mxu0 %v6184_v21  ;;  %v6264_v21 = vld [vmem:[#allocation6 + $0x504] ss:$48 sps:$4 sm:$0xff]  }
 0x29f   :  { %5596 = vmatpush3.bf16.msra.mxu0 %v6185_v22  ;;  %v6224_v22 = vld [vmem:[#allocation9 + $0x500] ss:$12 sps:$4 sm:$0xff]  }
 0x2a0   :  { %3897 = vmatprep.subr.bf16.mxu0 %v6212_v24  ;;  %v6228_v24 = vld [vmem:[#allocation9 + $0x5a8] ss:$12 sps:$4 sm:$0xff]  }
 0x2a2   :  { %3232 = vmatmul.mubr.bf16.vlgmr.msra.gmra.mxu0 %v2469_v4  ;;  %v6252_v4 = vld [vmem:[#allocation6 + $0x5c4] ss:$48 sps:$4 sm:$0xff]  }
 0x2a3   :  { %3898 = vmatpush1.bf16.msra.mxu0 %v6210_v25  ;;  %3929 = vmatprep.mubr.bf16.mxu0 %v6691_v54  ;;  %v6262_v25 = vld [vmem:[#allocation6 + $0x500] ss:$48 sps:$4 sm:$0xff]  }
 0x2a4   :  { %3899 = vmatprep.subr.bf16.mxu0 %v6217_v28  ;;  %v6270_v28 = vld [vmem:[#allocation6 + $0x4a4] ss:$48 sps:$4 sm:$0xff]  }
 0x2a7   :  { %3900 = vmatpush1.bf16.msra.mxu0 %v6215_v29  ;;  %v6229_v29 = vld [vmem:[#allocation9 + $0x4e8] ss:$12 sps:$4 sm:$0xff]  }
 0x2a8   :  { %3901 = vmatprep.subr.bf16.mxu0 %v6222_v30  ;;  %v6233_v30 = vld [vmem:[#allocation9 + $0x590] ss:$12 sps:$4 sm:$0xff]  }
 0x2ab   :  { %3902 = vmatpush1.bf16.msra.mxu0 %v6220_v31  ;;  %v6268_v31 = vld [vmem:[#allocation6 + $0x4a0] ss:$48 sps:$4 sm:$0xff]  }
 0x2ac   :  { %3903 = vmatprep.subr.bf16.mxu0 %v6227_v32  ;;  %v6276_v32 = vld [vmem:[#allocation6 + $0x444] ss:$48 sps:$4 sm:$0xff]  }
 0x2af   :  { %3904 = vmatpush1.bf16.msra.mxu0 %v6225_v33  ;;  %v6234_v33 = vld [vmem:[#allocation9 + $0x4d0] ss:$12 sps:$4 sm:$0xff]  }
 0x2b0   :  { %3905 = vmatprep.subr.bf16.mxu0 %v6232_v35  ;;  %v6238_v35 = vld [vmem:[#allocation9 + $0x578] ss:$12 sps:$4 sm:$0xff]  }
 0x2b3   :  { %v2409_v45 = vpop.f32.mrf.mxu1  ;;  %3906 = vmatpush1.bf16.msra.mxu0 %v6230_v40  ;;  %v6282_v40 = vld [vmem:[#allocation6 + $0x3e4] ss:$48 sps:$4 sm:$0xff]  }
 0x2b4   :  { %3907 = vmatprep.subr.bf16.mxu0 %v6237_v41  ;;  %v2410_v50 = vadd.f32 %v2409_v45, %v1800_v44  ;;  %v6239_v41 = vld [vmem:[#allocation9 + $0x4b8] ss:$12 sps:$4 sm:$0xff]   ;;  %v6244_v45 = vld [vmem:[#allocation9 + $0x4a0] ss:$12 sps:$4 sm:$0xff]  }
 0x2b5   :  { %v2411_v47 = vpop.f32.mrf.mxu1 }
 0x2b6   :  { %v2412_v49 = vadd.f32 %v2411_v47, %v1804_v42  ;;  %v2453_v39 = vadd.f32 %v2452_v36, %v2410_v50  ;;  %v6274_v36 = vld [vmem:[#allocation6 + $0x440] ss:$48 sps:$4 sm:$0xff]   ;;  %v6255_v50 = vld [vmem:[#allocation6 + $0x8c4] ss:$48 sps:$4 sm:$0xff]  }
 0x2b7   :  { %v2413_v53 = vpop.f32.mrf.mxu1  ;;  %3908 = vmatpush1.bf16.msra.mxu0 %v6235_v46  ;;  %v6248_v46 = vld [vmem:[#allocation9 + $0x548] ss:$12 sps:$4 sm:$0xff]  }
 0x2b8   :  { %v2414_v56 = vadd.f32 %v2413_v53, %v1800_v44  ;;  %3909 = vmatprep.subr.bf16.mxu0 %v6242_v48  ;;  %v2455_v60 = vadd.f32 %v2454_v43, %v2412_v49  ;;  %v2463_v7 = vmax.f32 %v2453_v39, 0.0  ;;  %v6280_v43 = vld [vmem:[#allocation6 + $0x3e0] ss:$48 sps:$4 sm:$0xff]   ;;  %v6288_v44 = vld [vmem:[#allocation6 + $0x384] ss:$48 sps:$4 sm:$0xff]  }
 0x2b9   :  { %v2415_v58 = vpop.f32.mrf.mxu1  ;;  %v6286_v47 = vld [vmem:[#allocation6 + $0x380] ss:$48 sps:$4 sm:$0xff]   ;;  %v6294_v48 = vld [vmem:[#allocation6 + $0x324] ss:$48 sps:$4 sm:$0xff]   ;;  %v6324_v53 = vld [vmem:[#allocation6 + $0x8cc] ss:$48 sps:$4 sm:$0xff]  }
 0x2ba   :  { %v2457_v61 = vadd.f32 %v2456_v51, %v2414_v56  ;;  %v2416_v62 = vadd.f32 %v2415_v58, %v1804_v42  ;;  %v2464_v5 = vmax.f32 %v2455_v60, 0.0  ;;  %v6243_v42 = vld [vmem:[#allocation9 + $0x560] ss:$12 sps:$4 sm:$0xff]   ;;  %v6249_v49 = vld [vmem:[#allocation9 + $0x488] ss:$12 sps:$4 sm:$0xff]  }
 0x2bb   :  { %3910 = vmatpush1.bf16.msra.mxu0 %v6240_v57  ;;  %v6292_v51 = vld [vmem:[#allocation6 + $0x320] ss:$48 sps:$4 sm:$0xff]   ;;  %v6261_v57 = vld [vmem:[#allocation6 + $0x864] ss:$48 sps:$4 sm:$0xff]   ;;  %v6322_v58 = vld [vmem:[#allocation6 + $0x8c8] ss:$48 sps:$4 sm:$0xff]  }
 0x2bc   :  { %v2459_v1 = vadd.f32 %v2458_v63, %v2416_v62  ;;  %v2467_v3 = vmax.f32 %v2457_v61, 0.0  ;;  %3911 = vmatprep.subr.bf16.mxu0 %v6247_v59  ;;  %v6253_v56 = vld [vmem:[#allocation6 + $0x8c0] ss:$48 sps:$4 sm:$0xff]   ;;  %v6330_v59 = vld [vmem:[#allocation6 + $0x86c] ss:$48 sps:$4 sm:$0xff]  }
 0x2bd   :  { %v6259_v60 = vld [vmem:[#allocation6 + $0x860] ss:$48 sps:$4 sm:$0xff]   ;;  %v6267_v61 = vld [vmem:[#allocation6 + $0x804] ss:$48 sps:$4 sm:$0xff]   ;;  %v6328_v62 = vld [vmem:[#allocation6 + $0x868] ss:$48 sps:$4 sm:$0xff]  }
 0x2be   :  { %v2468_v6 = vmax.f32 %v2459_v1, 0.0  ;;  %v6752_v11 = vpack.c.bf16 %v2467_v3, %v2463_v7  ;;  %v6336_v39 = vld [vmem:[#allocation6 + $0x80c] ss:$48 sps:$4 sm:$0xff]   ;;  %v6265_v63 = vld [vmem:[#allocation6 + $0x800] ss:$48 sps:$4 sm:$0xff]  }
 0x2bf   :  { %3912 = vmatpush1.bf16.msra.mxu0 %v6245_v2  ;;  %v6273_v1 = vld [vmem:[#allocation6 + $0x7a4] ss:$48 sps:$4 sm:$0xff]   ;;  %v6334_v2 = vld [vmem:[#allocation6 + $0x808] ss:$48 sps:$4 sm:$0xff]   ;;  %v6342_v3 = vld [vmem:[#allocation6 + $0x7ac] ss:$48 sps:$4 sm:$0xff]  }
 0x2c0   :  { %v2472_v9 = vpack.c.bf16 %v2468_v6, %v2464_v5  ;;  %3913 = vmatprep.subr.bf16.mxu0 %v6252_v4  ;;  %v6271_v4 = vld [vmem:[#allocation6 + $0x7a0] ss:$48 sps:$4 sm:$0xff]   ;;  %v6279_v5 = vld [vmem:[#allocation6 + $0x744] ss:$48 sps:$4 sm:$0xff]   ;;  %v6340_v6 = vld [vmem:[#allocation6 + $0x7a8] ss:$48 sps:$4 sm:$0xff]  }
 0x2c1   :  { %v6348_v7 = vld [vmem:[#allocation6 + $0x74c] ss:$48 sps:$4 sm:$0xff]  }
 0x2c2   :  { %3188 = vmatprep.mubr.bf16.mxu1 %v2472_v9 }
 0x2c3   :  { %3189 = vmatmul.mubr.bf16.vlgmr.msra.gmra.mxu1 %v6752_v11  ;;  %3914 = vmatpush2.bf16.msra.mxu0 %v6250_v15  ;;  %v6291_v15 = vld [vmem:[#allocation6 + $0x684] ss:$48 sps:$4 sm:$0xff]  }
 0x2c4   :  { %5604 = vmatpush3.bf16.msra.mxu1 %v6214_v10  ;;  %3272 = vmatprep.mubr.bf16.mxu1 %v2472_v9  ;;  %v6285_v9 = vld [vmem:[#allocation6 + $0x6e4] ss:$48 sps:$4 sm:$0xff]   ;;  %v6346_v10 = vld [vmem:[#allocation6 + $0x748] ss:$48 sps:$4 sm:$0xff]  }
 0x2c5   :  { %5605 = vmatprep.subr.bf16.mxu1 %v6218_v13  ;;  %3915 = vmatprep.subr.bf16.mxu0 %v6258_v16  ;;  %v6283_v13 = vld [vmem:[#allocation6 + $0x6e0] ss:$48 sps:$4 sm:$0xff]   ;;  %v6352_v16 = vld [vmem:[#allocation6 + $0x6e8] ss:$48 sps:$4 sm:$0xff]  }
 0x2c7   :  { %3916 = vmatpush2.bf16.msra.mxu0 %v6256_v20  ;;  %v6297_v20 = vld [vmem:[#allocation6 + $0x624] ss:$48 sps:$4 sm:$0xff]  }
 0x2c8   :  { %5606 = vmatpush3.bf16.msra.mxu1 %v6219_v17  ;;  %3917 = vmatprep.subr.bf16.mxu0 %v6264_v21  ;;  %v6360_v17 = vld [vmem:[#allocation6 + $0x68c] ss:$48 sps:$4 sm:$0xff]   ;;  %v6358_v21 = vld [vmem:[#allocation6 + $0x688] ss:$48 sps:$4 sm:$0xff]  }
 0x2c9   :  { %5607 = vmatprep.subr.bf16.mxu1 %v6223_v19  ;;  %v6289_v19 = vld [vmem:[#allocation6 + $0x680] ss:$48 sps:$4 sm:$0xff]  }
 0x2cb   :  { %3918 = vmatpush2.bf16.msra.mxu0 %v6262_v25  ;;  %v6300_v25 = vld [vmem:[#allocation6 + $0x2cc] ss:$48 sps:$4 sm:$0xff]  }
 0x2cc   :  { %5608 = vmatpush3.bf16.msra.mxu1 %v6224_v22  ;;  %3919 = vmatprep.subr.bf16.mxu0 %v6270_v28  ;;  %v6366_v22 = vld [vmem:[#allocation6 + $0x62c] ss:$48 sps:$4 sm:$0xff]   ;;  %v6364_v28 = vld [vmem:[#allocation6 + $0x628] ss:$48 sps:$4 sm:$0xff]  }
 0x2cd   :  { %5609 = vmatprep.subr.bf16.mxu1 %v6228_v24  ;;  %v6295_v24 = vld [vmem:[#allocation6 + $0x620] ss:$48 sps:$4 sm:$0xff]  }
 0x2cf   :  { %3920 = vmatpush2.bf16.msra.mxu0 %v6268_v31  ;;  %v6301_v31 = vld [vmem:[#allocation6 + $0x268] ss:$48 sps:$4 sm:$0xff]  }
 0x2d0   :  { %5610 = vmatpush3.bf16.msra.mxu1 %v6229_v29  ;;  %3921 = vmatprep.subr.bf16.mxu0 %v6276_v32  ;;  %v6298_v29 = vld [vmem:[#allocation6 + $0x2c8] ss:$48 sps:$4 sm:$0xff]   ;;  %v6306_v32 = vld [vmem:[#allocation6 + $0x20c] ss:$48 sps:$4 sm:$0xff]  }
 0x2d1   :  { %5611 = vmatprep.subr.bf16.mxu1 %v6233_v30  ;;  %v6303_v30 = vld [vmem:[#allocation6 + $0x26c] ss:$48 sps:$4 sm:$0xff]  }
 0x2d3   :  { %3922 = vmatpush2.bf16.msra.mxu0 %v6274_v36  ;;  %v6307_v36 = vld [vmem:[#allocation6 + $0x1a8] ss:$48 sps:$4 sm:$0xff]  }
 0x2d4   :  { %5612 = vmatpush3.bf16.msra.mxu1 %v6234_v33  ;;  %3923 = vmatprep.subr.bf16.mxu0 %v6282_v40  ;;  %v6304_v33 = vld [vmem:[#allocation6 + $0x208] ss:$48 sps:$4 sm:$0xff]   ;;  %v6370_v40 = vld [vmem:[#allocation9 + $0x6a8] ss:$12 sps:$4 sm:$0xff]  }
 0x2d5   :  { %5613 = vmatprep.subr.bf16.mxu1 %v6238_v35  ;;  %v6309_v35 = vld [vmem:[#allocation6 + $0x1ac] ss:$48 sps:$4 sm:$0xff]  }
 0x2d7   :  { %3924 = vmatpush2.bf16.msra.mxu0 %v6280_v43  ;;  %v6375_v43 = vld [vmem:[#allocation9 + $0x694] ss:$12 sps:$4 sm:$0xff]  }
 0x2d8   :  { %5614 = vmatpush3.bf16.msra.mxu1 %v6239_v41  ;;  %3925 = vmatprep.subr.bf16.mxu0 %v6288_v44  ;;  %v6372_v41 = vld [vmem:[#allocation9 + $0x6ac] ss:$12 sps:$4 sm:$0xff]   ;;  %v6373_v44 = vld [vmem:[#allocation9 + $0x690] ss:$12 sps:$4 sm:$0xff]  }
 0x2d9   :  { %5615 = vmatprep.subr.bf16.mxu1 %v6243_v42  ;;  %v6312_v42 = vld [vmem:[#allocation6 + $0x14c] ss:$48 sps:$4 sm:$0xff]  }
 0x2db   :  { %3926 = vmatpush2.bf16.msra.mxu0 %v6286_v47  ;;  %v6313_v47 = vld [vmem:[#allocation6 + $0xe8] ss:$48 sps:$4 sm:$0xff]  }
 0x2dc   :  { %5616 = vmatpush3.bf16.msra.mxu1 %v6244_v45  ;;  %3927 = vmatprep.subr.bf16.mxu0 %v6294_v48  ;;  %v6378_v45 = vld [vmem:[#allocation9 + $0x67c] ss:$12 sps:$4 sm:$0xff]   ;;  %v6381_v48 = vld [vmem:[#allocation9 + $0x664] ss:$12 sps:$4 sm:$0xff]  }
 0x2dd   :  { %5617 = vmatprep.subr.bf16.mxu1 %v6248_v46  ;;  %v6376_v46 = vld [vmem:[#allocation9 + $0x678] ss:$12 sps:$4 sm:$0xff]  }
 0x2df   :  { %3928 = vmatpush2.bf16.msra.mxu0 %v6292_v51  ;;  %v6316_v51 = vld [vmem:[#allocation6 + $0x88] ss:$48 sps:$4 sm:$0xff]  }
 0x2e0   :  { %5618 = vmatpush3.bf16.msra.mxu1 %v6249_v49  ;;  %4026 = vmatprep.subr.bf16.mxu0 %v6324_v53  ;;  %v6318_v49 = vld [vmem:[#allocation6 + $0x8c] ss:$48 sps:$4 sm:$0xff]   ;;  %v6384_v53 = vld [vmem:[#allocation9 + $0x64c] ss:$12 sps:$4 sm:$0xff]  }
 0x2e1   :  { %3940 = vmatprep.subr.bf16.mxu1 %v6255_v50  ;;  %v6379_v50 = vld [vmem:[#allocation9 + $0x660] ss:$12 sps:$4 sm:$0xff]  }
 0x2e2   :  { %3930 = vmatmul.mubr.bf16.vlgmr.msra.gmra.mxu0 %v6695_v12 }
 0x2e3   :  { %3273 = vmatmul.mubr.bf16.vlgmr.msra.gmra.mxu1 %v6752_v11  ;;  %4027 = vmatpush1.bf16.msra.mxu0 %v6322_v58  ;;  %v6354_v11 = vld [vmem:[#allocation6 + $0x6ec] ss:$48 sps:$4 sm:$0xff]   ;;  %v6319_v58 = vld [vmem:[#allocation6 + $0x28] ss:$48 sps:$4 sm:$0xff]  }
 0x2e4   :  { %3941 = vmatpush1.bf16.msra.mxu1 %v6253_v56  ;;  %3972 = vmatprep.mubr.bf16.mxu1 %v6637_v0  ;;  %v6321_v56 = vld [vmem:[#allocation6 + $0x2c] ss:$48 sps:$4 sm:$0xff]  }
 0x2e5   :  { %3942 = vmatprep.subr.bf16.mxu1 %v6261_v57  ;;  %4058 = vmatprep.mubr.bf16.mxu0 %v6637_v0  ;;  %v6277_v0 = vld [vmem:[#allocation6 + $0x740] ss:$48 sps:$4 sm:$0xff]  }
 0x2e6   :  { %4028 = vmatprep.subr.bf16.mxu0 %v6330_v59  ;;  %v6382_v57 = vld [vmem:[#allocation9 + $0x648] ss:$12 sps:$4 sm:$0xff]   ;;  %v6327_v59 = vld [vmem:[#allocation6 + $0x5cc] ss:$48 sps:$4 sm:$0xff]  }
 0x2e7   :  { %4029 = vmatpush1.bf16.msra.mxu0 %v6328_v62  ;;  %v6387_v62 = vld [vmem:[#allocation9 + $0x634] ss:$12 sps:$4 sm:$0xff]  }
 0x2e8   :  { %3943 = vmatpush1.bf16.msra.mxu1 %v6259_v60  ;;  %4030 = vmatprep.subr.bf16.mxu0 %v6336_v39  ;;  %v6325_v60 = vld [vmem:[#allocation6 + $0x5c8] ss:$48 sps:$4 sm:$0xff]  }
 0x2e9   :  { %3944 = vmatprep.subr.bf16.mxu1 %v6267_v61  ;;  %v6333_v61 = vld [vmem:[#allocation6 + $0x56c] ss:$48 sps:$4 sm:$0xff]  }
 0x2ea   :  { %v6385_v39 = vld [vmem:[#allocation9 + $0x630] ss:$12 sps:$4 sm:$0xff]  }
 0x2eb   :  { %4031 = vmatpush1.bf16.msra.mxu0 %v6334_v2  ;;  %v6390_v2 = vld [vmem:[#allocation9 + $0x61c] ss:$12 sps:$4 sm:$0xff]  }
 0x2ec   :  { %3945 = vmatpush1.bf16.msra.mxu1 %v6265_v63  ;;  %4032 = vmatprep.subr.bf16.mxu0 %v6342_v3  ;;  %v6331_v63 = vld [vmem:[#allocation6 + $0x568] ss:$48 sps:$4 sm:$0xff]   ;;  %v6388_v3 = vld [vmem:[#allocation9 + $0x618] ss:$12 sps:$4 sm:$0xff]  }
 0x2ed   :  { %3946 = vmatprep.subr.bf16.mxu1 %v6273_v1  ;;  %v6339_v1 = vld [vmem:[#allocation6 + $0x50c] ss:$48 sps:$4 sm:$0xff]  }
 0x2ef   :  { %4033 = vmatpush1.bf16.msra.mxu0 %v6340_v6  ;;  %v6393_v6 = vld [vmem:[#allocation9 + $0x604] ss:$12 sps:$4 sm:$0xff]  }
 0x2f0   :  { %3947 = vmatpush1.bf16.msra.mxu1 %v6271_v4  ;;  %4034 = vmatprep.subr.bf16.mxu0 %v6348_v7  ;;  %v6337_v4 = vld [vmem:[#allocation6 + $0x508] ss:$48 sps:$4 sm:$0xff]  }
 0x2f1   :  { %3948 = vmatprep.subr.bf16.mxu1 %v6279_v5  ;;  %v6345_v5 = vld [vmem:[#allocation6 + $0x4ac] ss:$48 sps:$4 sm:$0xff]  }
 0x2f2   :  { %v6391_v7 = vld [vmem:[#allocation9 + $0x600] ss:$12 sps:$4 sm:$0xff]  }
 0x2f3   :  { %4035 = vmatpush1.bf16.msra.mxu0 %v6346_v10  ;;  %v6394_v10 = vld [vmem:[#allocation9 + $0x768] ss:$12 sps:$4 sm:$0xff]  }
 0x2f4   :  { %3949 = vmatpush1.bf16.msra.mxu1 %v6277_v0  ;;  %4036 = vmatprep.subr.bf16.mxu0 %v6354_v11  ;;  %v6343_v0 = vld [vmem:[#allocation6 + $0x4a8] ss:$48 sps:$4 sm:$0xff]  }
 0x2f5   :  { %3950 = vmatprep.subr.bf16.mxu1 %v6285_v9  ;;  %v6351_v9 = vld [vmem:[#allocation6 + $0x44c] ss:$48 sps:$4 sm:$0xff]   ;;  %v6396_v11 = vld [vmem:[#allocation9 + $0x76c] ss:$12 sps:$4 sm:$0xff]  }
 0x2f7   :  { %4037 = vmatpush1.bf16.msra.mxu0 %v6352_v16  ;;  %v6357_v16 = vld [vmem:[#allocation6 + $0x3ec] ss:$48 sps:$4 sm:$0xff]  }
 0x2f8   :  { %3951 = vmatpush1.bf16.msra.mxu1 %v6283_v13  ;;  %4038 = vmatprep.subr.bf16.mxu0 %v6360_v17  ;;  %v6399_v13 = vld [vmem:[#allocation9 + $0x754] ss:$12 sps:$4 sm:$0xff]   ;;  %v6397_v17 = vld [vmem:[#allocation9 + $0x750] ss:$12 sps:$4 sm:$0xff]  }
 0x2f9   :  { %3952 = vmatprep.subr.bf16.mxu1 %v6291_v15  ;;  %v6349_v15 = vld [vmem:[#allocation6 + $0x448] ss:$48 sps:$4 sm:$0xff]  }
 0x2fb   :  { %4039 = vmatpush1.bf16.msra.mxu0 %v6358_v21  ;;  %v6363_v21 = vld [vmem:[#allocation6 + $0x38c] ss:$48 sps:$4 sm:$0xff]  }
 0x2fc   :  { %3953 = vmatpush1.bf16.msra.mxu1 %v6289_v19  ;;  %4040 = vmatprep.subr.bf16.mxu0 %v6366_v22  ;;  %v6402_v19 = vld [vmem:[#allocation9 + $0x73c] ss:$12 sps:$4 sm:$0xff]   ;;  %v6400_v22 = vld [vmem:[#allocation9 + $0x738] ss:$12 sps:$4 sm:$0xff]  }
 0x2fd   :  { %3954 = vmatprep.subr.bf16.mxu1 %v6297_v20  ;;  %v6355_v20 = vld [vmem:[#allocation6 + $0x3e8] ss:$48 sps:$4 sm:$0xff]  }
 0x2ff   :  { %4041 = vmatpush1.bf16.msra.mxu0 %v6364_v28  ;;  %v6369_v28 = vld [vmem:[#allocation6 + $0x32c] ss:$48 sps:$4 sm:$0xff]  }
 0x300   :  { %3955 = vmatpush1.bf16.msra.mxu1 %v6295_v24  ;;  %4721 = vmatprep.subr.bf16.mxu0 %v6372_v41  ;;  %v6405_v24 = vld [vmem:[#allocation9 + $0x724] ss:$12 sps:$4 sm:$0xff]  }
 0x301   :  { %3983 = vmatprep.subr.bf16.mxu1 %v6300_v25  ;;  %v6361_v25 = vld [vmem:[#allocation6 + $0x388] ss:$48 sps:$4 sm:$0xff]   ;;  %v6417_v41 = vld [vmem:[#allocation9 + $0x6c4] ss:$12 sps:$4 sm:$0xff]  }
 0x302   :  { %4059 = vmatmul.mubr.bf16.vlgmr.msra.gmra.mxu0 %v6688_v37 }
 0x303   :  { %3973 = vmatmul.mubr.bf16.vlgmr.msra.gmra.mxu1 %v6688_v37  ;;  %4722 = vmatpush1.bf16.msra.mxu0 %v6370_v40  ;;  %v6315_v37 = vld [vmem:[#allocation6 + $0xec] ss:$48 sps:$4 sm:$0xff]   ;;  %v6412_v40 = vld [vmem:[#allocation9 + $0x6d8] ss:$12 sps:$4 sm:$0xff]  }
 0x304   :  { %3984 = vmatpush1.bf16.msra.mxu1 %v6298_v29  ;;  %4015 = vmatprep.mubr.bf16.mxu1 %v6691_v54  ;;  %v6310_v54 = vld [vmem:[#allocation6 + $0x148] ss:$48 sps:$4 sm:$0xff]  }
 0x305   :  { %3985 = vmatprep.subr.bf16.mxu1 %v6303_v30  ;;  %4723 = vmatprep.subr.bf16.mxu0 %v6375_v43  ;;  %v6403_v29 = vld [vmem:[#allocation9 + $0x720] ss:$12 sps:$4 sm:$0xff]   ;;  %v6418_v43 = vld [vmem:[#allocation9 + $0x770] ss:$12 sps:$4 sm:$0xff]  }
 0x306   :  { %v6408_v30 = vld [vmem:[#allocation9 + $0x70c] ss:$12 sps:$4 sm:$0xff]  }
 0x307   :  { %4724 = vmatpush1.bf16.msra.mxu0 %v6373_v44  ;;  %v6422_v44 = vld [vmem:[#allocation9 + $0x82c] ss:$12 sps:$4 sm:$0xff]  }
 0x308   :  { %3986 = vmatpush1.bf16.msra.mxu1 %v6301_v31  ;;  %4725 = vmatprep.subr.bf16.mxu0 %v6378_v45  ;;  %v6367_v31 = vld [vmem:[#allocation6 + $0x328] ss:$48 sps:$4 sm:$0xff]  }
 0x309   :  { %3987 = vmatprep.subr.bf16.mxu1 %v6306_v32  ;;  %v6406_v32 = vld [vmem:[#allocation9 + $0x708] ss:$12 sps:$4 sm:$0xff]  }
 0x30b   :  { %4726 = vmatpush1.bf16.msra.mxu0 %v6376_v46 }
 0x30c   :  { %3988 = vmatpush1.bf16.msra.mxu1 %v6304_v33  ;;  %4727 = vmatprep.subr.bf16.mxu0 %v6381_v48  ;;  %v6411_v33 = vld [vmem:[#allocation9 + $0x6f4] ss:$12 sps:$4 sm:$0xff]   ;;  %v6430_v48 = vld [vmem:[#allocation9 + $0x7f8] ss:$12 sps:$4 sm:$0xff]  }
 0x30d   :  { %3989 = vmatprep.subr.bf16.mxu1 %v6309_v35  ;;  %v6409_v35 = vld [vmem:[#allocation9 + $0x6f0] ss:$12 sps:$4 sm:$0xff]  }
 0x30f   :  { %4728 = vmatpush1.bf16.msra.mxu0 %v6379_v50  ;;  %v6437_v50 = vld [vmem:[#allocation9 + $0x7e4] ss:$12 sps:$4 sm:$0xff]  }
 0x310   :  { %3990 = vmatpush1.bf16.msra.mxu1 %v6307_v36  ;;  %4729 = vmatprep.subr.bf16.mxu0 %v6384_v53  ;;  %v6414_v36 = vld [vmem:[#allocation9 + $0x6dc] ss:$12 sps:$4 sm:$0xff]  }
 0x311   :  { %3991 = vmatprep.subr.bf16.mxu1 %v6312_v42  ;;  %v6415_v42 = vld [vmem:[#allocation9 + $0x6c0] ss:$12 sps:$4 sm:$0xff]  }
 0x313   :  { %4730 = vmatpush1.bf16.msra.mxu0 %v6382_v57  ;;  %v6440_v57 = vld [vmem:[#allocation9 + $0x7c8] ss:$12 sps:$4 sm:$0xff]  }
 0x314   :  { %3992 = vmatpush1.bf16.msra.mxu1 %v6310_v54  ;;  %4731 = vmatprep.subr.bf16.mxu0 %v6387_v62  ;;  %v6420_v54 = vld [vmem:[#allocation9 + $0x828] ss:$12 sps:$4 sm:$0xff]   ;;  %v6445_v62 = vld [vmem:[#allocation9 + $0x7b0] ss:$12 sps:$4 sm:$0xff]  }
 0x315   :  { %3993 = vmatprep.subr.bf16.mxu1 %v6315_v37  ;;  %v6427_v37 = vld [vmem:[#allocation9 + $0x814] ss:$12 sps:$4 sm:$0xff]  }
 0x317   :  { %4732 = vmatpush1.bf16.msra.mxu0 %v6385_v39 }
 0x318   :  { %3994 = vmatpush1.bf16.msra.mxu1 %v6313_v47  ;;  %4733 = vmatprep.subr.bf16.mxu0 %v6390_v2  ;;  %v6432_v47 = vld [vmem:[#allocation9 + $0x7fc] ss:$12 sps:$4 sm:$0xff]  }
 0x319   :  { %3995 = vmatprep.subr.bf16.mxu1 %v6318_v49 }
 0x31b   :  { %4734 = vmatpush1.bf16.msra.mxu0 %v6388_v3  ;;  %v6450_v3 = vld [vmem:[#allocation9 + $0x798] ss:$12 sps:$4 sm:$0xff]  }
 0x31c   :  { %3996 = vmatpush1.bf16.msra.mxu1 %v6316_v51  ;;  %4735 = vmatprep.subr.bf16.mxu0 %v6393_v6  ;;  %v6435_v51 = vld [vmem:[#allocation9 + $0x7e0] ss:$12 sps:$4 sm:$0xff]   ;;  %v6458_v6 = vld [vmem:[#allocation9 + $0x8e8] ss:$12 sps:$4 sm:$0xff]  }
 0x31d   :  { %3997 = vmatprep.subr.bf16.mxu1 %v6321_v56  ;;  %v6442_v56 = vld [vmem:[#allocation9 + $0x7cc] ss:$12 sps:$4 sm:$0xff]  }
 0x31f   :  { %4736 = vmatpush1.bf16.msra.mxu0 %v6391_v7  ;;  %v6460_v7 = vld [vmem:[#allocation9 + $0x8ec] ss:$12 sps:$4 sm:$0xff]  }
 0x320   :  { %3998 = vmatpush1.bf16.msra.mxu1 %v6319_v58  ;;  %4737 = vmatprep.subr.bf16.mxu0 %v6396_v11  ;;  %v6464_v11 = vld [vmem:[#allocation9 + $0x8b8] ss:$12 sps:$4 sm:$0xff]  }
 0x321   :  { %3999 = vmatprep.subr.bf16.mxu1 %v6327_v59 }
 0x323   :  { %4738 = vmatpush2.bf16.msra.mxu0 %v6394_v10  ;;  %v6466_v10 = vld [vmem:[#allocation9 + $0x8bc] ss:$12 sps:$4 sm:$0xff]  }
 0x324   :  { %4000 = vmatpush2.bf16.msra.mxu1 %v6325_v60  ;;  %4739 = vmatprep.subr.bf16.mxu0 %v6399_v13  ;;  %v6447_v60 = vld [vmem:[#allocation9 + $0x7b4] ss:$12 sps:$4 sm:$0xff]   ;;  %v6469_v13 = vld [vmem:[#allocation9 + $0x8a4] ss:$12 sps:$4 sm:$0xff]  }
 0x325   :  { %4001 = vmatprep.subr.bf16.mxu1 %v6333_v61 }
 0x327   :  { %4740 = vmatpush2.bf16.msra.mxu0 %v6397_v17  ;;  %v6470_v17 = vld [vmem:[#allocation9 + $0x888] ss:$12 sps:$4 sm:$0xff]  }
 0x328   :  { %4002 = vmatpush2.bf16.msra.mxu1 %v6331_v63  ;;  %4741 = vmatprep.subr.bf16.mxu0 %v6402_v19 }
 0x329   :  { %4003 = vmatprep.subr.bf16.mxu1 %v6339_v1  ;;  %v6452_v1 = vld [vmem:[#allocation9 + $0x79c] ss:$12 sps:$4 sm:$0xff]  }
 0x32b   :  { %4742 = vmatpush2.bf16.msra.mxu0 %v6400_v22  ;;  %v6475_v22 = vld [vmem:[#allocation9 + $0x874] ss:$12 sps:$4 sm:$0xff]  }
 0x32c   :  { %4004 = vmatpush2.bf16.msra.mxu1 %v6337_v4  ;;  %4743 = vmatprep.subr.bf16.mxu0 %v6405_v24  ;;  %v6457_v4 = vld [vmem:[#allocation9 + $0x784] ss:$12 sps:$4 sm:$0xff]  }
 0x32d   :  { %4005 = vmatprep.subr.bf16.mxu1 %v6345_v5  ;;  %v6455_v5 = vld [vmem:[#allocation9 + $0x780] ss:$12 sps:$4 sm:$0xff]  }
 0x32f   :  { %4744 = vmatpush2.bf16.msra.mxu0 %v6403_v29 }
 0x330   :  { %4006 = vmatpush2.bf16.msra.mxu1 %v6343_v0  ;;  %4745 = vmatprep.subr.bf16.mxu0 %v6408_v30  ;;  %v6463_v0 = vld [vmem:[#allocation9 + $0x8d4] ss:$12 sps:$4 sm:$0xff]  }
 0x331   :  { %4007 = vmatprep.subr.bf16.mxu1 %v6351_v9  ;;  %v6461_v9 = vld [vmem:[#allocation9 + $0x8d0] ss:$12 sps:$4 sm:$0xff]  }
 0x333   :  { %4746 = vmatpush2.bf16.msra.mxu0 %v6406_v32 }
 0x334   :  { %4008 = vmatpush2.bf16.msra.mxu1 %v6349_v15  ;;  %4747 = vmatprep.subr.bf16.mxu0 %v6411_v33  ;;  %v6467_v15 = vld [vmem:[#allocation9 + $0x8a0] ss:$12 sps:$4 sm:$0xff]   ;;  %v6478_v33 = vld [vmem:[#allocation9 + $0x85c] ss:$12 sps:$4 sm:$0xff]  }
 0x335   :  { %4009 = vmatprep.subr.bf16.mxu1 %v6357_v16  ;;  %v6472_v16 = vld [vmem:[#allocation9 + $0x88c] ss:$12 sps:$4 sm:$0xff]  }
 0x337   :  { %4748 = vmatpush2.bf16.msra.mxu0 %v6409_v35 }
 0x338   :  { %4010 = vmatpush2.bf16.msra.mxu1 %v6355_v20  ;;  %4749 = vmatprep.subr.bf16.mxu0 %v6414_v36 }
 0x339   :  { %4011 = vmatprep.subr.bf16.mxu1 %v6363_v21 }
 0x33b   :  { %4750 = vmatpush2.bf16.msra.mxu0 %v6412_v40  ;;  %v6476_v40 = vld [vmem:[#allocation9 + $0x858] ss:$12 sps:$4 sm:$0xff]  }
 0x33c   :  { %4012 = vmatpush2.bf16.msra.mxu1 %v6361_v25  ;;  %4751 = vmatprep.subr.bf16.mxu0 %v6417_v41  ;;  %v6481_v41 = vld [vmem:[#allocation9 + $0x844] ss:$12 sps:$4 sm:$0xff]  }
 0x33d   :  { %4013 = vmatprep.subr.bf16.mxu1 %v6369_v28  ;;  %v6473_v28 = vld [vmem:[#allocation9 + $0x870] ss:$12 sps:$4 sm:$0xff]  }
 0x33f   :  { %4752 = vmatpush2.bf16.msra.mxu0 %v6415_v42  ;;  %v6479_v42 = vld [vmem:[#allocation9 + $0x840] ss:$12 sps:$4 sm:$0xff]  }
 0x340   :  { %4014 = vmatpush2.bf16.msra.mxu1 %v6367_v31  ;;  %5625 = vmatprep.subr.bf16.mxu0 %v6418_v43 }
 0x341   :  { %4764 = vmatprep.subr.bf16.mxu1 %v6422_v44 }
 0x342   :  { %v3147_v45 = vpop.f32.mrf.mxu0 }
 0x343   :  { %4016 = vmatmul.mubr.bf16.vlgmr.msra.gmra.mxu1 %v6695_v12  ;;  %v6425_v12 = vld [vmem:[#allocation9 + $0x810] ss:$12 sps:$4 sm:$0xff]  }
 0x344   :  { %4765 = vmatpush1.bf16.msra.mxu1 %v6420_v54  ;;  %v3149_v46 = vpop.f32.mrf.mxu0 }
 0x345   :  { %4766 = vmatprep.subr.bf16.mxu1 %v6427_v37 }
 0x346   :  { %v3151_v49 = vpop.f32.mrf.mxu0 }
 0x348   :  { %4767 = vmatpush1.bf16.msra.mxu1 %v6425_v12  ;;  %v3153_v53 = vpop.f32.mrf.mxu0 }
 0x349   :  { %4768 = vmatprep.subr.bf16.mxu1 %v6432_v47 }
 0x34c   :  { %4769 = vmatpush1.bf16.msra.mxu1 %v6430_v48 }
 0x34d   :  { %4770 = vmatprep.subr.bf16.mxu1 %v6437_v50  ;;  %v3395_v50 = vld [vmem:[#allocation8 + $0x8] sm:$0xf] }
 0x350   :  { %4771 = vmatpush1.bf16.msra.mxu1 %v6435_v51 }
 0x351   :  { %4772 = vmatprep.subr.bf16.mxu1 %v6442_v56  ;;  %v3400_v56 = vrot.slane %v3395_v50, %v6703_v55 }
 0x354   :  { %4773 = vmatpush1.bf16.msra.mxu1 %v6440_v57 }
 0x355   :  { %4774 = vmatprep.subr.bf16.mxu1 %v6447_v60 }
 0x358   :  { %4775 = vmatpush1.bf16.msra.mxu1 %v6445_v62 }
 0x359   :  { %4776 = vmatprep.subr.bf16.mxu1 %v6452_v1 }
 0x35c   :  { %4777 = vmatpush1.bf16.msra.mxu1 %v6450_v3 }
 0x35d   :  { %4778 = vmatprep.subr.bf16.mxu1 %v6457_v4 }
 0x360   :  { %4779 = vmatpush1.bf16.msra.mxu1 %v6455_v5 }
 0x361   :  { %4780 = vmatprep.subr.bf16.mxu1 %v6460_v7 }
 0x362   :  { %v5597_v58 = vpop.f32.mrf.mxu0 }
 0x364   :  { %v5598_v59 = vpop.f32.mrf.mxu0  ;;  %4781 = vmatpush2.bf16.msra.mxu1 %v6458_v6 }
 0x365   :  { %v6763_v61 = vadd.f32 %v5598_v59, %v5597_v58  ;;  %4782 = vmatprep.subr.bf16.mxu1 %v6463_v0 }
 0x366   :  { %v5600_v39 = vpop.f32.mrf.mxu0 }
 0x368   :  { %v5601_v63 = vpop.f32.mrf.mxu0  ;;  %4783 = vmatpush2.bf16.msra.mxu1 %v6461_v9  ;;  %v6419_v9 = vld [vmem:[#allocation9 + $0x6b0] ss:$12 sps:$4 sm:$0xff]  }
 0x369   :  { %v5602_v2 = vadd.f32 %v5601_v63, %v5600_v39  ;;  %4784 = vmatprep.subr.bf16.mxu1 %v6466_v10 }
 0x36c   :  { %4785 = vmatpush2.bf16.msra.mxu1 %v6464_v11  ;;  %v6423_v11 = vld [vmem:[#allocation9 + $0x758] ss:$12 sps:$4 sm:$0xff]  }
 0x36d   :  { %4786 = vmatprep.subr.bf16.mxu1 %v6469_v13  ;;  %v6424_v13 = vld [vmem:[#allocation9 + $0x698] ss:$12 sps:$4 sm:$0xff]  }
 0x370   :  { %4787 = vmatpush2.bf16.msra.mxu1 %v6467_v15  ;;  %v6428_v15 = vld [vmem:[#allocation9 + $0x740] ss:$12 sps:$4 sm:$0xff]  }
 0x371   :  { %4788 = vmatprep.subr.bf16.mxu1 %v6472_v16  ;;  %v6429_v16 = vld [vmem:[#allocation9 + $0x680] ss:$12 sps:$4 sm:$0xff]  }
 0x374   :  { %4789 = vmatpush2.bf16.msra.mxu1 %v6470_v17  ;;  %v6433_v17 = vld [vmem:[#allocation9 + $0x728] ss:$12 sps:$4 sm:$0xff]  }
 0x375   :  { %4790 = vmatprep.subr.bf16.mxu1 %v6475_v22  ;;  %v6443_v22 = vld [vmem:[#allocation9 + $0x6f8] ss:$12 sps:$4 sm:$0xff]  }
 0x378   :  { %4791 = vmatpush2.bf16.msra.mxu1 %v6473_v28  ;;  %v6448_v28 = vld [vmem:[#allocation9 + $0x6e0] ss:$12 sps:$4 sm:$0xff]  }
 0x379   :  { %4792 = vmatprep.subr.bf16.mxu1 %v6478_v33 }
 0x37c   :  { %4793 = vmatpush2.bf16.msra.mxu1 %v6476_v40 }
 0x37d   :  { %4794 = vmatprep.subr.bf16.mxu1 %v6481_v41  ;;  %v3408_v41 = vrot.slane %v3395_v50, %v6712_v27 }
 0x380   :  { %4795 = vmatpush2.bf16.msra.mxu1 %v6479_v42 }
 0x383   :  { %v3190_v19 = vpop.f32.mrf.mxu1 }
 0x384   :  { %v3191_v20 = vadd.f32 %v3190_v19, %v3147_v45  ;;  %v6434_v19 = vld [vmem:[#allocation9 + $0x668] ss:$12 sps:$4 sm:$0xff]  }
 0x385   :  { %v3192_v21 = vpop.f32.mrf.mxu1 }
 0x386   :  { %v6766_v24 = vadd.f32 %v3191_v20, %v6729_v8  ;;  %v3193_v25 = vadd.f32 %v3192_v21, %v3149_v46  ;;  %v6438_v20 = vld [vmem:[#allocation9 + $0x710] ss:$12 sps:$4 sm:$0xff]  }
 0x387   :  { %v3194_v29 = vpop.f32.mrf.mxu1  ;;  %v6439_v21 = vld [vmem:[#allocation9 + $0x650] ss:$12 sps:$4 sm:$0xff]  }
 0x388   :  { %v6769_v30 = vadd.f32 %v3193_v25, %v6731_v14  ;;  %v3195_v31 = vadd.f32 %v3194_v29, %v3151_v49  ;;  %v6482_v14 = vld [vmem:[#allocation9 + $0x8f0] ss:$12 sps:$4 sm:$0xff]   ;;  %v6444_v25 = vld [vmem:[#allocation9 + $0x638] ss:$12 sps:$4 sm:$0xff]   ;;  %v6449_v29 = vld [vmem:[#allocation9 + $0x620] ss:$12 sps:$4 sm:$0xff]  }
 0x389   :  { %v3196_v32 = vpop.f32.mrf.mxu1  ;;  %5647 = vmatprep.subr.bf16.mxu1 %v6482_v14 }
 0x38a   :  { %v6772_v35 = vadd.f32 %v3195_v31, %v6733_v18  ;;  %v3197_v36 = vadd.f32 %v3196_v32, %v3153_v53  ;;  %v3404_v53 = vrot.slane %v3395_v50, %v6701_v52  ;;  %v6453_v31 = vld [vmem:[#allocation9 + $0x6c8] ss:$12 sps:$4 sm:$0xff]  }
 0x38b   :  { %v6454_v32 = vld [vmem:[#allocation9 + $0x608] ss:$12 sps:$4 sm:$0xff]  }
 0x38c   :  { %v6775_v8 = vadd.f32 %v3197_v36, %v6735_v23  ;;  %v3412_v36 = vrot.slane %v3395_v50, %v6710_v26  ;;  %v6483_v50 = vld [vmem:[#allocation9 + $0x830] ss:$12 sps:$4 sm:$0xff]  }
 0x3a2   :  { %v3931_v48 = vpop.f32.mrf.mxu0 }
 0x3a3   :  { %v5619_v43 = vpop.f32.mrf.mxu1 }
 0x3a4   :  { %v3933_v49 = vpop.f32.mrf.mxu0 }
 0x3a5   :  { %v5620_v44 = vpop.f32.mrf.mxu1  ;;  %v3934_v59 = vadd.f32 %v3933_v49, %v3404_v53 }
 0x3a6   :  { %v5621_v54 = vadd.f32 %v5620_v44, %v5619_v43  ;;  %v3935_v51 = vpop.f32.mrf.mxu0 }
 0x3a7   :  { %v5622_v45 = vpop.f32.mrf.mxu1  ;;  %v3936_v60 = vadd.f32 %v3935_v51, %v3400_v56 }
 0x3a8   :  { %v3275_v18 = vadd.f32 %v5621_v54, %v6763_v61  ;;  %v3937_v58 = vpop.f32.mrf.mxu0  ;;  %v3932_v61 = vadd.f32 %v3931_v48, %v3400_v56 }
 0x3a9   :  { %v5623_v37 = vpop.f32.mrf.mxu1  ;;  %v3938_v62 = vadd.f32 %v3937_v58, %v3404_v53 }
 0x3aa   :  { %v6779_v12 = vadd.f32 %v3275_v18, %v6737_v34  ;;  %v5624_v46 = vadd.f32 %v5623_v37, %v5622_v45 }
 0x3ac   :  { %v3278_v23 = vadd.f32 %v5624_v46, %v5602_v2 }
 0x3ae   :  { %v6782_v47 = vadd.f32 %v3278_v23, %v6739_v38 }
 0x3c2   :  { %v4060_v33 = vpop.f32.mrf.mxu0 }
 0x3c3   :  { %v3974_v57 = vpop.f32.mrf.mxu1 }
 0x3c4   :  { %v3975_v38 = vadd.f32 %v3974_v57, %v3932_v61  ;;  %v4062_v40 = vpop.f32.mrf.mxu0  ;;  %v6484_v61 = vld [vmem:[#allocation9 + $0x8d8] ss:$12 sps:$4 sm:$0xff]  }
 0x3c5   :  { %v3976_v34 = vpop.f32.mrf.mxu1 }
 0x3c6   :  { %v3977_v63 = vadd.f32 %v3976_v34, %v3934_v59  ;;  %v4069_v7 = vmax.f32 %v3975_v38, 0.0  ;;  %v4064_v54 = vpop.f32.mrf.mxu0  ;;  %v6485_v34 = vld [vmem:[#allocation9 + $0x818] ss:$12 sps:$4 sm:$0xff]   ;;  %v6490_v38 = vld [vmem:[#allocation9 + $0x890] ss:$12 sps:$4 sm:$0xff]  }
 0x3c7   :  { %v3978_v39 = vpop.f32.mrf.mxu1 }
 0x3c8   :  { %v3979_v1 = vadd.f32 %v3978_v39, %v3936_v60  ;;  %v4070_v5 = vmax.f32 %v3977_v63, 0.0  ;;  %v4066_v51 = vpop.f32.mrf.mxu0  ;;  %v6487_v39 = vld [vmem:[#allocation9 + $0x800] ss:$12 sps:$4 sm:$0xff]   ;;  %v6488_v63 = vld [vmem:[#allocation9 + $0x8a8] ss:$12 sps:$4 sm:$0xff]  }
 0x3c9   :  { %v3980_v2 = vpop.f32.mrf.mxu1 }
 0x3ca   :  { %v3981_v3 = vadd.f32 %v3980_v2, %v3938_v62  ;;  %v4073_v4 = vmax.f32 %v3979_v1, 0.0  ;;  %v6486_v62 = vld [vmem:[#allocation9 + $0x8c0] ss:$12 sps:$4 sm:$0xff]   ;;  %v6489_v1 = vld [vmem:[#allocation9 + $0x7e8] ss:$12 sps:$4 sm:$0xff]  }
 0x3cb   :  { %v6491_v2 = vld [vmem:[#allocation9 + $0x7d0] ss:$12 sps:$4 sm:$0xff]  }
 0x3cc   :  { %v4074_v6 = vmax.f32 %v3981_v3, 0.0  ;;  %v4077_v10 = vpack.c.bf16 %v4073_v4, %v4069_v7  ;;  %v6492_v3 = vld [vmem:[#allocation9 + $0x878] ss:$12 sps:$4 sm:$0xff]   ;;  %v6496_v7 = vld [vmem:[#allocation9 + $0x848] ss:$12 sps:$4 sm:$0xff]  }
 0x3cd   :  { %v6493_v4 = vld [vmem:[#allocation9 + $0x7b8] ss:$12 sps:$4 sm:$0xff]  }
 0x3ce   :  { %v4078_v0 = vpack.c.bf16 %v4074_v6, %v4070_v5  ;;  %v6494_v5 = vld [vmem:[#allocation9 + $0x860] ss:$12 sps:$4 sm:$0xff]  }
 0x3cf   :  { %v6495_v6 = vld [vmem:[#allocation9 + $0x7a0] ss:$12 sps:$4 sm:$0xff]  }
 0x3d0   :  { %4753 = vmatprep.mubr.bf16.mxu0 %v4078_v0 }
 0x3d1   :  { %4754 = vmatmul.mubr.bf16.vlgmr.msra.gmra.mxu0 %v4077_v10 }
 0x3d2   :  { %5626 = vmatpush3.bf16.msra.mxu0 %v6419_v9  ;;  %4839 = vmatprep.mubr.bf16.mxu0 %v4078_v0  ;;  %v6497_v0 = vld [vmem:[#allocation9 + $0x788] ss:$12 sps:$4 sm:$0xff]  }
 0x3d3   :  { %5627 = vmatprep.subr.bf16.mxu0 %v6423_v11  ;;  %v4913_v11 = vld [vmem:[#allocation11] sm:$0x7] }
 0x3d6   :  { %5628 = vmatpush3.bf16.msra.mxu0 %v6424_v13 }
 0x3d7   :  { %5629 = vmatprep.subr.bf16.mxu0 %v6428_v15 }
 0x3da   :  { %5630 = vmatpush3.bf16.msra.mxu0 %v6429_v16  ;;  %v4918_v16 = vrot.slane %v4913_v11, %v6703_v55 }
 0x3db   :  { %5631 = vmatprep.subr.bf16.mxu0 %v6433_v17 }
 0x3de   :  { %5632 = vmatpush3.bf16.msra.mxu0 %v6434_v19 }
 0x3df   :  { %5633 = vmatprep.subr.bf16.mxu0 %v6438_v20 }
 0x3e2   :  { %5634 = vmatpush3.bf16.msra.mxu0 %v6439_v21 }
 0x3e3   :  { %5635 = vmatprep.subr.bf16.mxu0 %v6443_v22  ;;  %v4922_v22 = vrot.slane %v4913_v11, %v6701_v52 }
 0x3e6   :  { %5636 = vmatpush3.bf16.msra.mxu0 %v6444_v25 }
 0x3e7   :  { %5637 = vmatprep.subr.bf16.mxu0 %v6448_v28 }
 0x3ea   :  { %5638 = vmatpush3.bf16.msra.mxu0 %v6449_v29 }
 0x3eb   :  { %5639 = vmatprep.subr.bf16.mxu0 %v6453_v31 }
 0x3ee   :  { %5640 = vmatpush3.bf16.msra.mxu0 %v6454_v32 }
 0x3f1   :  { %4840 = vmatmul.mubr.bf16.vlgmr.msra.gmra.mxu0 %v4077_v10 }
 0x403   :  { %v4017_v42 = vpop.f32.mrf.mxu1 }
 0x404   :  { %v4018_v44 = vadd.f32 %v4017_v42, %v3408_v41 }
 0x405   :  { %v4019_v14 = vpop.f32.mrf.mxu1 }
 0x406   :  { %v4020_v43 = vadd.f32 %v4019_v14, %v3412_v36  ;;  %v4061_v49 = vadd.f32 %v4060_v33, %v4018_v44 }
 0x407   :  { %v4021_v45 = vpop.f32.mrf.mxu1 }
 0x408   :  { %v4022_v18 = vadd.f32 %v4021_v45, %v3408_v41  ;;  %v4063_v46 = vadd.f32 %v4062_v40, %v4020_v43  ;;  %v4071_v58 = vmax.f32 %v4061_v49, 0.0 }
 0x409   :  { %v4023_v37 = vpop.f32.mrf.mxu1 }
 0x40a   :  { %v4065_v23 = vadd.f32 %v4064_v54, %v4022_v18  ;;  %v4024_v48 = vadd.f32 %v4023_v37, %v3412_v36  ;;  %v4072_v57 = vmax.f32 %v4063_v46, 0.0 }
 0x40c   :  { %v4067_v53 = vadd.f32 %v4066_v51, %v4024_v48  ;;  %v4075_v56 = vmax.f32 %v4065_v23, 0.0 }
 0x40e   :  { %v4076_v26 = vmax.f32 %v4067_v53, 0.0  ;;  %v4079_v60 = vpack.c.bf16 %v4075_v56, %v4071_v58 }
 0x410   :  { %v4080_v59 = vpack.c.bf16 %v4076_v26, %v4072_v57 }
 0x412   :  { %4796 = vmatprep.mubr.bf16.mxu1 %v4080_v59 }
 0x413   :  { %4797 = vmatmul.mubr.bf16.vlgmr.msra.gmra.mxu1 %v4079_v60 }
 0x414   :  { %5648 = vmatpush3.bf16.msra.mxu1 %v6483_v50  ;;  %4880 = vmatprep.mubr.bf16.mxu1 %v4080_v59 }
 0x415   :  { %5649 = vmatprep.subr.bf16.mxu1 %v6484_v61 }
 0x418   :  { %5650 = vmatpush3.bf16.msra.mxu1 %v6485_v34 }
 0x419   :  { %5651 = vmatprep.subr.bf16.mxu1 %v6486_v62 }
 0x41c   :  { %5652 = vmatpush3.bf16.msra.mxu1 %v6487_v39 }
 0x41d   :  { %5653 = vmatprep.subr.bf16.mxu1 %v6488_v63 }
 0x420   :  { %5654 = vmatpush3.bf16.msra.mxu1 %v6489_v1 }
 0x421   :  { %5655 = vmatprep.subr.bf16.mxu1 %v6490_v38 }
 0x424   :  { %5656 = vmatpush3.bf16.msra.mxu1 %v6491_v2 }
 0x425   :  { %5657 = vmatprep.subr.bf16.mxu1 %v6492_v3 }
 0x428   :  { %5658 = vmatpush3.bf16.msra.mxu1 %v6493_v4 }
 0x429   :  { %5659 = vmatprep.subr.bf16.mxu1 %v6494_v5 }
 0x42c   :  { %5660 = vmatpush3.bf16.msra.mxu1 %v6495_v6 }
 0x42d   :  { %5661 = vmatprep.subr.bf16.mxu1 %v6496_v7 }
 0x430   :  { %5662 = vmatpush3.bf16.msra.mxu1 %v6497_v0 }
 0x433   :  { %4881 = vmatmul.mubr.bf16.vlgmr.msra.gmra.mxu1 %v4079_v60 }
 0x491   :  { %v4755_v9 = vpop.f32.mrf.mxu0 }
 0x493   :  { %v4757_v10 = vpop.f32.mrf.mxu0 }
 0x495   :  { %v4759_v17 = vpop.f32.mrf.mxu0 }
 0x497   :  { %v4761_v32 = vpop.f32.mrf.mxu0 }
 0x4b1   :  { %v5641_v52 = vpop.f32.mrf.mxu0 }
 0x4b3   :  { %v5642_v14 = vpop.f32.mrf.mxu0 }
 0x4b4   :  { %v5643_v54 = vadd.f32 %v5642_v14, %v5641_v52 }
 0x4b5   :  { %v5644_v43 = vpop.f32.mrf.mxu0 }
 0x4b7   :  { %v5645_v18 = vpop.f32.mrf.mxu0 }
 0x4b8   :  { %v5646_v48 = vadd.f32 %v5645_v18, %v5644_v43 }
 0x4d3   :  { %v4798_v13 = vpop.f32.mrf.mxu1 }
 0x4d4   :  { %v4799_v15 = vadd.f32 %v4798_v13, %v4755_v9 }
 0x4d5   :  { %v4800_v19 = vpop.f32.mrf.mxu1 }
 0x4d6   :  { %v4895_v20 = vadd.f32 %v4799_v15, %v6766_v24  ;;  %v4801_v21 = vadd.f32 %v4800_v19, %v4757_v10 }
 0x4d7   :  { %v4802_v25 = vpop.f32.mrf.mxu1 }
 0x4d8   :  { %v4930_v28 = vadd.f32 %v4918_v16, %v4895_v20  ;;  %v4896_v29 = vadd.f32 %v4801_v21, %v6769_v30  ;;  %v4803_v31 = vadd.f32 %v4802_v25, %v4759_v17 }
 0x4d9   :  { %v4804_v33 = vpop.f32.mrf.mxu1 }
 0x4da   :  { %4936 = vst [vmem:[#allocation12] sm:$0xff] %v4930_v28  ;;  %v4931_v36 = vadd.f32 %v4922_v22, %v4896_v29  ;;  %v4898_v40 = vadd.f32 %v4803_v31, %v6772_v35  ;;  %v4805_v41 = vadd.f32 %v4804_v33, %v4761_v32  ;;  %v4926_v35 = vrot.slane %v4913_v11, %v6712_v27 }
 0x4dc   :  { %4937 = vst [vmem:[#allocation12 + $0x8] sm:$0xff] %v4931_v36  ;;  %v4933_v55 = vadd.f32 %v4918_v16, %v4898_v40  ;;  %v4899_v42 = vadd.f32 %v4805_v41, %v6775_v8 }
 0x4de   :  { %4939 = vst [vmem:[#allocation12 + $0x18] sm:$0xff] %v4933_v55  ;;  %v4934_v24 = vadd.f32 %v4922_v22, %v4899_v42 }
 0x4e0   :  { %4940 = vst [vmem:[#allocation12 + $0x20] sm:$0xff] %v4934_v24 }
 0x4f3   :  { %v5663_v44 = vpop.f32.mrf.mxu1 }
 0x4f5   :  { %v5664_v30 = vpop.f32.mrf.mxu1 }
 0x4f6   :  { %v5665_v45 = vadd.f32 %v5664_v30, %v5663_v44 }
 0x4f7   :  { %v5666_v37 = vpop.f32.mrf.mxu1 }
 0x4f8   :  { %v4883_v46 = vadd.f32 %v5665_v45, %v5643_v54 }
 0x4f9   :  { %v5667_v23 = vpop.f32.mrf.mxu1 }
 0x4fa   :  { %v4897_v49 = vadd.f32 %v4883_v46, %v6779_v12  ;;  %v5668_v8 = vadd.f32 %v5667_v23, %v5666_v37 }
 0x4fc   :  { %v4932_v51 = vadd.f32 %v4926_v35, %v4897_v49  ;;  %v4886_v53 = vadd.f32 %v5668_v8, %v5646_v48 }
 0x4fe   :  { %4938 = vst [vmem:[#allocation12 + $0x10] sm:$0xff] %v4932_v51  ;;  %v4900_v56 = vadd.f32 %v4886_v53, %v6782_v47 }
 0x500   :  { %v4935_v57 = vadd.f32 %v4926_v35, %v4900_v56 }
 0x502   :  { %4941 = vst [vmem:[#allocation12 + $0x28] sm:$0xff] %v4935_v57 }
 0x503   :  { %6609 = shalt.err (!%p6606_p1)
}
 0x504   :  { %4953 = dma.vmem_to_hbm [thread:$0]  %s4948_s4, 768, %s6808_s5, [#allocation5], %s6633_s9, %s6633_s9, %s6634_s10  }
 0x505   :  { %6624 = dma.done.wait [#allocation5], 768  }
 0x506   :  { %6625 = vsyncadd [#allocation5], 4294966528 }
 0x507   :  { %4957 = vsyncpa [#allocation4], 1 }
 0x508   :  { %4958 = vsyncpa [#allocation7], 1 }
 0x509   :  { %4959 = vsyncpa [#allocation10], 1 }
 0x50a   :  { %4960 = vsyncpa [#allocation5], 1 }

</bundles_post_ra>
